<compile_context>
chip_gen: v7x
topology: tpu7x:2x2x1
jax: 0.10.0
libtpu: 0.0.40
codegen_flags: <defaults>
</compile_context>

<pallas_src>
import functools
import math

import jax
import jax.numpy as jnp
from jax.experimental import pallas as pl
from jax.experimental.pallas import tpu as pltpu


def _round_up(x, m):
    return ((x + m - 1) // m) * m


def _pick_tm(m):
    return _round_up(m, 8) if m <= 256 else 256


def _pick_tn(np_):
    if np_ <= 512:
        return np_
    for t in (512, 384, 256, 128):
        if np_ % t == 0:
            return t
    return 128


def _pad_cast_bf16(x, mp, kp):
    """Zero-pad (M, K) f32 -> (mp, kp) bf16, skipping the copy if already aligned."""
    m, k = x.shape
    if m == mp and k == kp:
        return x.astype(jnp.bfloat16)
    return jnp.zeros((mp, kp), jnp.bfloat16).at[:m, :k].set(x.astype(jnp.bfloat16))


# ----------------------------------------------------------------------------
# Kernel 1: tiled  Y = X @ W + b  (+ optional ReLU).  Single K block per call.
# ----------------------------------------------------------------------------
def _matmul_bias_kernel(x_ref, w_ref, b_ref, o_ref, *, relu):
    acc = jnp.dot(x_ref[...], w_ref[...], preferred_element_type=jnp.float32)
    acc = acc + b_ref[...]
    if relu:
        acc = jnp.maximum(acc, 0.0)
    o_ref[...] = acc.astype(o_ref.dtype)


def matmul_bias(x, w_pad, b_pad, n_out, relu):
    """y = x @ w + b (optional ReLU).

    x: (M, K) f32.  w_pad: (Kp, Np) bf16 pre-padded.  b_pad: (1, Np) f32.
    Returns (M, n_out) f32.
    """
    M, K = x.shape
    Kp, Np = w_pad.shape
    assert K <= Kp <= 4096
    tm = _pick_tm(M)
    tn = _pick_tn(Np)
    Mp = _round_up(M, tm)
    xp = _pad_cast_bf16(x, Mp, Kp)
    out = pl.pallas_call(
        functools.partial(_matmul_bias_kernel, relu=relu),
        out_shape=jax.ShapeDtypeStruct((Mp, Np), jnp.float32),
        grid_spec=pltpu.PrefetchScalarGridSpec(
            num_scalar_prefetch=0,
            grid=(Mp // tm, Np // tn),
            in_specs=[
                pl.BlockSpec((tm, Kp), lambda i, j: (i, 0)),
                pl.BlockSpec((Kp, tn), lambda i, j: (0, j)),
                pl.BlockSpec((1, tn), lambda i, j: (0, j)),
            ],
            out_specs=pl.BlockSpec((tm, tn), lambda i, j: (i, j)),
        ),
        compiler_params=pltpu.CompilerParams(
            dimension_semantics=("parallel", "parallel")),
    )(xp, w_pad, b_pad)
    if Mp == M and Np == n_out:
        return out
    return out[:M, :n_out]


# ----------------------------------------------------------------------------
# Kernel 2: fused two-layer MLP  y = relu(x@W1 + b1) @ W2 + b2.
# ----------------------------------------------------------------------------
def _mlp2_kernel(x_ref, w1_ref, b1_ref, w2_ref, b2_ref, o_ref):
    h = jnp.dot(x_ref[...], w1_ref[...], preferred_element_type=jnp.float32)
    h = jnp.maximum(h + b1_ref[...], 0.0)
    o = jnp.dot(h.astype(w2_ref.dtype), w2_ref[...],
                preferred_element_type=jnp.float32)
    o_ref[...] = o + b2_ref[...]


def mlp2(x, w1_pad, b1_pad, w2_pad, b2_pad, n_out):
    M, K = x.shape
    K1p, Hp = w1_pad.shape
    Hp2, N2p = w2_pad.shape
    assert K <= K1p and Hp == Hp2
    tm = _pick_tm(M)
    Mp = _round_up(M, tm)
    xp = _pad_cast_bf16(x, Mp, K1p)
    out = pl.pallas_call(
        _mlp2_kernel,
        out_shape=jax.ShapeDtypeStruct((Mp, N2p), jnp.float32),
        grid_spec=pltpu.PrefetchScalarGridSpec(
            num_scalar_prefetch=0,
            grid=(Mp // tm,),
            in_specs=[
                pl.BlockSpec((tm, K1p), lambda i: (i, 0)),
                pl.BlockSpec((K1p, Hp), lambda i: (0, 0)),
                pl.BlockSpec((1, Hp), lambda i: (0, 0)),
                pl.BlockSpec((Hp, N2p), lambda i: (0, 0)),
                pl.BlockSpec((1, N2p), lambda i: (0, 0)),
            ],
            out_specs=pl.BlockSpec((tm, N2p), lambda i: (i, 0)),
        ),
        compiler_params=pltpu.CompilerParams(
            dimension_semantics=("parallel",)),
    )(xp, w1_pad, b1_pad, w2_pad, b2_pad)
    return out[:M, :n_out]


# ----------------------------------------------------------------------------
# Kernel 3: fused multi-head attention (all batch*head pairs in one launch).
# ----------------------------------------------------------------------------
def _mha_kernel(q_ref, k_ref, v_ref, o_ref, *, scale, t_valid):
    s = jnp.einsum("bqd,bkd->bqk", q_ref[...], k_ref[...],
                   preferred_element_type=jnp.float32) * scale
    col = jax.lax.broadcasted_iota(jnp.int32, s.shape, 2)
    s = jnp.where(col < t_valid, s, -1e30)          # mask padded key columns
    m = jnp.max(s, axis=-1, keepdims=True)
    p = jnp.exp(s - m)
    p = p / jnp.sum(p, axis=-1, keepdims=True)
    ctx = jnp.einsum("bqk,bkd->bqd", p.astype(v_ref.dtype), v_ref[...],
                     preferred_element_type=jnp.float32)
    o_ref[...] = ctx


def mha(q, k, v, head_dim):
    """q, k, v: (B*H, T, head_dim) f32 -> context (B*H, T, head_dim) f32."""
    BH, T, _ = q.shape
    Tq = _round_up(T, 8)
    Tk = _round_up(T, 128)          # lane-aligned key/score axis
    Dp = _round_up(head_dim, 128)

    def pad(t, tp):
        return (jnp.zeros((BH, tp, Dp), jnp.bfloat16)
                .at[:, :T, :head_dim].set(t.astype(jnp.bfloat16)))

    qp, kp, vp = pad(q, Tq), pad(k, Tk), pad(v, Tk)
    out = pl.pallas_call(
        functools.partial(_mha_kernel, scale=1.0 / math.sqrt(head_dim),
                          t_valid=T),
        out_shape=jax.ShapeDtypeStruct((BH, Tq, Dp), jnp.float32),
        grid_spec=pltpu.PrefetchScalarGridSpec(
            num_scalar_prefetch=0,
            grid=(1,),
            in_specs=[
                pl.BlockSpec((BH, Tq, Dp), lambda i: (0, 0, 0)),
                pl.BlockSpec((BH, Tk, Dp), lambda i: (0, 0, 0)),
                pl.BlockSpec((BH, Tk, Dp), lambda i: (0, 0, 0)),
            ],
            out_specs=pl.BlockSpec((BH, Tq, Dp), lambda i: (0, 0, 0)),
        ),
        compiler_params=pltpu.CompilerParams(
            dimension_semantics=("arbitrary",)),
    )(qp, kp, vp)
    return out[:, :T, :head_dim]


# ----------------------------------------------------------------------------
# Conv-as-GEMM (im2col glue) + pooling + LayerNorm glue.
# ----------------------------------------------------------------------------
def conv3d_same_relu(x, w_pad, b_pad, cout):
    """3x3x3 conv, stride 1, padding 1, BN folded into (w_pad, b_pad), +ReLU."""
    B, D, H, W, C = x.shape
    xp = jnp.pad(x, ((0, 0), (1, 1), (1, 1), (1, 1), (0, 0)))
    patches = []
    for a in range(3):
        for b in range(3):
            for c in range(3):
                patches.append(xp[:, a:a + D, b:b + H, c:c + W, :])
    cols = jnp.stack(patches, axis=4).reshape(B * D * H * W, 27 * C)
    y = matmul_bias(cols, w_pad, b_pad, cout, relu=True)
    return y.reshape(B, D, H, W, cout)


def conv1d_same_relu(x, w_pad, b_pad, cout):
    """k=3 conv1d, stride 1, padding 1, BN folded, +ReLU.  x: (B, T, Cin)."""
    B, T, C = x.shape
    xp = jnp.pad(x, ((0, 0), (1, 1), (0, 0)))
    cols = jnp.stack([xp[:, a:a + T, :] for a in range(3)],
                     axis=2).reshape(B * T, 3 * C)
    y = matmul_bias(cols, w_pad, b_pad, cout, relu=True)
    return y.reshape(B, T, cout)


def maxpool3d_2x(x):
    B, D, H, W, C = x.shape
    x = x.reshape(B, D // 2, 2, H // 2, 2, W // 2, 2, C)
    return x.max(axis=(2, 4, 6))


def layer_norm(x, gamma, beta, eps=1e-5):
    mu = jnp.mean(x, axis=-1, keepdims=True)
    var = jnp.mean(jnp.square(x - mu), axis=-1, keepdims=True)
    return (x - mu) * jax.lax.rsqrt(var + eps) * gamma + beta


# ----------------------------------------------------------------------------
# Transformer encoder layer (post-norm, ReLU FFN — PyTorch defaults).
# ----------------------------------------------------------------------------
def encoder_layer(x, lp, nhead):
    B, T, dm = x.shape
    hd = dm // nhead
    M = B * T
    x2 = x.reshape(M, dm)

    qkv = matmul_bias(x2, lp["w_qkv"], lp["b_qkv"], 3 * dm, relu=False)
    q, k, v = jnp.split(qkv, 3, axis=-1)

    def to_heads(t):
        return (t.reshape(B, T, nhead, hd)
                 .transpose(0, 2, 1, 3)
                 .reshape(B * nhead, T, hd))

    ctx = mha(to_heads(q), to_heads(k), to_heads(v), hd)
    ctx = (ctx.reshape(B, nhead, T, hd)
              .transpose(0, 2, 1, 3)
              .reshape(M, dm))
    attn_out = matmul_bias(ctx, lp["w_out"], lp["b_out"], dm, relu=False)

    h = layer_norm(x2 + attn_out, lp["ln1_g"], lp["ln1_b"])
    ffn = mlp2(h, lp["w_ff1"], lp["b_ff1"], lp["w_ff2"], lp["b_ff2"], dm)
    h = layer_norm(h + ffn, lp["ln2_g"], lp["ln2_b"])
    return h.reshape(B, T, dm)


# ----------------------------------------------------------------------------
# Full forward.
# ----------------------------------------------------------------------------
def transformer_forward(params, moves, evals, times, *, hidden_dim, nhead):
    B, T, C, H, W = moves.shape

    # ---- move encoder: Conv3d+BN+ReLU / MaxPool3d stack, channels-last ------
    x = jnp.transpose(moves, (0, 1, 3, 4, 2))             # (B, T, H, W, C)
    w, b = params["move"][0]
    x = conv3d_same_relu(x, w, b, 32)
    x = maxpool3d_2x(x)
    w, b = params["move"][1]
    x = conv3d_same_relu(x, w, b, 64)
    x = maxpool3d_2x(x)
    w, b = params["move"][2]
    x = conv3d_same_relu(x, w, b, hidden_dim)
    # PyTorch: (B,C,D',H',W') -> permute(0,2,1,3,4) -> reshape(B, T, -1)
    x = jnp.transpose(x, (0, 1, 4, 2, 3))                 # (B, D', C, H', W')
    mfeat = x.reshape(B, T, -1)                           # (B, T, hidden_dim)

    # ---- eval / time encoders: Conv1d+BN+ReLU stacks -------------------------
    e = evals[..., None]                                  # (B, T, 1)
    for (w, b), cout in zip(params["eval"], (32, 64, hidden_dim)):
        e = conv1d_same_relu(e, w, b, cout)
    t = times[..., None]
    for (w, b), cout in zip(params["time"], (32, 64, hidden_dim)):
        t = conv1d_same_relu(t, w, b, cout)

    combined = jnp.concatenate([mfeat, e, t], axis=-1)    # (B, T, d_model)
    combined = combined + params["pe"][None, :T, :]       # dropout == identity

    h = combined
    for lp in params["layers"]:
        h = encoder_layer(h, lp, nhead)

    pooled = jnp.mean(h, axis=1)                          # (B, d_model)
    # classifier: Linear -> ReLU -> (Dropout=id) -> Linear, fused in one kernel
    return mlp2(pooled, params["cls"]["w1"], params["cls"]["b1"],
                params["cls"]["w2"], params["cls"]["b2"], 4)


# ----------------------------------------------------------------------------
# Parameter init + one-time GEMM-ready preparation (pad, BN-fold, bf16 cast).
# ----------------------------------------------------------------------------
def init_params(key, in_channels, hidden_dim, nhead, num_layers, dim_ff):
    dm = 3 * hidden_dim
    keys = iter(jax.random.split(key, 128))

    def u(shape, fan_in):
        bound = 1.0 / math.sqrt(fan_in)
        return jax.random.uniform(next(keys), shape, jnp.float32, -bound, bound)

    def conv3d_p(cin, cout):
        return {"w": u((3, 3, 3, cin, cout), cin * 27), "b": u((cout,), cin * 27),
                "g": jnp.ones((cout,)), "be": jnp.zeros((cout,)),
                "m": jnp.zeros((cout,)), "v": jnp.ones((cout,))}

    def conv1d_p(cin, cout):
        return {"w": u((3, cin, cout), cin * 3), "b": u((cout,), cin * 3),
                "g": jnp.ones((cout,)), "be": jnp.zeros((cout,)),
                "m": jnp.zeros((cout,)), "v": jnp.ones((cout,))}

    raw = {
        "move": [conv3d_p(in_channels, 32), conv3d_p(32, 64),
                 conv3d_p(64, hidden_dim)],
        "eval": [conv1d_p(1, 32), conv1d_p(32, 64), conv1d_p(64, hidden_dim)],
        "time": [conv1d_p(1, 32), conv1d_p(32, 64), conv1d_p(64, hidden_dim)],
        "layers": [],
        "cls": {"w1": u((dm, hidden_dim), dm), "b1": u((hidden_dim,), dm),
                "w2": u((hidden_dim, 4), hidden_dim), "b2": u((4,), hidden_dim)},
    }
    for _ in range(num_layers):
        raw["layers"].append({
            "w_qkv": u((dm, 3 * dm), dm), "b_qkv": u((3 * dm,), dm),
            "w_out": u((dm, dm), dm), "b_out": u((dm,), dm),
            "ln1_g": jnp.ones((dm,)), "ln1_b": jnp.zeros((dm,)),
            "w_ff1": u((dm, dim_ff), dm), "b_ff1": u((dim_ff,), dm),
            "w_ff2": u((dim_ff, dm), dim_ff), "b_ff2": u((dm,), dim_ff),
            "ln2_g": jnp.ones((dm,)), "ln2_b": jnp.zeros((dm,)),
        })
    return raw


def _pad_wb(w2d, b1d):
    K, N = w2d.shape
    Kp, Np = _round_up(K, 128), _round_up(N, 128)
    wp = jnp.zeros((Kp, Np), jnp.bfloat16).at[:K, :N].set(
        w2d.astype(jnp.bfloat16))
    bp = jnp.zeros((1, Np), jnp.float32).at[0, :N].set(b1d.astype(jnp.float32))
    return wp, bp


def prepare_params(raw, hidden_dim, num_moves):
    """Run once OUTSIDE the jitted forward: BN folding, padding, bf16 cast."""
    dm = 3 * hidden_dim

    def fold_conv(p, eps=1e-5):
        scale = p["g"] / jnp.sqrt(p["v"] + eps)
        w = p["w"] * scale
        b = (p["b"] - p["m"]) * scale + p["be"]
        return _pad_wb(w.reshape(-1, w.shape[-1]), b)

    prep = {
        "move": [fold_conv(p) for p in raw["move"]],
        "eval": [fold_conv(p) for p in raw["eval"]],
        "time": [fold_conv(p) for p in raw["time"]],
        "layers": [],
    }
    for lp in raw["layers"]:
        d = {}
        for name in ("qkv", "out", "ff1", "ff2"):
            w, b = _pad_wb(lp["w_" + name], lp["b_" + name])
            d["w_" + name], d["b_" + name] = w, b
        for name in ("ln1_g", "ln1_b", "ln2_g", "ln2_b"):
            d[name] = lp[name]
        prep["layers"].append(d)
    w1, b1 = _pad_wb(raw["cls"]["w1"], raw["cls"]["b1"])
    w2, b2 = _pad_wb(raw["cls"]["w2"], raw["cls"]["b2"])
    prep["cls"] = {"w1": w1, "b1": b1, "w2": w2, "b2": b2}

    pos = jnp.arange(num_moves, dtype=jnp.float32)[:, None]
    div = jnp.exp(jnp.arange(0, dm, 2, dtype=jnp.float32)
                  * (-math.log(10000.0) / dm))
    pe = jnp.zeros((num_moves, dm), jnp.float32)
    pe = pe.at[:, 0::2].set(jnp.sin(pos * div))
    pe = pe.at[:, 1::2].set(jnp.cos(pos * div))
    prep["pe"] = pe
    return prep


if __name__ == "__main__":
    # Small config consistent with the module:
    #   in_channels=4, hidden_dim=32, nhead=4, num_layers=2, dim_feedforward=64,
    #   num_moves = T = 8, spatial H = W = 8 so the move-encoder flatten gives
    #   exactly hidden_dim features per step (d_model = 3*hidden_dim = 96).
    in_channels, hidden_dim, nhead, num_layers, dim_ff = 4, 32, 4, 2, 64
    B, T, H, W = 2, 8, 8, 8

    key = jax.random.PRNGKey(0)
    k_m, k_e, k_t, k_p = jax.random.split(key, 4)
    moves = jax.random.normal(k_m, (B, T, in_channels, H, W), jnp.float32)
    evals = jax.random.normal(k_e, (B, T), jnp.float32)
    times = jax.random.normal(k_t, (B, T), jnp.float32)

    raw = init_params(k_p, in_channels, hidden_dim, nhead, num_layers, dim_ff)
    params = prepare_params(raw, hidden_dim, num_moves=T)  # one-time pad/fold/cast

    fwd = jax.jit(functools.partial(transformer_forward,
                                    hidden_dim=hidden_dim, nhead=nhead))
    out = jax.block_until_ready(fwd(params, moves, evals, times))
    assert out.shape == (B, 4), out.shape
    assert bool(jnp.all(jnp.isfinite(out)))
    print("KERNEL_OK")
</pallas_src>

<mosaic_0001>
module attributes {stable_mosaic.version = 11 : i64} {
  func.func @_matmul_bias_kernel(%arg0: i32, %arg1: i32, %arg2: memref<256x128xbf16, #tpu.memory_space<vmem>>, %arg3: memref<128x128xbf16, #tpu.memory_space<vmem>>, %arg4: memref<1x128xf32, #tpu.memory_space<vmem>>, %arg5: memref<256x128xf32, #tpu.memory_space<vmem>>) attributes {dimension_semantics = [#tpu.dimension_semantics<parallel>, #tpu.dimension_semantics<parallel>], iteration_bounds = array<i64: 4, 1>, scalar_prefetch = 0 : i64, scratch_operands = 0 : i64, tpu.core_type = #tpu.core_type<tc>, window_params = [{transform_indices = @transform_0, window_bounds = array<i64: 256, 128>}, {transform_indices = @transform_1, window_bounds = array<i64: 128, 128>}, {transform_indices = @transform_2, window_bounds = array<i64: 1, 128>}, {transform_indices = @transform_3, window_bounds = array<i64: 256, 128>}]} {
    %c0 = arith.constant 0 : index
    %c0_0 = arith.constant 0 : index
    %0 = vector.load %arg2[%c0, %c0_0] : memref<256x128xbf16, #tpu.memory_space<vmem>>, vector<256x128xbf16>
    %c0_1 = arith.constant 0 : index
    %c0_2 = arith.constant 0 : index
    %1 = vector.load %arg3[%c0_1, %c0_2] : memref<128x128xbf16, #tpu.memory_space<vmem>>, vector<128x128xbf16>
    %cst = arith.constant dense<0.000000e+00> : vector<256x128xf32>
    %2 = tpu.matmul %0, %1, %cst {dimension_numbers = #tpu.dot_dimension_numbers<[1], [0], [0], [1], [0, 0, 1, 1], [], []>} : vector<256x128xbf16>, vector<128x128xbf16>, vector<256x128xf32> -> vector<256x128xf32>
    %c0_3 = arith.constant 0 : index
    %c0_4 = arith.constant 0 : index
    %3 = vector.load %arg4[%c0_3, %c0_4] : memref<1x128xf32, #tpu.memory_space<vmem>>, vector<1x128xf32>
    %4 = vector.broadcast %3 : vector<1x128xf32> to vector<256x128xf32>
    %5 = arith.addf %2, %4 : vector<256x128xf32>
    %cst_5 = arith.constant 0.000000e+00 : f32
    %6 = vector.broadcast %cst_5 : f32 to vector<256x128xf32>
    %7 = arith.maximumf %5, %6 : vector<256x128xf32>
    %c0_6 = arith.constant 0 : index
    %c0_7 = arith.constant 0 : index
    %8 = vector.load %arg5[%c0_6, %c0_7] : memref<256x128xf32, #tpu.memory_space<vmem>>, vector<256x128xf32>
    tpu.vector_store %arg5[%c0_6, %c0_7], %7 {strides = array<i32>} : memref<256x128xf32, #tpu.memory_space<vmem>>, vector<256x128xf32>,
    return
  }
  func.func @transform_0(%arg0: i32, %arg1: i32) -> (i32, i32) {
    %c0_i32 = arith.constant 0 : i32
    %c0_i32_0 = arith.constant 0 : i32
    return %arg0, %c0_i32 : i32, i32
  }
  func.func @transform_1(%arg0: i32, %arg1: i32) -> (i32, i32) {
    %c0_i32 = arith.constant 0 : i32
    %c0_i32_0 = arith.constant 0 : i32
    return %c0_i32, %arg1 : i32, i32
  }
  func.func @transform_2(%arg0: i32, %arg1: i32) -> (i32, i32) {
    %c0_i32 = arith.constant 0 : i32
    %c0_i32_0 = arith.constant 0 : i32
    return %c0_i32, %arg1 : i32, i32
  }
  func.func @transform_3(%arg0: i32, %arg1: i32) -> (i32, i32) {
    %c0_i32 = arith.constant 0 : i32
    return %arg0, %arg1 : i32, i32
  }
}

module attributes {stable_mosaic.version = 11 : i64} {
  func.func @_matmul_bias_kernel(%arg0: i32, %arg1: i32, %arg2: memref<128x896xbf16, #tpu.memory_space<vmem>>, %arg3: memref<896x128xbf16, #tpu.memory_space<vmem>>, %arg4: memref<1x128xf32, #tpu.memory_space<vmem>>, %arg5: memref<128x128xf32, #tpu.memory_space<vmem>>) attributes {dimension_semantics = [#tpu.dimension_semantics<parallel>, #tpu.dimension_semantics<parallel>], iteration_bounds = array<i64: 1, 1>, scalar_prefetch = 0 : i64, scratch_operands = 0 : i64, tpu.core_type = #tpu.core_type<tc>, window_params = [{transform_indices = @transform_0, window_bounds = array<i64: 128, 896>}, {transform_indices = @transform_1, window_bounds = array<i64: 896, 128>}, {transform_indices = @transform_2, window_bounds = array<i64: 1, 128>}, {transform_indices = @transform_3, window_bounds = array<i64: 128, 128>}]} {
    %c0 = arith.constant 0 : index
    %c0_0 = arith.constant 0 : index
    %0 = vector.load %arg2[%c0, %c0_0] : memref<128x896xbf16, #tpu.memory_space<vmem>>, vector<128x896xbf16>
    %c0_1 = arith.constant 0 : index
    %c0_2 = arith.constant 0 : index
    %1 = vector.load %arg3[%c0_1, %c0_2] : memref<896x128xbf16, #tpu.memory_space<vmem>>, vector<896x128xbf16>
    %cst = arith.constant dense<0.000000e+00> : vector<128x128xf32>
    %2 = tpu.matmul %0, %1, %cst {dimension_numbers = #tpu.dot_dimension_numbers<[1], [0], [0], [1], [0, 0, 1, 1], [], []>} : vector<128x896xbf16>, vector<896x128xbf16>, vector<128x128xf32> -> vector<128x128xf32>
    %c0_3 = arith.constant 0 : index
    %c0_4 = arith.constant 0 : index
    %3 = vector.load %arg4[%c0_3, %c0_4] : memref<1x128xf32, #tpu.memory_space<vmem>>, vector<1x128xf32>
    %4 = vector.broadcast %3 : vector<1x128xf32> to vector<128x128xf32>
    %5 = arith.addf %2, %4 : vector<128x128xf32>
    %cst_5 = arith.constant 0.000000e+00 : f32
    %6 = vector.broadcast %cst_5 : f32 to vector<128x128xf32>
    %7 = arith.maximumf %5, %6 : vector<128x128xf32>
    %c0_6 = arith.constant 0 : index
    %c0_7 = arith.constant 0 : index
    %8 = vector.load %arg5[%c0_6, %c0_7] : memref<128x128xf32, #tpu.memory_space<vmem>>, vector<128x128xf32>
    tpu.vector_store %arg5[%c0_6, %c0_7], %7 {strides = array<i32>} : memref<128x128xf32, #tpu.memory_space<vmem>>, vector<128x128xf32>,
    return
  }
  func.func @transform_0(%arg0: i32, %arg1: i32) -> (i32, i32) {
    %c0_i32 = arith.constant 0 : i32
    %c0_i32_0 = arith.constant 0 : i32
    return %arg0, %c0_i32 : i32, i32
  }
  func.func @transform_1(%arg0: i32, %arg1: i32) -> (i32, i32) {
    %c0_i32 = arith.constant 0 : i32
    %c0_i32_0 = arith.constant 0 : i32
    return %c0_i32, %arg1 : i32, i32
  }
  func.func @transform_2(%arg0: i32, %arg1: i32) -> (i32, i32) {
    %c0_i32 = arith.constant 0 : i32
    %c0_i32_0 = arith.constant 0 : i32
    return %c0_i32, %arg1 : i32, i32
  }
  func.func @transform_3(%arg0: i32, %arg1: i32) -> (i32, i32) {
    %c0_i32 = arith.constant 0 : i32
    return %arg0, %arg1 : i32, i32
  }
}

module attributes {stable_mosaic.version = 11 : i64} {
  func.func @_matmul_bias_kernel(%arg0: i32, %arg1: i32, %arg2: memref<16x1792xbf16, #tpu.memory_space<vmem>>, %arg3: memref<1792x128xbf16, #tpu.memory_space<vmem>>, %arg4: memref<1x128xf32, #tpu.memory_space<vmem>>, %arg5: memref<16x128xf32, #tpu.memory_space<vmem>>) attributes {dimension_semantics = [#tpu.dimension_semantics<parallel>, #tpu.dimension_semantics<parallel>], iteration_bounds = array<i64: 1, 1>, scalar_prefetch = 0 : i64, scratch_operands = 0 : i64, tpu.core_type = #tpu.core_type<tc>, window_params = [{transform_indices = @transform_0, window_bounds = array<i64: 16, 1792>}, {transform_indices = @transform_1, window_bounds = array<i64: 1792, 128>}, {transform_indices = @transform_2, window_bounds = array<i64: 1, 128>}, {transform_indices = @transform_3, window_bounds = array<i64: 16, 128>}]} {
    %c0 = arith.constant 0 : index
    %c0_0 = arith.constant 0 : index
    %0 = vector.load %arg2[%c0, %c0_0] : memref<16x1792xbf16, #tpu.memory_space<vmem>>, vector<16x1792xbf16>
    %c0_1 = arith.constant 0 : index
    %c0_2 = arith.constant 0 : index
    %1 = vector.load %arg3[%c0_1, %c0_2] : memref<1792x128xbf16, #tpu.memory_space<vmem>>, vector<1792x128xbf16>
    %cst = arith.constant dense<0.000000e+00> : vector<16x128xf32>
    %2 = tpu.matmul %0, %1, %cst {dimension_numbers = #tpu.dot_dimension_numbers<[1], [0], [0], [1], [0, 0, 1, 1], [], []>} : vector<16x1792xbf16>, vector<1792x128xbf16>, vector<16x128xf32> -> vector<16x128xf32>
    %c0_3 = arith.constant 0 : index
    %c0_4 = arith.constant 0 : index
    %3 = vector.load %arg4[%c0_3, %c0_4] : memref<1x128xf32, #tpu.memory_space<vmem>>, vector<1x128xf32>
    %4 = vector.broadcast %3 : vector<1x128xf32> to vector<16x128xf32>
    %5 = arith.addf %2, %4 : vector<16x128xf32>
    %cst_5 = arith.constant 0.000000e+00 : f32
    %6 = vector.broadcast %cst_5 : f32 to vector<16x128xf32>
    %7 = arith.maximumf %5, %6 : vector<16x128xf32>
    %c0_6 = arith.constant 0 : index
    %c0_7 = arith.constant 0 : index
    %8 = vector.load %arg5[%c0_6, %c0_7] : memref<16x128xf32, #tpu.memory_space<vmem>>, vector<16x128xf32>
    tpu.vector_store %arg5[%c0_6, %c0_7], %7 {strides = array<i32>} : memref<16x128xf32, #tpu.memory_space<vmem>>, vector<16x128xf32>,
    return
  }
  func.func @transform_0(%arg0: i32, %arg1: i32) -> (i32, i32) {
    %c0_i32 = arith.constant 0 : i32
    %c0_i32_0 = arith.constant 0 : i32
    return %arg0, %c0_i32 : i32, i32
  }
  func.func @transform_1(%arg0: i32, %arg1: i32) -> (i32, i32) {
    %c0_i32 = arith.constant 0 : i32
    %c0_i32_0 = arith.constant 0 : i32
    return %c0_i32, %arg1 : i32, i32
  }
  func.func @transform_2(%arg0: i32, %arg1: i32) -> (i32, i32) {
    %c0_i32 = arith.constant 0 : i32
    %c0_i32_0 = arith.constant 0 : i32
    return %c0_i32, %arg1 : i32, i32
  }
  func.func @transform_3(%arg0: i32, %arg1: i32) -> (i32, i32) {
    %c0_i32 = arith.constant 0 : i32
    return %arg0, %arg1 : i32, i32
  }
}

module attributes {stable_mosaic.version = 11 : i64} {
  func.func @_matmul_bias_kernel(%arg0: i32, %arg1: i32, %arg2: memref<16x128xbf16, #tpu.memory_space<vmem>>, %arg3: memref<128x128xbf16, #tpu.memory_space<vmem>>, %arg4: memref<1x128xf32, #tpu.memory_space<vmem>>, %arg5: memref<16x128xf32, #tpu.memory_space<vmem>>) attributes {dimension_semantics = [#tpu.dimension_semantics<parallel>, #tpu.dimension_semantics<parallel>], iteration_bounds = array<i64: 1, 1>, scalar_prefetch = 0 : i64, scratch_operands = 0 : i64, tpu.core_type = #tpu.core_type<tc>, window_params = [{transform_indices = @transform_0, window_bounds = array<i64: 16, 128>}, {transform_indices = @transform_1, window_bounds = array<i64: 128, 128>}, {transform_indices = @transform_2, window_bounds = array<i64: 1, 128>}, {transform_indices = @transform_3, window_bounds = array<i64: 16, 128>}]} {
    %c0 = arith.constant 0 : index
    %c0_0 = arith.constant 0 : index
    %0 = vector.load %arg2[%c0, %c0_0] : memref<16x128xbf16, #tpu.memory_space<vmem>>, vector<16x128xbf16>
    %c0_1 = arith.constant 0 : index
    %c0_2 = arith.constant 0 : index
    %1 = vector.load %arg3[%c0_1, %c0_2] : memref<128x128xbf16, #tpu.memory_space<vmem>>, vector<128x128xbf16>
    %cst = arith.constant dense<0.000000e+00> : vector<16x128xf32>
    %2 = tpu.matmul %0, %1, %cst {dimension_numbers = #tpu.dot_dimension_numbers<[1], [0], [0], [1], [0, 0, 1, 1], [], []>} : vector<16x128xbf16>, vector<128x128xbf16>, vector<16x128xf32> -> vector<16x128xf32>
    %c0_3 = arith.constant 0 : index
    %c0_4 = arith.constant 0 : index
    %3 = vector.load %arg4[%c0_3, %c0_4] : memref<1x128xf32, #tpu.memory_space<vmem>>, vector<1x128xf32>
    %4 = vector.broadcast %3 : vector<1x128xf32> to vector<16x128xf32>
    %5 = arith.addf %2, %4 : vector<16x128xf32>
    %cst_5 = arith.constant 0.000000e+00 : f32
    %6 = vector.broadcast %cst_5 : f32 to vector<16x128xf32>
    %7 = arith.maximumf %5, %6 : vector<16x128xf32>
    %c0_6 = arith.constant 0 : index
    %c0_7 = arith.constant 0 : index
    %8 = vector.load %arg5[%c0_6, %c0_7] : memref<16x128xf32, #tpu.memory_space<vmem>>, vector<16x128xf32>
    tpu.vector_store %arg5[%c0_6, %c0_7], %7 {strides = array<i32>} : memref<16x128xf32, #tpu.memory_space<vmem>>, vector<16x128xf32>,
    return
  }
  func.func @transform_0(%arg0: i32, %arg1: i32) -> (i32, i32) {
    %c0_i32 = arith.constant 0 : i32
    %c0_i32_0 = arith.constant 0 : i32
    return %arg0, %c0_i32 : i32, i32
  }
  func.func @transform_1(%arg0: i32, %arg1: i32) -> (i32, i32) {
    %c0_i32 = arith.constant 0 : i32
    %c0_i32_0 = arith.constant 0 : i32
    return %c0_i32, %arg1 : i32, i32
  }
  func.func @transform_2(%arg0: i32, %arg1: i32) -> (i32, i32) {
    %c0_i32 = arith.constant 0 : i32
    %c0_i32_0 = arith.constant 0 : i32
    return %c0_i32, %arg1 : i32, i32
  }
  func.func @transform_3(%arg0: i32, %arg1: i32) -> (i32, i32) {
    %c0_i32 = arith.constant 0 : i32
    return %arg0, %arg1 : i32, i32
  }
}

module attributes {stable_mosaic.version = 11 : i64} {
  func.func @_matmul_bias_kernel(%arg0: i32, %arg1: i32, %arg2: memref<16x128xbf16, #tpu.memory_space<vmem>>, %arg3: memref<128x384xbf16, #tpu.memory_space<vmem>>, %arg4: memref<1x384xf32, #tpu.memory_space<vmem>>, %arg5: memref<16x384xf32, #tpu.memory_space<vmem>>) attributes {dimension_semantics = [#tpu.dimension_semantics<parallel>, #tpu.dimension_semantics<parallel>], iteration_bounds = array<i64: 1, 1>, scalar_prefetch = 0 : i64, scratch_operands = 0 : i64, tpu.core_type = #tpu.core_type<tc>, window_params = [{transform_indices = @transform_0, window_bounds = array<i64: 16, 128>}, {transform_indices = @transform_1, window_bounds = array<i64: 128, 384>}, {transform_indices = @transform_2, window_bounds = array<i64: 1, 384>}, {transform_indices = @transform_3, window_bounds = array<i64: 16, 384>}]} {
    %c0 = arith.constant 0 : index
    %c0_0 = arith.constant 0 : index
    %0 = vector.load %arg2[%c0, %c0_0] : memref<16x128xbf16, #tpu.memory_space<vmem>>, vector<16x128xbf16>
    %c0_1 = arith.constant 0 : index
    %c0_2 = arith.constant 0 : index
    %1 = vector.load %arg3[%c0_1, %c0_2] : memref<128x384xbf16, #tpu.memory_space<vmem>>, vector<128x384xbf16>
    %cst = arith.constant dense<0.000000e+00> : vector<16x384xf32>
    %2 = tpu.matmul %0, %1, %cst {dimension_numbers = #tpu.dot_dimension_numbers<[1], [0], [0], [1], [0, 0, 1, 1], [], []>} : vector<16x128xbf16>, vector<128x384xbf16>, vector<16x384xf32> -> vector<16x384xf32>
    %c0_3 = arith.constant 0 : index
    %c0_4 = arith.constant 0 : index
    %3 = vector.load %arg4[%c0_3, %c0_4] : memref<1x384xf32, #tpu.memory_space<vmem>>, vector<1x384xf32>
    %4 = vector.broadcast %3 : vector<1x384xf32> to vector<16x384xf32>
    %5 = arith.addf %2, %4 : vector<16x384xf32>
    %c0_5 = arith.constant 0 : index
    %c0_6 = arith.constant 0 : index
    %6 = vector.load %arg5[%c0_5, %c0_6] : memref<16x384xf32, #tpu.memory_space<vmem>>, vector<16x384xf32>
    tpu.vector_store %arg5[%c0_5, %c0_6], %5 {strides = array<i32>} : memref<16x384xf32, #tpu.memory_space<vmem>>, vector<16x384xf32>,
    return
  }
  func.func @transform_0(%arg0: i32, %arg1: i32) -> (i32, i32) {
    %c0_i32 = arith.constant 0 : i32
    %c0_i32_0 = arith.constant 0 : i32
    return %arg0, %c0_i32 : i32, i32
  }
  func.func @transform_1(%arg0: i32, %arg1: i32) -> (i32, i32) {
    %c0_i32 = arith.constant 0 : i32
    %c0_i32_0 = arith.constant 0 : i32
    return %c0_i32, %arg1 : i32, i32
  }
  func.func @transform_2(%arg0: i32, %arg1: i32) -> (i32, i32) {
    %c0_i32 = arith.constant 0 : i32
    %c0_i32_0 = arith.constant 0 : i32
    return %c0_i32, %arg1 : i32, i32
  }
  func.func @transform_3(%arg0: i32, %arg1: i32) -> (i32, i32) {
    %c0_i32 = arith.constant 0 : i32
    return %arg0, %arg1 : i32, i32
  }
}

module attributes {stable_mosaic.version = 11 : i64} {
  func.func @_matmul_bias_kernel(%arg0: i32, %arg1: i32, %arg2: memref<16x256xbf16, #tpu.memory_space<vmem>>, %arg3: memref<256x128xbf16, #tpu.memory_space<vmem>>, %arg4: memref<1x128xf32, #tpu.memory_space<vmem>>, %arg5: memref<16x128xf32, #tpu.memory_space<vmem>>) attributes {dimension_semantics = [#tpu.dimension_semantics<parallel>, #tpu.dimension_semantics<parallel>], iteration_bounds = array<i64: 1, 1>, scalar_prefetch = 0 : i64, scratch_operands = 0 : i64, tpu.core_type = #tpu.core_type<tc>, window_params = [{transform_indices = @transform_0, window_bounds = array<i64: 16, 256>}, {transform_indices = @transform_1, window_bounds = array<i64: 256, 128>}, {transform_indices = @transform_2, window_bounds = array<i64: 1, 128>}, {transform_indices = @transform_3, window_bounds = array<i64: 16, 128>}]} {
    %c0 = arith.constant 0 : index
    %c0_0 = arith.constant 0 : index
    %0 = vector.load %arg2[%c0, %c0_0] : memref<16x256xbf16, #tpu.memory_space<vmem>>, vector<16x256xbf16>
    %c0_1 = arith.constant 0 : index
    %c0_2 = arith.constant 0 : index
    %1 = vector.load %arg3[%c0_1, %c0_2] : memref<256x128xbf16, #tpu.memory_space<vmem>>, vector<256x128xbf16>
    %cst = arith.constant dense<0.000000e+00> : vector<16x128xf32>
    %2 = tpu.matmul %0, %1, %cst {dimension_numbers = #tpu.dot_dimension_numbers<[1], [0], [0], [1], [0, 0, 1, 1], [], []>} : vector<16x256xbf16>, vector<256x128xbf16>, vector<16x128xf32> -> vector<16x128xf32>
    %c0_3 = arith.constant 0 : index
    %c0_4 = arith.constant 0 : index
    %3 = vector.load %arg4[%c0_3, %c0_4] : memref<1x128xf32, #tpu.memory_space<vmem>>, vector<1x128xf32>
    %4 = vector.broadcast %3 : vector<1x128xf32> to vector<16x128xf32>
    %5 = arith.addf %2, %4 : vector<16x128xf32>
    %cst_5 = arith.constant 0.000000e+00 : f32
    %6 = vector.broadcast %cst_5 : f32 to vector<16x128xf32>
    %7 = arith.maximumf %5, %6 : vector<16x128xf32>
    %c0_6 = arith.constant 0 : index
    %c0_7 = arith.constant 0 : index
    %8 = vector.load %arg5[%c0_6, %c0_7] : memref<16x128xf32, #tpu.memory_space<vmem>>, vector<16x128xf32>
    tpu.vector_store %arg5[%c0_6, %c0_7], %7 {strides = array<i32>} : memref<16x128xf32, #tpu.memory_space<vmem>>, vector<16x128xf32>,
    return
  }
  func.func @transform_0(%arg0: i32, %arg1: i32) -> (i32, i32) {
    %c0_i32 = arith.constant 0 : i32
    %c0_i32_0 = arith.constant 0 : i32
    return %arg0, %c0_i32 : i32, i32
  }
  func.func @transform_1(%arg0: i32, %arg1: i32) -> (i32, i32) {
    %c0_i32 = arith.constant 0 : i32
    %c0_i32_0 = arith.constant 0 : i32
    return %c0_i32, %arg1 : i32, i32
  }
  func.func @transform_2(%arg0: i32, %arg1: i32) -> (i32, i32) {
    %c0_i32 = arith.constant 0 : i32
    %c0_i32_0 = arith.constant 0 : i32
    return %c0_i32, %arg1 : i32, i32
  }
  func.func @transform_3(%arg0: i32, %arg1: i32) -> (i32, i32) {
    %c0_i32 = arith.constant 0 : i32
    return %arg0, %arg1 : i32, i32
  }
}

module attributes {stable_mosaic.version = 11 : i64} {
  func.func @_mha_kernel(%arg0: i32, %arg1: memref<8x8x128xbf16, #tpu.memory_space<vmem>>, %arg2: memref<8x128x128xbf16, #tpu.memory_space<vmem>>, %arg3: memref<8x128x128xbf16, #tpu.memory_space<vmem>>, %arg4: memref<8x8x128xf32, #tpu.memory_space<vmem>>) attributes {dimension_semantics = [#tpu.dimension_semantics<arbitrary>], iteration_bounds = array<i64: 1>, scalar_prefetch = 0 : i64, scratch_operands = 0 : i64, tpu.core_type = #tpu.core_type<tc>, window_params = [{pipeline_mode = #tpu.pipeline_mode<synchronous>, transform_indices = @transform_0, window_bounds = array<i64: 8, 8, 128>}, {pipeline_mode = #tpu.pipeline_mode<synchronous>, transform_indices = @transform_1, window_bounds = array<i64: 8, 128, 128>}, {pipeline_mode = #tpu.pipeline_mode<synchronous>, transform_indices = @transform_2, window_bounds = array<i64: 8, 128, 128>}, {pipeline_mode = #tpu.pipeline_mode<synchronous>, transform_indices = @transform_3, window_bounds = array<i64: 8, 8, 128>}]} {
    %c0 = arith.constant 0 : index
    %c0_0 = arith.constant 0 : index
    %c0_1 = arith.constant 0 : index
    %0 = vector.load %arg1[%c0, %c0_0, %c0_1] : memref<8x8x128xbf16, #tpu.memory_space<vmem>>, vector<8x8x128xbf16>
    %c0_2 = arith.constant 0 : index
    %c0_3 = arith.constant 0 : index
    %c0_4 = arith.constant 0 : index
    %1 = vector.load %arg2[%c0_2, %c0_3, %c0_4] : memref<8x128x128xbf16, #tpu.memory_space<vmem>>, vector<8x128x128xbf16>
    "tpu.trace_start"() <{level = 10 : i32, message = "bqd,bkd->bqk"}> : () -> ()
    %cst = arith.constant dense<0.000000e+00> : vector<8x8x128xf32>
    %2 = tpu.matmul %0, %1, %cst {dimension_numbers = #tpu.dot_dimension_numbers<[2], [2], [1], [1], [0, 0, 0, 1, 1, 1], [0], [0]>} : vector<8x8x128xbf16>, vector<8x128x128xbf16>, vector<8x8x128xf32> -> vector<8x8x128xf32>
    "tpu.trace_stop"() : () -> ()
    %cst_5 = arith.constant 0.204124153 : f32
    %3 = vector.broadcast %cst_5 : f32 to vector<8x8x128xf32>
    %4 = arith.mulf %2, %3 : vector<8x8x128xf32>
    %5 = tpu.iota {dimensions = array<i32: 2>} : vector<8x8x128xi32>
    %c8_i32 = arith.constant 8 : i32
    %6 = vector.broadcast %c8_i32 : i32 to vector<8x8x128xi32>
    %7 = arith.cmpi slt, %5, %6 : vector<8x8x128xi32>
    %cst_6 = arith.constant -1.000000e+30 : f32
    %8 = vector.broadcast %cst_6 : f32 to vector<8x8x128xf32>
    %9 = arith.select %7, %4, %8 : vector<8x8x128xi1>, vector<8x8x128xf32>
    %cst_7 = arith.constant dense<0xFF800000> : vector<8x8xf32>
    %10 = vector.multi_reduction <maximumf>, %9, %cst_7 [2] : vector<8x8x128xf32> to vector<8x8xf32>
    %11 = vector.shape_cast %10 : vector<8x8xf32> to vector<8x8x1xf32>
    %12 = vector.broadcast %11 : vector<8x8x1xf32> to vector<8x8x128xf32>
    %13 = arith.subf %9, %12 : vector<8x8x128xf32>
    %14 = math.exp %13 : vector<8x8x128xf32>
    %cst_8 = arith.constant dense<0.000000e+00> : vector<8x8xf32>
    %15 = vector.multi_reduction <add>, %14, %cst_8 [2] : vector<8x8x128xf32> to vector<8x8xf32>
    %16 = vector.shape_cast %15 : vector<8x8xf32> to vector<8x8x1xf32>
    %17 = vector.broadcast %16 : vector<8x8x1xf32> to vector<8x8x128xf32>
    %18 = arith.divf %14, %17 : vector<8x8x128xf32>
    %19 = arith.truncf %18 : vector<8x8x128xf32> to vector<8x8x128xbf16>
    %c0_9 = arith.constant 0 : index
    %c0_10 = arith.constant 0 : index
    %c0_11 = arith.constant 0 : index
    %20 = vector.load %arg3[%c0_9, %c0_10, %c0_11] : memref<8x128x128xbf16, #tpu.memory_space<vmem>>, vector<8x128x128xbf16>
    "tpu.trace_start"() <{level = 10 : i32, message = "bqk,bkd->bqd"}> : () -> ()
    %cst_12 = arith.constant dense<0.000000e+00> : vector<8x8x128xf32>
    %21 = tpu.matmul %19, %20, %cst_12 {dimension_numbers = #tpu.dot_dimension_numbers<[2], [1], [1], [2], [0, 0, 0, 1, 1, 2], [0], [0]>} : vector<8x8x128xbf16>, vector<8x128x128xbf16>, vector<8x8x128xf32> -> vector<8x8x128xf32>
    "tpu.trace_stop"() : () -> ()
    %c0_13 = arith.constant 0 : index
    %c0_14 = arith.constant 0 : index
    %c0_15 = arith.constant 0 : index
    %22 = vector.load %arg4[%c0_13, %c0_14, %c0_15] : memref<8x8x128xf32, #tpu.memory_space<vmem>>, vector<8x8x128xf32>
    tpu.vector_store %arg4[%c0_13, %c0_14, %c0_15], %21 {strides = array<i32>} : memref<8x8x128xf32, #tpu.memory_space<vmem>>, vector<8x8x128xf32>,
    return
  }
  func.func @transform_0(%arg0: i32) -> (i32, i32, i32) {
    %c0_i32 = arith.constant 0 : i32
    %c0_i32_0 = arith.constant 0 : i32
    %c0_i32_1 = arith.constant 0 : i32
    %c0_i32_2 = arith.constant 0 : i32
    return %c0_i32, %c0_i32_0, %c0_i32_1 : i32, i32, i32
  }
  func.func @transform_1(%arg0: i32) -> (i32, i32, i32) {
    %c0_i32 = arith.constant 0 : i32
    %c0_i32_0 = arith.constant 0 : i32
    %c0_i32_1 = arith.constant 0 : i32
    %c0_i32_2 = arith.constant 0 : i32
    return %c0_i32, %c0_i32_0, %c0_i32_1 : i32, i32, i32
  }
  func.func @transform_2(%arg0: i32) -> (i32, i32, i32) {
    %c0_i32 = arith.constant 0 : i32
    %c0_i32_0 = arith.constant 0 : i32
    %c0_i32_1 = arith.constant 0 : i32
    %c0_i32_2 = arith.constant 0 : i32
    return %c0_i32, %c0_i32_0, %c0_i32_1 : i32, i32, i32
  }
  func.func @transform_3(%arg0: i32) -> (i32, i32, i32) {
    %c0_i32 = arith.constant 0 : i32
    %c0_i32_0 = arith.constant 0 : i32
    %c0_i32_1 = arith.constant 0 : i32
    %c0_i32_2 = arith.constant 0 : i32
    return %c0_i32, %c0_i32_0, %c0_i32_1 : i32, i32, i32
  }
}

module attributes {stable_mosaic.version = 11 : i64} {
  func.func @_matmul_bias_kernel(%arg0: i32, %arg1: i32, %arg2: memref<16x128xbf16, #tpu.memory_space<vmem>>, %arg3: memref<128x128xbf16, #tpu.memory_space<vmem>>, %arg4: memref<1x128xf32, #tpu.memory_space<vmem>>, %arg5: memref<16x128xf32, #tpu.memory_space<vmem>>) attributes {dimension_semantics = [#tpu.dimension_semantics<parallel>, #tpu.dimension_semantics<parallel>], iteration_bounds = array<i64: 1, 1>, scalar_prefetch = 0 : i64, scratch_operands = 0 : i64, tpu.core_type = #tpu.core_type<tc>, window_params = [{transform_indices = @transform_0, window_bounds = array<i64: 16, 128>}, {transform_indices = @transform_1, window_bounds = array<i64: 128, 128>}, {transform_indices = @transform_2, window_bounds = array<i64: 1, 128>}, {transform_indices = @transform_3, window_bounds = array<i64: 16, 128>}]} {
    %c0 = arith.constant 0 : index
    %c0_0 = arith.constant 0 : index
    %0 = vector.load %arg2[%c0, %c0_0] : memref<16x128xbf16, #tpu.memory_space<vmem>>, vector<16x128xbf16>
    %c0_1 = arith.constant 0 : index
    %c0_2 = arith.constant 0 : index
    %1 = vector.load %arg3[%c0_1, %c0_2] : memref<128x128xbf16, #tpu.memory_space<vmem>>, vector<128x128xbf16>
    %cst = arith.constant dense<0.000000e+00> : vector<16x128xf32>
    %2 = tpu.matmul %0, %1, %cst {dimension_numbers = #tpu.dot_dimension_numbers<[1], [0], [0], [1], [0, 0, 1, 1], [], []>} : vector<16x128xbf16>, vector<128x128xbf16>, vector<16x128xf32> -> vector<16x128xf32>
    %c0_3 = arith.constant 0 : index
    %c0_4 = arith.constant 0 : index
    %3 = vector.load %arg4[%c0_3, %c0_4] : memref<1x128xf32, #tpu.memory_space<vmem>>, vector<1x128xf32>
    %4 = vector.broadcast %3 : vector<1x128xf32> to vector<16x128xf32>
    %5 = arith.addf %2, %4 : vector<16x128xf32>
    %c0_5 = arith.constant 0 : index
    %c0_6 = arith.constant 0 : index
    %6 = vector.load %arg5[%c0_5, %c0_6] : memref<16x128xf32, #tpu.memory_space<vmem>>, vector<16x128xf32>
    tpu.vector_store %arg5[%c0_5, %c0_6], %5 {strides = array<i32>} : memref<16x128xf32, #tpu.memory_space<vmem>>, vector<16x128xf32>,
    return
  }
  func.func @transform_0(%arg0: i32, %arg1: i32) -> (i32, i32) {
    %c0_i32 = arith.constant 0 : i32
    %c0_i32_0 = arith.constant 0 : i32
    return %arg0, %c0_i32 : i32, i32
  }
  func.func @transform_1(%arg0: i32, %arg1: i32) -> (i32, i32) {
    %c0_i32 = arith.constant 0 : i32
    %c0_i32_0 = arith.constant 0 : i32
    return %c0_i32, %arg1 : i32, i32
  }
  func.func @transform_2(%arg0: i32, %arg1: i32) -> (i32, i32) {
    %c0_i32 = arith.constant 0 : i32
    %c0_i32_0 = arith.constant 0 : i32
    return %c0_i32, %arg1 : i32, i32
  }
  func.func @transform_3(%arg0: i32, %arg1: i32) -> (i32, i32) {
    %c0_i32 = arith.constant 0 : i32
    return %arg0, %arg1 : i32, i32
  }
}

module attributes {stable_mosaic.version = 11 : i64} {
  func.func @_mlp2_kernel(%arg0: i32, %arg1: memref<16x128xbf16, #tpu.memory_space<vmem>>, %arg2: memref<128x128xbf16, #tpu.memory_space<vmem>>, %arg3: memref<1x128xf32, #tpu.memory_space<vmem>>, %arg4: memref<128x128xbf16, #tpu.memory_space<vmem>>, %arg5: memref<1x128xf32, #tpu.memory_space<vmem>>, %arg6: memref<16x128xf32, #tpu.memory_space<vmem>>) attributes {dimension_semantics = [#tpu.dimension_semantics<parallel>], iteration_bounds = array<i64: 1>, scalar_prefetch = 0 : i64, scratch_operands = 0 : i64, tpu.core_type = #tpu.core_type<tc>, window_params = [{transform_indices = @transform_0, window_bounds = array<i64: 16, 128>}, {pipeline_mode = #tpu.pipeline_mode<synchronous>, transform_indices = @transform_1, window_bounds = array<i64: 128, 128>}, {pipeline_mode = #tpu.pipeline_mode<synchronous>, transform_indices = @transform_2, window_bounds = array<i64: 1, 128>}, {pipeline_mode = #tpu.pipeline_mode<synchronous>, transform_indices = @transform_3, window_bounds = array<i64: 128, 128>}, {pipeline_mode = #tpu.pipeline_mode<synchronous>, transform_indices = @transform_4, window_bounds = array<i64: 1, 128>}, {transform_indices = @transform_5, window_bounds = array<i64: 16, 128>}]} {
    %c0 = arith.constant 0 : index
    %c0_0 = arith.constant 0 : index
    %0 = vector.load %arg1[%c0, %c0_0] : memref<16x128xbf16, #tpu.memory_space<vmem>>, vector<16x128xbf16>
    %c0_1 = arith.constant 0 : index
    %c0_2 = arith.constant 0 : index
    %1 = vector.load %arg2[%c0_1, %c0_2] : memref<128x128xbf16, #tpu.memory_space<vmem>>, vector<128x128xbf16>
    %cst = arith.constant dense<0.000000e+00> : vector<16x128xf32>
    %2 = tpu.matmul %0, %1, %cst {dimension_numbers = #tpu.dot_dimension_numbers<[1], [0], [0], [1], [0, 0, 1, 1], [], []>} : vector<16x128xbf16>, vector<128x128xbf16>, vector<16x128xf32> -> vector<16x128xf32>
    %c0_3 = arith.constant 0 : index
    %c0_4 = arith.constant 0 : index
    %3 = vector.load %arg3[%c0_3, %c0_4] : memref<1x128xf32, #tpu.memory_space<vmem>>, vector<1x128xf32>
    %4 = vector.broadcast %3 : vector<1x128xf32> to vector<16x128xf32>
    %5 = arith.addf %2, %4 : vector<16x128xf32>
    %cst_5 = arith.constant 0.000000e+00 : f32
    %6 = vector.broadcast %cst_5 : f32 to vector<16x128xf32>
    %7 = arith.maximumf %5, %6 : vector<16x128xf32>
    %8 = arith.truncf %7 : vector<16x128xf32> to vector<16x128xbf16>
    %c0_6 = arith.constant 0 : index
    %c0_7 = arith.constant 0 : index
    %9 = vector.load %arg4[%c0_6, %c0_7] : memref<128x128xbf16, #tpu.memory_space<vmem>>, vector<128x128xbf16>
    %cst_8 = arith.constant dense<0.000000e+00> : vector<16x128xf32>
    %10 = tpu.matmul %8, %9, %cst_8 {dimension_numbers = #tpu.dot_dimension_numbers<[1], [0], [0], [1], [0, 0, 1, 1], [], []>} : vector<16x128xbf16>, vector<128x128xbf16>, vector<16x128xf32> -> vector<16x128xf32>
    %c0_9 = arith.constant 0 : index
    %c0_10 = arith.constant 0 : index
    %11 = vector.load %arg5[%c0_9, %c0_10] : memref<1x128xf32, #tpu.memory_space<vmem>>, vector<1x128xf32>
    %12 = vector.broadcast %11 : vector<1x128xf32> to vector<16x128xf32>
    %13 = arith.addf %10, %12 : vector<16x128xf32>
    %c0_11 = arith.constant 0 : index
    %c0_12 = arith.constant 0 : index
    %14 = vector.load %arg6[%c0_11, %c0_12] : memref<16x128xf32, #tpu.memory_space<vmem>>, vector<16x128xf32>
    tpu.vector_store %arg6[%c0_11, %c0_12], %13 {strides = array<i32>} : memref<16x128xf32, #tpu.memory_space<vmem>>, vector<16x128xf32>,
    return
  }
  func.func @transform_0(%arg0: i32) -> (i32, i32) {
    %c0_i32 = arith.constant 0 : i32
    %c0_i32_0 = arith.constant 0 : i32
    return %arg0, %c0_i32 : i32, i32
  }
  func.func @transform_1(%arg0: i32) -> (i32, i32) {
    %c0_i32 = arith.constant 0 : i32
    %c0_i32_0 = arith.constant 0 : i32
    %c0_i32_1 = arith.constant 0 : i32
    return %c0_i32, %c0_i32_0 : i32, i32
  }
  func.func @transform_2(%arg0: i32) -> (i32, i32) {
    %c0_i32 = arith.constant 0 : i32
    %c0_i32_0 = arith.constant 0 : i32
    %c0_i32_1 = arith.constant 0 : i32
    return %c0_i32, %c0_i32_0 : i32, i32
  }
  func.func @transform_3(%arg0: i32) -> (i32, i32) {
    %c0_i32 = arith.constant 0 : i32
    %c0_i32_0 = arith.constant 0 : i32
    %c0_i32_1 = arith.constant 0 : i32
    return %c0_i32, %c0_i32_0 : i32, i32
  }
  func.func @transform_4(%arg0: i32) -> (i32, i32) {
    %c0_i32 = arith.constant 0 : i32
    %c0_i32_0 = arith.constant 0 : i32
    %c0_i32_1 = arith.constant 0 : i32
    return %c0_i32, %c0_i32_0 : i32, i32
  }
  func.func @transform_5(%arg0: i32) -> (i32, i32) {
    %c0_i32 = arith.constant 0 : i32
    %c0_i32_0 = arith.constant 0 : i32
    return %arg0, %c0_i32 : i32, i32
  }
}

module attributes {stable_mosaic.version = 11 : i64} {
  func.func @_mlp2_kernel(%arg0: i32, %arg1: memref<8x128xbf16, #tpu.memory_space<vmem>>, %arg2: memref<128x128xbf16, #tpu.memory_space<vmem>>, %arg3: memref<1x128xf32, #tpu.memory_space<vmem>>, %arg4: memref<128x128xbf16, #tpu.memory_space<vmem>>, %arg5: memref<1x128xf32, #tpu.memory_space<vmem>>, %arg6: memref<8x128xf32, #tpu.memory_space<vmem>>) attributes {dimension_semantics = [#tpu.dimension_semantics<parallel>], iteration_bounds = array<i64: 1>, scalar_prefetch = 0 : i64, scratch_operands = 0 : i64, tpu.core_type = #tpu.core_type<tc>, window_params = [{transform_indices = @transform_0, window_bounds = array<i64: 8, 128>}, {pipeline_mode = #tpu.pipeline_mode<synchronous>, transform_indices = @transform_1, window_bounds = array<i64: 128, 128>}, {pipeline_mode = #tpu.pipeline_mode<synchronous>, transform_indices = @transform_2, window_bounds = array<i64: 1, 128>}, {pipeline_mode = #tpu.pipeline_mode<synchronous>, transform_indices = @transform_3, window_bounds = array<i64: 128, 128>}, {pipeline_mode = #tpu.pipeline_mode<synchronous>, transform_indices = @transform_4, window_bounds = array<i64: 1, 128>}, {transform_indices = @transform_5, window_bounds = array<i64: 8, 128>}]} {
    %c0 = arith.constant 0 : index
    %c0_0 = arith.constant 0 : index
    %0 = vector.load %arg1[%c0, %c0_0] : memref<8x128xbf16, #tpu.memory_space<vmem>>, vector<8x128xbf16>
    %c0_1 = arith.constant 0 : index
    %c0_2 = arith.constant 0 : index
    %1 = vector.load %arg2[%c0_1, %c0_2] : memref<128x128xbf16, #tpu.memory_space<vmem>>, vector<128x128xbf16>
    %cst = arith.constant dense<0.000000e+00> : vector<8x128xf32>
    %2 = tpu.matmul %0, %1, %cst {dimension_numbers = #tpu.dot_dimension_numbers<[1], [0], [0], [1], [0, 0, 1, 1], [], []>} : vector<8x128xbf16>, vector<128x128xbf16>, vector<8x128xf32> -> vector<8x128xf32>
    %c0_3 = arith.constant 0 : index
    %c0_4 = arith.constant 0 : index
    %3 = vector.load %arg3[%c0_3, %c0_4] : memref<1x128xf32, #tpu.memory_space<vmem>>, vector<1x128xf32>
    %4 = vector.broadcast %3 : vector<1x128xf32> to vector<8x128xf32>
    %5 = arith.addf %2, %4 : vector<8x128xf32>
    %cst_5 = arith.constant 0.000000e+00 : f32
    %6 = vector.broadcast %cst_5 : f32 to vector<8x128xf32>
    %7 = arith.maximumf %5, %6 : vector<8x128xf32>
    %8 = arith.truncf %7 : vector<8x128xf32> to vector<8x128xbf16>
    %c0_6 = arith.constant 0 : index
    %c0_7 = arith.constant 0 : index
    %9 = vector.load %arg4[%c0_6, %c0_7] : memref<128x128xbf16, #tpu.memory_space<vmem>>, vector<128x128xbf16>
    %cst_8 = arith.constant dense<0.000000e+00> : vector<8x128xf32>
    %10 = tpu.matmul %8, %9, %cst_8 {dimension_numbers = #tpu.dot_dimension_numbers<[1], [0], [0], [1], [0, 0, 1, 1], [], []>} : vector<8x128xbf16>, vector<128x128xbf16>, vector<8x128xf32> -> vector<8x128xf32>
    %c0_9 = arith.constant 0 : index
    %c0_10 = arith.constant 0 : index
    %11 = vector.load %arg5[%c0_9, %c0_10] : memref<1x128xf32, #tpu.memory_space<vmem>>, vector<1x128xf32>
    %12 = vector.broadcast %11 : vector<1x128xf32> to vector<8x128xf32>
    %13 = arith.addf %10, %12 : vector<8x128xf32>
    %c0_11 = arith.constant 0 : index
    %c0_12 = arith.constant 0 : index
    %14 = vector.load %arg6[%c0_11, %c0_12] : memref<8x128xf32, #tpu.memory_space<vmem>>, vector<8x128xf32>
    tpu.vector_store %arg6[%c0_11, %c0_12], %13 {strides = array<i32>} : memref<8x128xf32, #tpu.memory_space<vmem>>, vector<8x128xf32>,
    return
  }
  func.func @transform_0(%arg0: i32) -> (i32, i32) {
    %c0_i32 = arith.constant 0 : i32
    %c0_i32_0 = arith.constant 0 : i32
    return %arg0, %c0_i32 : i32, i32
  }
  func.func @transform_1(%arg0: i32) -> (i32, i32) {
    %c0_i32 = arith.constant 0 : i32
    %c0_i32_0 = arith.constant 0 : i32
    %c0_i32_1 = arith.constant 0 : i32
    return %c0_i32, %c0_i32_0 : i32, i32
  }
  func.func @transform_2(%arg0: i32) -> (i32, i32) {
    %c0_i32 = arith.constant 0 : i32
    %c0_i32_0 = arith.constant 0 : i32
    %c0_i32_1 = arith.constant 0 : i32
    return %c0_i32, %c0_i32_0 : i32, i32
  }
  func.func @transform_3(%arg0: i32) -> (i32, i32) {
    %c0_i32 = arith.constant 0 : i32
    %c0_i32_0 = arith.constant 0 : i32
    %c0_i32_1 = arith.constant 0 : i32
    return %c0_i32, %c0_i32_0 : i32, i32
  }
  func.func @transform_4(%arg0: i32) -> (i32, i32) {
    %c0_i32 = arith.constant 0 : i32
    %c0_i32_0 = arith.constant 0 : i32
    %c0_i32_1 = arith.constant 0 : i32
    return %c0_i32, %c0_i32_0 : i32, i32
  }
  func.func @transform_5(%arg0: i32) -> (i32, i32) {
    %c0_i32 = arith.constant 0 : i32
    %c0_i32_0 = arith.constant 0 : i32
    return %arg0, %c0_i32 : i32, i32
  }
}

</mosaic_0001>

<bundles_post_ra>
// kernel: transformer_forward.18
= control target key start
LH: loop header
LB: loop body
LE: loop exit
PB: predicated region body
PF: predicated region fallthrough
CT: control target
= control target key end

     0   :  { %s970_s12 = smov 0   ;;  %s972_s13 = smov 0   ;;  %s1120_s0 = inlined_call_operand.vmem [shape: bf16[1024,128], index: 0, kind: input, shape index: {}]   ;;  %s1121_s1 = inlined_call_operand.vmem [shape: bf16[128,128], index: 1, kind: input, shape index: {}]   ;;  %s1122_s2 = inlined_call_operand.vmem [shape: f32[1,128], index: 2, kind: input, shape index: {}]   ;;  %s1123_s3 = inlined_call_operand.vmem [shape: f32[1024,128], index: 3, kind: output, shape index: {}]  }
   0x1   :  { %s974_s14 = smov 0  }
   0x2 LB: > { %s25_s15 = sadd.s32 1, %s944_s13  ;;  %p758_p0 = scmp.ge.s32.totalorder %s948_s14, 1  ;;  %s948_s14 = sphi %s974_s14, %s13_s14   ;;  %s944_s13 = sphi %s972_s13, %s1125_s13   ;;  %s940_s12 = sphi %s970_s12, %s1124_s12  }
   0x3   : > { %p27_p1 = scmp.ge.s32.totalorder %s25_s15, 4  ;;  %p169_p2 = scmp.lt.s32.totalorder %s948_s14, 5 }
   0x5   : > { %s1127_s15 = smov (%p27_p1, %s25_s15), 0  ;;  %p170_p3 = pnand %p758_p0, %p169_p2 }
   0x6   : > { %v902_v0 = vld [vmem:[%s1121_s1] sm:$0xff] (!%p170_p3)   ;;  %s759_s18 = sshll.u32 (!%p170_p3), %s940_s12, 5  ;;  %v903_v1 = vld [vmem:[%s1121_s1 + $0x8] sm:$0xff] (!%p170_p3)   ;;  %v904_v2 = vld [vmem:[%s1121_s1 + $0x10] sm:$0xff] (!%p170_p3)  }
   0x7   : > { %173 = sbr.rel (%p170_p3) target bundleno = 283 (0x11b), region = 32  ;;  %p204_p4 = scmp.lt.s32.totalorder (!%p170_p3), %s759_s18, 127  ;;  %814 = vmatprep.subr.bf16.mxu0 (!%p170_p3), %v902_v0  ;;  %862 = vmatprep.subr.bf16.mxu1 (!%p170_p3), %v902_v0  ;;  %v905_v3 = vld [vmem:[%s1121_s1 + $0x18] sm:$0xff] (!%p170_p3)   ;;  %v906_v6 = vld [vmem:[%s1121_s1 + $0x20] sm:$0xff] (!%p170_p3)   ;;  %v907_v7 = vld [vmem:[%s1121_s1 + $0x28] sm:$0xff] (!%p170_p3)  }
   0x8   : > { %815 = vmatpush3.bf16.msra.mxu0 (!%p170_p3), %v902_v0  ;;  %870 = vmatpush3.bf16.msra.mxu1 (!%p170_p3), %v902_v0  ;;  %v908_v8 = vld [vmem:[%s1121_s1 + $0x30] sm:$0xff] (!%p170_p3)   ;;  %v909_v9 = vld [vmem:[%s1121_s1 + $0x38] sm:$0xff] (!%p170_p3)   ;;  %v1039_v24 = vld [vmem:[%s1122_s2] ss:$0 sm:$0xff] (!%p170_p3) }
   0x9   : > { %816 = vmatprep.subr.bf16.mxu0 (!%p170_p3), %v903_v1  ;;  %863 = vmatprep.subr.bf16.mxu1 (!%p170_p3), %v903_v1 }
   0xc   : > { %817 = vmatpush3.bf16.msra.mxu0 (!%p170_p3), %v903_v1  ;;  %871 = vmatpush3.bf16.msra.mxu1 (!%p170_p3), %v903_v1 }
   0xd   : > { %818 = vmatprep.subr.bf16.mxu0 (!%p170_p3), %v904_v2  ;;  %864 = vmatprep.subr.bf16.mxu1 (!%p170_p3), %v904_v2 }
   0xe   : > { %s1129_s18 = smov (!%p204_p4, %s759_s18), 127 }
   0xf   : > { %s760_s23 = sshll.u32 %s1129_s18, 2  ;;  %s762_s12 = sshll.u32 %s1129_s18, 3 }
  0x10   : > { %s1003_s26 = scalar_lea.vmem %s1120_s0, %s760_s23  ;;  %819 = vmatpush3.bf16.msra.mxu0 %v904_v2  ;;  %872 = vmatpush3.bf16.msra.mxu1 %v904_v2  ;;  %s1047_s19 = scalar_lea.vmem %s1123_s3, %s762_s12 }
  0x11   : > { %v910_v4 = vld [vmem:[%s1003_s26] sm:$0xff]   ;;  %820 = vmatprep.subr.bf16.mxu0 %v905_v3  ;;  %865 = vmatprep.subr.bf16.mxu1 %v905_v3  ;;  %v912_v10 = vld [vmem:[%s1003_s26 + $0x8] sm:$0xff]   ;;  %v914_v12 = vld [vmem:[%s1003_s26 + $0x10] sm:$0xff]  }
  0x12   : > { %v911_v5 = vld [vmem:[%s1003_s26 + $0x40] sm:$0xff]   ;;  %830 = vmatprep.mubr.bf16.mxu0 %v910_v4  ;;  %v913_v11 = vld [vmem:[%s1003_s26 + $0x48] sm:$0xff]   ;;  %v915_v13 = vld [vmem:[%s1003_s26 + $0x50] sm:$0xff]  }
  0x13   : > { %846 = vmatprep.mubr.bf16.mxu1 %v911_v5  ;;  %v916_v14 = vld [vmem:[%s1003_s26 + $0x18] sm:$0xff]   ;;  %v918_v16 = vld [vmem:[%s1003_s26 + $0x20] sm:$0xff]   ;;  %v920_v18 = vld [vmem:[%s1003_s26 + $0x28] sm:$0xff]  }
  0x14   : > { %821 = vmatpush3.bf16.msra.mxu0 %v905_v3  ;;  %873 = vmatpush3.bf16.msra.mxu1 %v905_v3  ;;  %v917_v15 = vld [vmem:[%s1003_s26 + $0x58] sm:$0xff]   ;;  %v919_v17 = vld [vmem:[%s1003_s26 + $0x60] sm:$0xff]   ;;  %v921_v19 = vld [vmem:[%s1003_s26 + $0x68] sm:$0xff]  }
  0x15   : > { %822 = vmatprep.subr.bf16.mxu0 %v906_v6  ;;  %866 = vmatprep.subr.bf16.mxu1 %v906_v6  ;;  %v922_v20 = vld [vmem:[%s1003_s26 + $0x30] sm:$0xff]   ;;  %v924_v22 = vld [vmem:[%s1003_s26 + $0x38] sm:$0xff]  }
  0x16   : > { %v923_v21 = vld [vmem:[%s1003_s26 + $0x70] sm:$0xff]   ;;  %v925_v23 = vld [vmem:[%s1003_s26 + $0x78] sm:$0xff]  }
  0x18   : > { %823 = vmatpush3.bf16.msra.mxu0 %v906_v6  ;;  %874 = vmatpush3.bf16.msra.mxu1 %v906_v6 }
  0x19   : > { %824 = vmatprep.subr.bf16.mxu0 %v907_v7  ;;  %867 = vmatprep.subr.bf16.mxu1 %v907_v7 }
  0x1c   : > { %825 = vmatpush3.bf16.msra.mxu0 %v907_v7  ;;  %875 = vmatpush3.bf16.msra.mxu1 %v907_v7 }
  0x1d   : > { %826 = vmatprep.subr.bf16.mxu0 %v908_v8  ;;  %868 = vmatprep.subr.bf16.mxu1 %v908_v8 }
  0x20   : > { %827 = vmatpush3.bf16.msra.mxu0 %v908_v8  ;;  %876 = vmatpush3.bf16.msra.mxu1 %v908_v8 }
  0x21   : > { %828 = vmatprep.subr.bf16.mxu0 %v909_v9  ;;  %869 = vmatprep.subr.bf16.mxu1 %v909_v9 }
  0x24   : > { %829 = vmatpush3.bf16.msra.mxu0 %v909_v9  ;;  %877 = vmatpush3.bf16.msra.mxu1 %v909_v9 }
  0x27   : > { %831 = vmatmul.mubr.bf16.vlgmr.msra.gmra.mrb[0].mxu0 %v912_v10  ;;  %847 = vmatmul.mubr.bf16.vlgmr.msra.gmra.mrb[0].mxu1 %v913_v11 }
  0x28   : > { %834 = vmatprep.mubr.bf16.mxu0 %v914_v12  ;;  %850 = vmatprep.mubr.bf16.mxu1 %v915_v13 }
  0x2f   : > { %835 = vmatmul.mubr.bf16.gmra.mrb[4].mxu0 %v916_v14  ;;  %851 = vmatmul.mubr.bf16.gmra.mrb[4].mxu1 %v917_v15 }
  0x30   : > { %838 = vmatprep.mubr.bf16.mxu0 %v918_v16  ;;  %854 = vmatprep.mubr.bf16.mxu1 %v919_v17 }
  0x37   : > { %839 = vmatmul.mubr.bf16.gmra.mrb[8].mxu0 %v920_v18  ;;  %855 = vmatmul.mubr.bf16.gmra.mrb[8].mxu1 %v921_v19 }
  0x38   : > { %842 = vmatprep.mubr.bf16.mxu0 %v922_v20  ;;  %858 = vmatprep.mubr.bf16.mxu1 %v923_v21 }
  0x3f   : > { %843 = vmatmul.mubr.bf16.gmra.mrb[12].mxu0 %v924_v22  ;;  %859 = vmatmul.mubr.bf16.gmra.mrb[12].mxu1 %v925_v23 }
  0xfa   : > { %v832_v25 = vpop.f32.mrb[0].mxu0  ;;  %v848_v26 = vpop.f32.mrb[0].mxu1 }
  0xfb   : > { %v468_v27 = vadd.f32 %v832_v25, %v1039_v24  ;;  %v532_v28 = vadd.f32 %v848_v26, %v1039_v24  ;;  %v459_v29 = vpop.f32.mrb[1].mxu0  ;;  %v523_v30 = vpop.f32.mrb[1].mxu1 }
  0xfc   : > { %v460_v31 = vadd.f32 %v1039_v24, %v459_v29  ;;  %v524_v32 = vadd.f32 %v1039_v24, %v523_v30  ;;  %v833_v33 = vpop.f32.mrb[2].mxu0  ;;  %v849_v34 = vpop.f32.mrb[2].mxu1 }
  0xfd   : > { %v588_v35 = vmax.f32 %v468_v27, 0.0  ;;  %v604_v36 = vmax.f32 %v532_v28, 0.0  ;;  %v471_v37 = vadd.f32 %v833_v33, %v1039_v24  ;;  %v535_v38 = vadd.f32 %v849_v34, %v1039_v24  ;;  %v462_v39 = vpop.f32.mrb[3].mxu0  ;;  %v526_v40 = vpop.f32.mrb[3].mxu1 }
  0xfe   : > { %v586_v41 = vmax.f32 %v460_v31, 0.0  ;;  %v602_v42 = vmax.f32 %v524_v32, 0.0  ;;  %v463_v43 = vadd.f32 %v1039_v24, %v462_v39  ;;  %v527_v44 = vadd.f32 %v1039_v24, %v526_v40 }
  0xff   : > { %620 = vst [vmem:[%s1047_s19 + $0x10] sm:$0xff] %v588_v35  ;;  %636 = vst [vmem:[%s1047_s19 + $0x90] sm:$0xff] %v604_v36  ;;  %v589_v45 = vmax.f32 %v471_v37, 0.0  ;;  %v605_v46 = vmax.f32 %v535_v38, 0.0 }
 0x100   : > { %618 = vst [vmem:[%s1047_s19] sm:$0xff] %v586_v41  ;;  %634 = vst [vmem:[%s1047_s19 + $0x80] sm:$0xff] %v602_v42  ;;  %v587_v47 = vmax.f32 %v463_v43, 0.0  ;;  %v603_v48 = vmax.f32 %v527_v44, 0.0 }
 0x101   : > { %621 = vst [vmem:[%s1047_s19 + $0x18] sm:$0xff] %v589_v45  ;;  %637 = vst [vmem:[%s1047_s19 + $0x98] sm:$0xff] %v605_v46 }
 0x102   : > { %619 = vst [vmem:[%s1047_s19 + $0x8] sm:$0xff] %v587_v47  ;;  %635 = vst [vmem:[%s1047_s19 + $0x88] sm:$0xff] %v603_v48  ;;  %v836_v49 = vpop.f32.mrb[4].mxu0  ;;  %v852_v50 = vpop.f32.mrb[4].mxu1 }
 0x103   : > { %v484_v51 = vadd.f32 %v836_v49, %v1039_v24  ;;  %v548_v52 = vadd.f32 %v852_v50, %v1039_v24  ;;  %v475_v53 = vpop.f32.mrb[5].mxu0  ;;  %v539_v54 = vpop.f32.mrb[5].mxu1 }
 0x104   : > { %v476_v55 = vadd.f32 %v1039_v24, %v475_v53  ;;  %v540_v56 = vadd.f32 %v1039_v24, %v539_v54  ;;  %v837_v57 = vpop.f32.mrb[6].mxu0  ;;  %v853_v58 = vpop.f32.mrb[6].mxu1 }
 0x105   : > { %v592_v59 = vmax.f32 %v484_v51, 0.0  ;;  %v608_v60 = vmax.f32 %v548_v52, 0.0  ;;  %v487_v61 = vadd.f32 %v837_v57, %v1039_v24  ;;  %v551_v62 = vadd.f32 %v853_v58, %v1039_v24  ;;  %v478_v63 = vpop.f32.mrb[7].mxu0  ;;  %v542_v0 = vpop.f32.mrb[7].mxu1 }
 0x106   : > { %v590_v1 = vmax.f32 %v476_v55, 0.0  ;;  %v606_v2 = vmax.f32 %v540_v56, 0.0  ;;  %v479_v3 = vadd.f32 %v1039_v24, %v478_v63  ;;  %v543_v4 = vadd.f32 %v1039_v24, %v542_v0 }
 0x107   : > { %624 = vst [vmem:[%s1047_s19 + $0x30] sm:$0xff] %v592_v59  ;;  %640 = vst [vmem:[%s1047_s19 + $0xb0] sm:$0xff] %v608_v60  ;;  %v593_v5 = vmax.f32 %v487_v61, 0.0  ;;  %v609_v6 = vmax.f32 %v551_v62, 0.0 }
 0x108   : > { %622 = vst [vmem:[%s1047_s19 + $0x20] sm:$0xff] %v590_v1  ;;  %638 = vst [vmem:[%s1047_s19 + $0xa0] sm:$0xff] %v606_v2  ;;  %v591_v7 = vmax.f32 %v479_v3, 0.0  ;;  %v607_v8 = vmax.f32 %v543_v4, 0.0 }
 0x109   : > { %625 = vst [vmem:[%s1047_s19 + $0x38] sm:$0xff] %v593_v5  ;;  %641 = vst [vmem:[%s1047_s19 + $0xb8] sm:$0xff] %v609_v6 }
 0x10a   : > { %623 = vst [vmem:[%s1047_s19 + $0x28] sm:$0xff] %v591_v7  ;;  %639 = vst [vmem:[%s1047_s19 + $0xa8] sm:$0xff] %v607_v8  ;;  %v840_v9 = vpop.f32.mrb[8].mxu0  ;;  %v856_v10 = vpop.f32.mrb[8].mxu1 }
 0x10b   : > { %v500_v11 = vadd.f32 %v840_v9, %v1039_v24  ;;  %v564_v12 = vadd.f32 %v856_v10, %v1039_v24  ;;  %v491_v13 = vpop.f32.mrb[9].mxu0  ;;  %v555_v14 = vpop.f32.mrb[9].mxu1 }
 0x10c   : > { %v492_v15 = vadd.f32 %v1039_v24, %v491_v13  ;;  %v556_v16 = vadd.f32 %v1039_v24, %v555_v14  ;;  %v841_v17 = vpop.f32.mrb[10].mxu0  ;;  %v857_v18 = vpop.f32.mrb[10].mxu1 }
 0x10d   : > { %v596_v19 = vmax.f32 %v500_v11, 0.0  ;;  %v612_v20 = vmax.f32 %v564_v12, 0.0  ;;  %v503_v21 = vadd.f32 %v841_v17, %v1039_v24  ;;  %v567_v22 = vadd.f32 %v857_v18, %v1039_v24  ;;  %v494_v23 = vpop.f32.mrb[11].mxu0  ;;  %v558_v25 = vpop.f32.mrb[11].mxu1 }
 0x10e   : > { %v594_v26 = vmax.f32 %v492_v15, 0.0  ;;  %v610_v27 = vmax.f32 %v556_v16, 0.0  ;;  %v495_v28 = vadd.f32 %v1039_v24, %v494_v23  ;;  %v559_v29 = vadd.f32 %v1039_v24, %v558_v25 }
 0x10f   : > { %628 = vst [vmem:[%s1047_s19 + $0x50] sm:$0xff] %v596_v19  ;;  %644 = vst [vmem:[%s1047_s19 + $0xd0] sm:$0xff] %v612_v20  ;;  %v597_v30 = vmax.f32 %v503_v21, 0.0  ;;  %v613_v31 = vmax.f32 %v567_v22, 0.0 }
 0x110   : > { %626 = vst [vmem:[%s1047_s19 + $0x40] sm:$0xff] %v594_v26  ;;  %642 = vst [vmem:[%s1047_s19 + $0xc0] sm:$0xff] %v610_v27  ;;  %v595_v32 = vmax.f32 %v495_v28, 0.0  ;;  %v611_v33 = vmax.f32 %v559_v29, 0.0 }
 0x111   : > { %629 = vst [vmem:[%s1047_s19 + $0x58] sm:$0xff] %v597_v30  ;;  %645 = vst [vmem:[%s1047_s19 + $0xd8] sm:$0xff] %v613_v31 }
 0x112   : > { %627 = vst [vmem:[%s1047_s19 + $0x48] sm:$0xff] %v595_v32  ;;  %643 = vst [vmem:[%s1047_s19 + $0xc8] sm:$0xff] %v611_v33  ;;  %v844_v34 = vpop.f32.mrb[12].mxu0  ;;  %v860_v35 = vpop.f32.mrb[12].mxu1 }
 0x113   : > { %v516_v36 = vadd.f32 %v844_v34, %v1039_v24  ;;  %v580_v37 = vadd.f32 %v860_v35, %v1039_v24  ;;  %v507_v38 = vpop.f32.mrb[13].mxu0  ;;  %v571_v39 = vpop.f32.mrb[13].mxu1 }
 0x114   : > { %v508_v40 = vadd.f32 %v1039_v24, %v507_v38  ;;  %v572_v41 = vadd.f32 %v1039_v24, %v571_v39  ;;  %v845_v42 = vpop.f32.mrb[14].mxu0  ;;  %v861_v43 = vpop.f32.mrb[14].mxu1 }
 0x115   : > { %v600_v44 = vmax.f32 %v516_v36, 0.0  ;;  %v616_v45 = vmax.f32 %v580_v37, 0.0  ;;  %v519_v46 = vadd.f32 %v845_v42, %v1039_v24  ;;  %v583_v47 = vadd.f32 %v861_v43, %v1039_v24  ;;  %v510_v48 = vpop.f32.mrb[15].mxu0  ;;  %v574_v49 = vpop.f32.mrb[15].mxu1 }
 0x116   : > { %v598_v50 = vmax.f32 %v508_v40, 0.0  ;;  %v614_v51 = vmax.f32 %v572_v41, 0.0  ;;  %v511_v52 = vadd.f32 %v1039_v24, %v510_v48  ;;  %v575_v53 = vadd.f32 %v1039_v24, %v574_v49 }
 0x117   : > { %632 = vst [vmem:[%s1047_s19 + $0x70] sm:$0xff] %v600_v44  ;;  %648 = vst [vmem:[%s1047_s19 + $0xf0] sm:$0xff] %v616_v45  ;;  %v601_v54 = vmax.f32 %v519_v46, 0.0  ;;  %v617_v55 = vmax.f32 %v583_v47, 0.0 }
 0x118   : > { %630 = vst [vmem:[%s1047_s19 + $0x60] sm:$0xff] %v598_v50  ;;  %646 = vst [vmem:[%s1047_s19 + $0xe0] sm:$0xff] %v614_v51  ;;  %v599_v56 = vmax.f32 %v511_v52, 0.0  ;;  %v615_v57 = vmax.f32 %v575_v53, 0.0 }
 0x119   : > { %633 = vst [vmem:[%s1047_s19 + $0x78] sm:$0xff] %v601_v54  ;;  %649 = vst [vmem:[%s1047_s19 + $0xf8] sm:$0xff] %v617_v55 }
 0x11a   : > { %631 = vst [vmem:[%s1047_s19 + $0x68] sm:$0xff] %v599_v56  ;;  %647 = vst [vmem:[%s1047_s19 + $0xe8] sm:$0xff] %v615_v57 }
 0x11b PF: > { %s13_s14 = sadd.s32 1, %s948_s14   ;;  %s1124_s12 = smov %s944_s13 }
 0x11c   : > { %p10_p5 = scmp.ge.s32.totalorder %s13_s14, 6   ;;  %s1125_s13 = smov %s1127_s15 }
 0x11e   :  { %12 = sbr.rel (!%p10_p5) target bundleno = 2 (0x2), region = 68 }

// kernel: transformer_forward.19
= control target key start
LH: loop header
LB: loop body
LE: loop exit
PB: predicated region body
PF: predicated region fallthrough
CT: control target
= control target key end

     0   :  { %s2211_s1 = inlined_call_operand.vmem [shape: bf16[896,128], index: 1, kind: input, shape index: {}]   ;;  %s2212_s0 = inlined_call_operand.vmem [shape: bf16[128,896], index: 0, kind: input, shape index: {}]   ;;  %s2213_s2 = inlined_call_operand.vmem [shape: f32[1,128], index: 2, kind: input, shape index: {}]   ;;  %s2214_s3 = inlined_call_operand.vmem [shape: f32[128,128], index: 3, kind: output, shape index: {}]  }
   0x1   :  { %v1599_v0 = vld [vmem:[%s2211_s1 + $0x40] sm:$0xff]   ;;  %v1603_v4 = vld [vmem:[%s2211_s1 + $0x48] sm:$0xff]   ;;  %v1607_v8 = vld [vmem:[%s2211_s1 + $0x50] sm:$0xff]  }
   0x2   :  { %v1600_v1 = vld [vmem:[%s2211_s1] sm:$0xff]   ;;  %1359 = vmatprep.subr.bf16.mxu0 %v1599_v0  ;;  %v1604_v5 = vld [vmem:[%s2211_s1 + $0x8] sm:$0xff]   ;;  %v1608_v9 = vld [vmem:[%s2211_s1 + $0x10] sm:$0xff]  }
   0x3   :  { %v1601_v2 = vld [vmem:[%s2211_s1 + $0xc0] sm:$0xff]   ;;  %1360 = vmatpush3.bf16.msra.mxu0 %v1600_v1  ;;  %v1605_v6 = vld [vmem:[%s2211_s1 + $0xc8] sm:$0xff]   ;;  %v1609_v10 = vld [vmem:[%s2211_s1 + $0xd0] sm:$0xff]  }
   0x4   :  { %v1602_v3 = vld [vmem:[%s2211_s1 + $0x80] sm:$0xff]   ;;  %1423 = vmatprep.subr.bf16.mxu1 %v1601_v2  ;;  %1361 = vmatprep.subr.bf16.mxu0 %v1603_v4  ;;  %v1606_v7 = vld [vmem:[%s2211_s1 + $0x88] sm:$0xff]   ;;  %v1610_v11 = vld [vmem:[%s2211_s1 + $0x90] sm:$0xff]  }
   0x5   :  { %1424 = vmatpush3.bf16.msra.mxu1 %v1602_v3  ;;  %v1611_v12 = vld [vmem:[%s2211_s1 + $0x58] sm:$0xff]   ;;  %v1615_v16 = vld [vmem:[%s2211_s1 + $0x60] sm:$0xff]   ;;  %v1619_v20 = vld [vmem:[%s2211_s1 + $0x68] sm:$0xff]  }
   0x6   :  { %1425 = vmatprep.subr.bf16.mxu1 %v1605_v6  ;;  %v1612_v13 = vld [vmem:[%s2211_s1 + $0x18] sm:$0xff]   ;;  %v1616_v17 = vld [vmem:[%s2211_s1 + $0x20] sm:$0xff]   ;;  %v1620_v21 = vld [vmem:[%s2211_s1 + $0x28] sm:$0xff]  }
   0x7   :  { %1362 = vmatpush3.bf16.msra.mxu0 %v1604_v5  ;;  %v1613_v14 = vld [vmem:[%s2211_s1 + $0xd8] sm:$0xff]   ;;  %v1617_v18 = vld [vmem:[%s2211_s1 + $0xe0] sm:$0xff]   ;;  %v1621_v22 = vld [vmem:[%s2211_s1 + $0xe8] sm:$0xff]  }
   0x8   :  { %1363 = vmatprep.subr.bf16.mxu0 %v1607_v8  ;;  %v1614_v15 = vld [vmem:[%s2211_s1 + $0x98] sm:$0xff]   ;;  %v1618_v19 = vld [vmem:[%s2211_s1 + $0xa0] sm:$0xff]   ;;  %v1622_v23 = vld [vmem:[%s2211_s1 + $0xa8] sm:$0xff]  }
   0x9   :  { %1426 = vmatpush3.bf16.msra.mxu1 %v1606_v7  ;;  %v1623_v24 = vld [vmem:[%s2211_s1 + $0x70] sm:$0xff]   ;;  %v1627_v28 = vld [vmem:[%s2211_s1 + $0x78] sm:$0xff]   ;;  %v1632_v32 = vld [vmem:[%s2212_s0 + $0x4] ss:$28 sps:$4 sm:$0xff]  }
   0xa   :  { %1427 = vmatprep.subr.bf16.mxu1 %v1609_v10  ;;  %v1624_v25 = vld [vmem:[%s2211_s1 + $0x30] sm:$0xff]   ;;  %v1628_v29 = vld [vmem:[%s2211_s1 + $0x38] sm:$0xff]   ;;  %854 = vmatprep.mubr.bf16.mxu0 %v1632_v32  ;;  %v1634_v34 = vld [vmem:[%s2211_s1 + $0x140] sm:$0xff]  }
   0xb   :  { %1364 = vmatpush3.bf16.msra.mxu0 %v1608_v9  ;;  %v1625_v26 = vld [vmem:[%s2211_s1 + $0xf0] sm:$0xff]   ;;  %v1629_v30 = vld [vmem:[%s2211_s1 + $0xf8] sm:$0xff]   ;;  %v1635_v35 = vld [vmem:[%s2212_s0 + $0x8] ss:$28 sps:$4 sm:$0xff]  }
   0xc   :  { %1365 = vmatprep.subr.bf16.mxu0 %v1611_v12  ;;  %v1626_v27 = vld [vmem:[%s2211_s1 + $0xb0] sm:$0xff]   ;;  %v1630_v31 = vld [vmem:[%s2212_s0] ss:$28 sps:$4 sm:$0xff]   ;;  %v1637_v36 = vld [vmem:[%s2212_s0 + $0xc] ss:$28 sps:$4 sm:$0xff]  }
   0xd   :  { %1428 = vmatpush3.bf16.msra.mxu1 %v1610_v11  ;;  %v1633_v33 = vld [vmem:[%s2211_s1 + $0xb8] sm:$0xff]   ;;  %v1638_v37 = vld [vmem:[%s2211_s1 + $0x100] sm:$0xff]   ;;  %951 = vmatprep.mubr.bf16.mxu1 %v1637_v36  ;;  %v1642_v40 = vld [vmem:[%s2211_s1 + $0x148] sm:$0xff]  }
   0xe   :  { %1429 = vmatprep.subr.bf16.mxu1 %v1613_v14  ;;  %v1639_v38 = vld [vmem:[%s2212_s0 + $0x3c] ss:$28 sps:$4 sm:$0xff]   ;;  %v1643_v41 = vld [vmem:[%s2212_s0 + $0x44] ss:$28 sps:$4 sm:$0xff]   ;;  %v1645_v42 = vld [vmem:[%s2211_s1 + $0x108] sm:$0xff]  }
   0xf   :  { %1366 = vmatpush3.bf16.msra.mxu0 %v1612_v13  ;;  %v1641_v39 = vld [vmem:[%s2212_s0 + $0x38] ss:$28 sps:$4 sm:$0xff]   ;;  %v1646_v43 = vld [vmem:[%s2212_s0 + $0x40] ss:$28 sps:$4 sm:$0xff]   ;;  %v1649_v48 = vld [vmem:[%s2212_s0 + $0x70] ss:$28 sps:$4 sm:$0xff]  }
  0x10   :  { %1367 = vmatprep.subr.bf16.mxu0 %v1615_v16  ;;  %v1647_v44 = vld [vmem:[%s2212_s0 + $0x74] ss:$28 sps:$4 sm:$0xff]   ;;  %v1651_v46 = vld [vmem:[%s2212_s0 + $0x7c] ss:$28 sps:$4 sm:$0xff]   ;;  %v1655_v49 = vld [vmem:[%s2212_s0 + $0xac] ss:$28 sps:$4 sm:$0xff]  }
  0x11   :  { %1430 = vmatpush3.bf16.msra.mxu1 %v1614_v15  ;;  %v1650_v45 = vld [vmem:[%s2211_s1 + $0x150] sm:$0xff]   ;;  %v1658_v50 = vld [vmem:[%s2211_s1 + $0x158] sm:$0xff]   ;;  %v1666_v54 = vld [vmem:[%s2211_s1 + $0x160] sm:$0xff]  }
  0x12   :  { %1431 = vmatprep.subr.bf16.mxu1 %v1617_v18  ;;  %v1653_v47 = vld [vmem:[%s2211_s1 + $0x110] sm:$0xff]   ;;  %v1661_v52 = vld [vmem:[%s2211_s1 + $0x118] sm:$0xff]   ;;  %v1657_v55 = vld [vmem:[%s2212_s0 + $0xa8] ss:$28 sps:$4 sm:$0xff]  }
  0x13   :  { %1368 = vmatpush3.bf16.msra.mxu0 %v1616_v17  ;;  %v1654_v51 = vld [vmem:[%s2212_s0 + $0x78] ss:$28 sps:$4 sm:$0xff]   ;;  %v1669_v56 = vld [vmem:[%s2211_s1 + $0x120] sm:$0xff]   ;;  %v1662_v59 = vld [vmem:[%s2212_s0 + $0xb0] ss:$28 sps:$4 sm:$0xff]  }
  0x14   :  { %1369 = vmatprep.subr.bf16.mxu0 %v1619_v20  ;;  %v1659_v53 = vld [vmem:[%s2212_s0 + $0xb4] ss:$28 sps:$4 sm:$0xff]   ;;  %v1663_v57 = vld [vmem:[%s2212_s0 + $0xe4] ss:$28 sps:$4 sm:$0xff]   ;;  %v1667_v60 = vld [vmem:[%s2212_s0 + $0xec] ss:$28 sps:$4 sm:$0xff]  }
  0x15   :  { %1432 = vmatpush3.bf16.msra.mxu1 %v1618_v19  ;;  %v1671_v58 = vld [vmem:[%s2211_s1 + $0x180] sm:$0xff]   ;;  %v1675_v61 = vld [vmem:[%s2211_s1 + $0x168] sm:$0xff]   ;;  %v1681_v0 = vld [vmem:[%s2211_s1 + $0x190] sm:$0xff]  }
  0x16   :  { %1433 = vmatprep.subr.bf16.mxu1 %v1621_v22  ;;  %v1676_v62 = vld [vmem:[%s2211_s1 + $0x188] sm:$0xff]   ;;  %v1665_v1 = vld [vmem:[%s2212_s0 + $0xe0] ss:$28 sps:$4 sm:$0xff]   ;;  %v1685_v4 = vld [vmem:[%s2211_s1 + $0x170] sm:$0xff]  }
  0x17   :  { %1370 = vmatpush3.bf16.msra.mxu0 %v1620_v21  ;;  %v1679_v63 = vld [vmem:[%s2211_s1 + $0x128] sm:$0xff]   ;;  %v1672_v3 = vld [vmem:[%s2212_s0 + $0x11c] ss:$28 sps:$4 sm:$0xff]   ;;  %v1677_v6 = vld [vmem:[%s2212_s0 + $0x124] ss:$28 sps:$4 sm:$0xff]  }
  0x18   :  { %1371 = vmatprep.subr.bf16.mxu0 %v1623_v24  ;;  %v1670_v2 = vld [vmem:[%s2212_s0 + $0xe8] ss:$28 sps:$4 sm:$0xff]   ;;  %v1686_v5 = vld [vmem:[%s2211_s1 + $0x198] sm:$0xff]   ;;  %v1689_v7 = vld [vmem:[%s2211_s1 + $0x130] sm:$0xff]  }
  0x19   :  { %1434 = vmatpush3.bf16.msra.mxu1 %v1622_v23  ;;  %v1691_v8 = vld [vmem:[%s2211_s1 + $0x1a0] sm:$0xff]   ;;  %v1674_v9 = vld [vmem:[%s2212_s0 + $0x118] ss:$28 sps:$4 sm:$0xff]   ;;  %v1696_v13 = vld [vmem:[%s2211_s1 + $0x1a8] sm:$0xff]  }
  0x1a   :  { %1435 = vmatprep.subr.bf16.mxu1 %v1625_v26  ;;  %v1695_v10 = vld [vmem:[%s2211_s1 + $0x178] sm:$0xff]   ;;  %v1682_v12 = vld [vmem:[%s2212_s0 + $0x154] ss:$28 sps:$4 sm:$0xff]   ;;  %v1692_v18 = vld [vmem:[%s2212_s0 + $0x18c] ss:$28 sps:$4 sm:$0xff]  }
  0x1b   :  { %1372 = vmatpush3.bf16.msra.mxu0 %v1624_v25  ;;  %v1680_v11 = vld [vmem:[%s2212_s0 + $0x120] ss:$28 sps:$4 sm:$0xff]   ;;  %v1701_v16 = vld [vmem:[%s2211_s1 + $0x1b0] sm:$0xff]   ;;  %v1694_v22 = vld [vmem:[%s2212_s0 + $0x188] ss:$28 sps:$4 sm:$0xff]  }
  0x1c   :  { %1373 = vmatprep.subr.bf16.mxu0 %v1627_v28  ;;  %v1699_v14 = vld [vmem:[%s2211_s1 + $0x138] sm:$0xff]   ;;  %v1684_v17 = vld [vmem:[%s2212_s0 + $0x150] ss:$28 sps:$4 sm:$0xff]  }
  0x1d   :  { %1436 = vmatpush3.bf16.msra.mxu1 %v1626_v27  ;;  %v1687_v15 = vld [vmem:[%s2212_s0 + $0x15c] ss:$28 sps:$4 sm:$0xff]   ;;  %v1697_v21 = vld [vmem:[%s2212_s0 + $0x194] ss:$28 sps:$4 sm:$0xff]   ;;  %v1708_v27 = vld [vmem:[%s2212_s0 + $0x4c] ss:$28 sps:$4 sm:$0xff]  }
  0x1e   :  { %1437 = vmatprep.subr.bf16.mxu1 %v1629_v30  ;;  %v1705_v19 = vld [vmem:[%s2211_s1 + $0x1b8] sm:$0xff]   ;;  %v1704_v23 = vld [vmem:[%s2212_s0 + $0x14] ss:$28 sps:$4 sm:$0xff]   ;;  %v1710_v30 = vld [vmem:[%s2212_s0 + $0x48] ss:$28 sps:$4 sm:$0xff]  }
  0x1f   :  { %1374 = vmatpush3.bf16.msra.mxu0 %v1628_v29  ;;  %v1690_v20 = vld [vmem:[%s2212_s0 + $0x158] ss:$28 sps:$4 sm:$0xff]   ;;  %v1700_v24 = vld [vmem:[%s2212_s0 + $0x190] ss:$28 sps:$4 sm:$0xff]   ;;  %v1714_v29 = vld [vmem:[%s2212_s0 + $0x88] ss:$28 sps:$4 sm:$0xff]  }
  0x20   :  { %1487 = vmatprep.subr.bf16.mxu0 %v1634_v34  ;;  %v1706_v25 = vld [vmem:[%s2212_s0 + $0x18] ss:$28 sps:$4 sm:$0xff]   ;;  %v1702_v26 = vld [vmem:[%s2212_s0 + $0x10] ss:$28 sps:$4 sm:$0xff]   ;;  %v1715_v32 = vld [vmem:[%s2212_s0 + $0xc0] ss:$28 sps:$4 sm:$0xff]  }
  0x21   :  { %1438 = vmatpush3.bf16.msra.mxu1 %v1633_v33  ;;  %v1707_v28 = vld [vmem:[%s2212_s0 + $0x50] ss:$28 sps:$4 sm:$0xff]   ;;  %v1722_v33 = vld [vmem:[%s2212_s0 + $0xf8] ss:$28 sps:$4 sm:$0xff]   ;;  %v1713_v34 = vld [vmem:[%s2212_s0 + $0x80] ss:$28 sps:$4 sm:$0xff]  }
  0x22   :  { %855 = vmatmul.mubr.bf16.vlgmr.msra.gmra.mrb[0].mxu0 %v1630_v31  ;;  %1567 = vmatprep.subr.bf16.mxu1 %v1671_v58  ;;  %v1711_v31 = vld [vmem:[%s2212_s0 + $0x84] ss:$28 sps:$4 sm:$0xff]   ;;  %v1723_v36 = vld [vmem:[%s2212_s0 + $0x130] ss:$28 sps:$4 sm:$0xff]  }
  0x23   :  { %1488 = vmatpush3.bf16.msra.mxu0 %v1638_v37  ;;  %862 = vmatprep.mubr.bf16.mxu0 %v1639_v38  ;;  %v1730_v37 = vld [vmem:[%s2212_s0 + $0x168] ss:$28 sps:$4 sm:$0xff]   ;;  %v1718_v38 = vld [vmem:[%s2212_s0 + $0xb8] ss:$28 sps:$4 sm:$0xff]  }
  0x24   :  { %952 = vmatmul.mubr.bf16.vlgmr.msra.gmra.mrb[0].mxu1 %v1635_v35  ;;  %1489 = vmatprep.subr.bf16.mxu0 %v1642_v40  ;;  %v1716_v35 = vld [vmem:[%s2212_s0 + $0xbc] ss:$28 sps:$4 sm:$0xff]  }
  0x25   :  { %959 = vmatprep.mubr.bf16.mxu1 %v1643_v41  ;;  %1568 = vmatpush3.bf16.msra.mxu1 %v1671_v58  ;;  %v1731_v40 = vld [vmem:[%s2212_s0 + $0x1a0] ss:$28 sps:$4 sm:$0xff]   ;;  %v1721_v41 = vld [vmem:[%s2212_s0 + $0xf0] ss:$28 sps:$4 sm:$0xff]  }
  0x26   :  { %1569 = vmatprep.subr.bf16.mxu1 %v1676_v62 }
  0x27   :  { %1490 = vmatpush3.bf16.msra.mxu0 %v1645_v42  ;;  %v1724_v42 = vld [vmem:[%s2212_s0 + $0x12c] ss:$28 sps:$4 sm:$0xff]  }
  0x28   :  { %1491 = vmatprep.subr.bf16.mxu0 %v1650_v45  ;;  %v1729_v45 = vld [vmem:[%s2212_s0 + $0x160] ss:$28 sps:$4 sm:$0xff]  }
  0x29   :  { %1570 = vmatpush3.bf16.msra.mxu1 %v1676_v62 }
  0x2a   :  { %863 = vmatmul.mubr.bf16.gmra.mrb[4].mxu0 %v1641_v39  ;;  %1571 = vmatprep.subr.bf16.mxu1 %v1681_v0  ;;  %v1719_v39 = vld [vmem:[%s2212_s0 + $0xf4] ss:$28 sps:$4 sm:$0xff]  }
  0x2b   :  { %870 = vmatprep.mubr.bf16.mxu0 %v1647_v44  ;;  %1492 = vmatpush3.bf16.msra.mxu0 %v1653_v47  ;;  %v1727_v44 = vld [vmem:[%s2212_s0 + $0x164] ss:$28 sps:$4 sm:$0xff]   ;;  %v1734_v47 = vld [vmem:[%s2212_s0 + $0x198] ss:$28 sps:$4 sm:$0xff]  }
  0x2c   :  { %960 = vmatmul.mubr.bf16.gmra.mrb[4].mxu1 %v1646_v43  ;;  %1493 = vmatprep.subr.bf16.mxu0 %v1658_v50  ;;  %v1726_v43 = vld [vmem:[%s2212_s0 + $0x128] ss:$28 sps:$4 sm:$0xff]  }
  0x2d   :  { %967 = vmatprep.mubr.bf16.mxu1 %v1651_v46  ;;  %1572 = vmatpush3.bf16.msra.mxu1 %v1681_v0  ;;  %v1732_v46 = vld [vmem:[%s2212_s0 + $0x19c] ss:$28 sps:$4 sm:$0xff]  }
  0x2e   :  { %1573 = vmatprep.subr.bf16.mxu1 %v1686_v5 }
  0x2f   :  { %1494 = vmatpush3.bf16.msra.mxu0 %v1661_v52 }
  0x30   :  { %1495 = vmatprep.subr.bf16.mxu0 %v1666_v54 }
  0x31   :  { %1574 = vmatpush3.bf16.msra.mxu1 %v1686_v5 }
  0x32   :  { %871 = vmatmul.mubr.bf16.gmra.mrb[8].mxu0 %v1649_v48  ;;  %1575 = vmatprep.subr.bf16.mxu1 %v1691_v8 }
  0x33   :  { %878 = vmatprep.mubr.bf16.mxu0 %v1655_v49  ;;  %1496 = vmatpush3.bf16.msra.mxu0 %v1669_v56  ;;  %v2094_v49 = vld [vmem:[%s2213_s2] ss:$0 sm:$0xff] }
  0x34   :  { %968 = vmatmul.mubr.bf16.gmra.mrb[8].mxu1 %v1654_v51  ;;  %1497 = vmatprep.subr.bf16.mxu0 %v1675_v61 }
  0x35   :  { %975 = vmatprep.mubr.bf16.mxu1 %v1659_v53  ;;  %1576 = vmatpush3.bf16.msra.mxu1 %v1691_v8 }
  0x36   :  { %1577 = vmatprep.subr.bf16.mxu1 %v1696_v13 }
  0x37   :  { %1498 = vmatpush3.bf16.msra.mxu0 %v1679_v63 }
  0x38   :  { %1499 = vmatprep.subr.bf16.mxu0 %v1685_v4 }
  0x39   :  { %1578 = vmatpush3.bf16.msra.mxu1 %v1696_v13 }
  0x3a   :  { %879 = vmatmul.mubr.bf16.gmra.mrb[12].mxu0 %v1657_v55  ;;  %1579 = vmatprep.subr.bf16.mxu1 %v1701_v16 }
  0x3b   :  { %886 = vmatprep.mubr.bf16.mxu0 %v1663_v57  ;;  %1500 = vmatpush3.bf16.msra.mxu0 %v1689_v7 }
  0x3c   :  { %976 = vmatmul.mubr.bf16.gmra.mrb[12].mxu1 %v1662_v59  ;;  %1501 = vmatprep.subr.bf16.mxu0 %v1695_v10 }
  0x3d   :  { %983 = vmatprep.mubr.bf16.mxu1 %v1667_v60  ;;  %1580 = vmatpush3.bf16.msra.mxu1 %v1701_v16 }
  0x3e   :  { %1581 = vmatprep.subr.bf16.mxu1 %v1705_v19 }
  0x3f   :  { %1502 = vmatpush3.bf16.msra.mxu0 %v1699_v14 }
  0x41   :  { %1582 = vmatpush3.bf16.msra.mxu1 %v1705_v19 }
  0x42   :  { %887 = vmatmul.mubr.bf16.gmra.mrb[16].mxu0 %v1665_v1 }
  0x43   :  { %894 = vmatprep.mubr.bf16.mxu0 %v1672_v3 }
  0x44   :  { %984 = vmatmul.mubr.bf16.gmra.mrb[16].mxu1 %v1670_v2 }
  0x45   :  { %991 = vmatprep.mubr.bf16.mxu1 %v1677_v6 }
  0x4a   :  { %895 = vmatmul.mubr.bf16.gmra.mrb[20].mxu0 %v1674_v9 }
  0x4b   :  { %902 = vmatprep.mubr.bf16.mxu0 %v1682_v12 }
  0x4c   :  { %992 = vmatmul.mubr.bf16.gmra.mrb[20].mxu1 %v1680_v11 }
  0x4d   :  { %999 = vmatprep.mubr.bf16.mxu1 %v1687_v15 }
  0x52   :  { %903 = vmatmul.mubr.bf16.gmra.mrb[24].mxu0 %v1684_v17 }
  0x53   :  { %910 = vmatprep.mubr.bf16.mxu0 %v1692_v18 }
  0x54   :  { %1000 = vmatmul.mubr.bf16.gmra.mrb[24].mxu1 %v1690_v20 }
  0x55   :  { %1007 = vmatprep.mubr.bf16.mxu1 %v1697_v21 }
  0x5a   :  { %911 = vmatmul.mubr.bf16.gmra.mrb[28].mxu0 %v1694_v22 }
  0x5b   :  { %1048 = vmatprep.mubr.bf16.mxu0 %v1704_v23 }
  0x5c   :  { %1008 = vmatmul.mubr.bf16.gmra.mrb[28].mxu1 %v1700_v24 }
  0x5d   :  { %1583 = vmatprep.mubr.bf16.mxu1 %v1706_v25 }
  0x62   :  { %1049 = vmatmul.mubr.bf16.vlgmr.msra.gmra.mrb[32].mxu0 %v1702_v26 }
  0x63   :  { %1056 = vmatprep.mubr.bf16.mxu0 %v1708_v27 }
  0x64   :  { %1584 = vmatmul.mubr.bf16.vlgmr.msra.gmra.mrb[32].mxu1 %v1707_v28 }
  0x65   :  { %1587 = vmatprep.mubr.bf16.mxu1 %v1714_v29 }
  0x6a   :  { %1057 = vmatmul.mubr.bf16.gmra.mrb[36].mxu0 %v1710_v30 }
  0x6b   :  { %1064 = vmatprep.mubr.bf16.mxu0 %v1711_v31 }
  0x6c   :  { %1588 = vmatmul.mubr.bf16.gmra.mrb[36].mxu1 %v1715_v32 }
  0x6d   :  { %1591 = vmatprep.mubr.bf16.mxu1 %v1722_v33 }
  0x72   :  { %1065 = vmatmul.mubr.bf16.gmra.mrb[40].mxu0 %v1713_v34 }
  0x73   :  { %1072 = vmatprep.mubr.bf16.mxu0 %v1716_v35 }
  0x74   :  { %1592 = vmatmul.mubr.bf16.gmra.mrb[40].mxu1 %v1723_v36 }
  0x75   :  { %1595 = vmatprep.mubr.bf16.mxu1 %v1730_v37 }
  0x7a   :  { %1073 = vmatmul.mubr.bf16.gmra.mrb[44].mxu0 %v1718_v38 }
  0x7b   :  { %1080 = vmatprep.mubr.bf16.mxu0 %v1719_v39 }
  0x7c   :  { %1596 = vmatmul.mubr.bf16.gmra.mrb[44].mxu1 %v1731_v40 }
  0x82   :  { %1081 = vmatmul.mubr.bf16.gmra.mrb[48].mxu0 %v1721_v41 }
  0x83   :  { %1088 = vmatprep.mubr.bf16.mxu0 %v1724_v42 }
  0x8a   :  { %1089 = vmatmul.mubr.bf16.gmra.mrb[52].mxu0 %v1726_v43 }
  0x8b   :  { %1096 = vmatprep.mubr.bf16.mxu0 %v1727_v44 }
  0x92   :  { %1097 = vmatmul.mubr.bf16.gmra.mrb[56].mxu0 %v1729_v45 }
  0x93   :  { %1104 = vmatprep.mubr.bf16.mxu0 %v1732_v46 }
  0x9a   :  { %1105 = vmatmul.mubr.bf16.gmra.mrb[60].mxu0 %v1734_v47 }
  0xf5   :  { %v1375_v48 = vpop.f32.mrb[0].mxu0 }
  0xf6   :  { %v1376_v50 = vpop.f32.mrb[1].mxu0 }
  0xf7   :  { %v1377_v51 = vadd.f32 %v1376_v50, %v1375_v48  ;;  %v1378_v52 = vpop.f32.mrb[2].mxu0  ;;  %v1439_v53 = vpop.f32.mrb[0].mxu1 }
  0xf8   :  { %v1379_v54 = vpop.f32.mrb[3].mxu0  ;;  %v1440_v57 = vpop.f32.mrb[1].mxu1 }
  0xf9   :  { %v857_v55 = vadd.f32 %v1377_v51, %v2094_v49  ;;  %v1380_v56 = vadd.f32 %v1379_v54, %v1378_v52  ;;  %v1441_v58 = vadd.f32 %v1440_v57, %v1439_v53  ;;  %v1442_v59 = vpop.f32.mrb[2].mxu1 }
  0xfa   :  { %v1443_v61 = vpop.f32.mrb[3].mxu1 }
  0xfb   :  { %v860_v60 = vadd.f32 %v1380_v56, %v2094_v49  ;;  %v2098_v62 = vadd.f32 %v1441_v58, %v857_v55  ;;  %v1444_v63 = vadd.f32 %v1443_v61, %v1442_v59 }
  0xfd   :  { %v1381_v0 = vpop.f32.mrb[4].mxu0  ;;  %v2100_v1 = vadd.f32 %v1444_v63, %v860_v60 }
  0xfe   :  { %v1382_v2 = vpop.f32.mrb[5].mxu0 }
  0xff   :  { %v1383_v3 = vadd.f32 %v1382_v2, %v1381_v0  ;;  %v1384_v4 = vpop.f32.mrb[6].mxu0  ;;  %v1445_v5 = vpop.f32.mrb[4].mxu1 }
 0x100   :  { %v1385_v6 = vpop.f32.mrb[7].mxu0  ;;  %v1446_v9 = vpop.f32.mrb[5].mxu1 }
 0x101   :  { %v865_v7 = vadd.f32 %v1383_v3, %v2094_v49  ;;  %v1386_v8 = vadd.f32 %v1385_v6, %v1384_v4  ;;  %v1447_v10 = vadd.f32 %v1446_v9, %v1445_v5  ;;  %v1448_v11 = vpop.f32.mrb[6].mxu1 }
 0x102   :  { %v1449_v13 = vpop.f32.mrb[7].mxu1 }
 0x103   :  { %v868_v12 = vadd.f32 %v1386_v8, %v2094_v49  ;;  %v2104_v14 = vadd.f32 %v1447_v10, %v865_v7  ;;  %v1450_v15 = vadd.f32 %v1449_v13, %v1448_v11 }
 0x105   :  { %v1387_v16 = vpop.f32.mrb[8].mxu0  ;;  %v2106_v17 = vadd.f32 %v1450_v15, %v868_v12 }
 0x106   :  { %v1388_v18 = vpop.f32.mrb[9].mxu0 }
 0x107   :  { %v1389_v19 = vadd.f32 %v1388_v18, %v1387_v16  ;;  %v1390_v20 = vpop.f32.mrb[10].mxu0  ;;  %v1451_v21 = vpop.f32.mrb[8].mxu1 }
 0x108   :  { %v1391_v22 = vpop.f32.mrb[11].mxu0  ;;  %v1452_v25 = vpop.f32.mrb[9].mxu1 }
 0x109   :  { %v873_v23 = vadd.f32 %v1389_v19, %v2094_v49  ;;  %v1392_v24 = vadd.f32 %v1391_v22, %v1390_v20  ;;  %v1453_v26 = vadd.f32 %v1452_v25, %v1451_v21  ;;  %v1454_v27 = vpop.f32.mrb[10].mxu1 }
 0x10a   :  { %v1455_v29 = vpop.f32.mrb[11].mxu1 }
 0x10b   :  { %v876_v28 = vadd.f32 %v1392_v24, %v2094_v49  ;;  %v2110_v30 = vadd.f32 %v1453_v26, %v873_v23  ;;  %v1456_v31 = vadd.f32 %v1455_v29, %v1454_v27 }
 0x10d   :  { %v1393_v32 = vpop.f32.mrb[12].mxu0  ;;  %v2112_v33 = vadd.f32 %v1456_v31, %v876_v28 }
 0x10e   :  { %v1394_v34 = vpop.f32.mrb[13].mxu0 }
 0x10f   :  { %v1395_v35 = vadd.f32 %v1394_v34, %v1393_v32  ;;  %v1396_v36 = vpop.f32.mrb[14].mxu0  ;;  %v1457_v37 = vpop.f32.mrb[12].mxu1 }
 0x110   :  { %v1397_v38 = vpop.f32.mrb[15].mxu0  ;;  %v1458_v41 = vpop.f32.mrb[13].mxu1 }
 0x111   :  { %v881_v39 = vadd.f32 %v1395_v35, %v2094_v49  ;;  %v1398_v40 = vadd.f32 %v1397_v38, %v1396_v36  ;;  %v1459_v42 = vadd.f32 %v1458_v41, %v1457_v37  ;;  %v1460_v43 = vpop.f32.mrb[14].mxu1 }
 0x112   :  { %v1461_v45 = vpop.f32.mrb[15].mxu1 }
 0x113   :  { %v884_v44 = vadd.f32 %v1398_v40, %v2094_v49  ;;  %v2116_v46 = vadd.f32 %v1459_v42, %v881_v39  ;;  %v1462_v47 = vadd.f32 %v1461_v45, %v1460_v43 }
 0x115   :  { %v1399_v48 = vpop.f32.mrb[16].mxu0  ;;  %v2118_v50 = vadd.f32 %v1462_v47, %v884_v44 }
 0x116   :  { %v1400_v51 = vpop.f32.mrb[17].mxu0 }
 0x117   :  { %v1401_v52 = vadd.f32 %v1400_v51, %v1399_v48  ;;  %v1402_v53 = vpop.f32.mrb[18].mxu0  ;;  %v1463_v54 = vpop.f32.mrb[16].mxu1 }
 0x118   :  { %v1403_v55 = vpop.f32.mrb[19].mxu0  ;;  %v1464_v58 = vpop.f32.mrb[17].mxu1 }
 0x119   :  { %v889_v56 = vadd.f32 %v1401_v52, %v2094_v49  ;;  %v1404_v57 = vadd.f32 %v1403_v55, %v1402_v53  ;;  %v1465_v59 = vadd.f32 %v1464_v58, %v1463_v54  ;;  %v1466_v60 = vpop.f32.mrb[18].mxu1 }
 0x11a   :  { %v1467_v63 = vpop.f32.mrb[19].mxu1 }
 0x11b   :  { %v892_v61 = vadd.f32 %v1404_v57, %v2094_v49  ;;  %v2122_v0 = vadd.f32 %v1465_v59, %v889_v56  ;;  %v1468_v2 = vadd.f32 %v1467_v63, %v1466_v60 }
 0x11d   :  { %v1405_v3 = vpop.f32.mrb[20].mxu0  ;;  %v2124_v4 = vadd.f32 %v1468_v2, %v892_v61 }
 0x11e   :  { %v1406_v5 = vpop.f32.mrb[21].mxu0 }
 0x11f   :  { %v1407_v6 = vadd.f32 %v1406_v5, %v1405_v3  ;;  %v1408_v7 = vpop.f32.mrb[22].mxu0  ;;  %v1469_v8 = vpop.f32.mrb[20].mxu1 }
 0x120   :  { %v1409_v9 = vpop.f32.mrb[23].mxu0  ;;  %v1470_v12 = vpop.f32.mrb[21].mxu1 }
 0x121   :  { %v897_v10 = vadd.f32 %v1407_v6, %v2094_v49  ;;  %v1410_v11 = vadd.f32 %v1409_v9, %v1408_v7  ;;  %v1471_v13 = vadd.f32 %v1470_v12, %v1469_v8  ;;  %v1472_v15 = vpop.f32.mrb[22].mxu1 }
 0x122   :  { %v1473_v18 = vpop.f32.mrb[23].mxu1 }
 0x123   :  { %v900_v16 = vadd.f32 %v1410_v11, %v2094_v49  ;;  %v2128_v19 = vadd.f32 %v1471_v13, %v897_v10  ;;  %v1474_v20 = vadd.f32 %v1473_v18, %v1472_v15 }
 0x125   :  { %v1411_v21 = vpop.f32.mrb[24].mxu0  ;;  %v2130_v22 = vadd.f32 %v1474_v20, %v900_v16 }
 0x126   :  { %v1412_v23 = vpop.f32.mrb[25].mxu0 }
 0x127   :  { %v1413_v24 = vadd.f32 %v1412_v23, %v1411_v21  ;;  %v1414_v25 = vpop.f32.mrb[26].mxu0  ;;  %v1475_v26 = vpop.f32.mrb[24].mxu1 }
 0x128   :  { %v1415_v27 = vpop.f32.mrb[27].mxu0  ;;  %v1476_v31 = vpop.f32.mrb[25].mxu1 }
 0x129   :  { %v905_v28 = vadd.f32 %v1413_v24, %v2094_v49  ;;  %v1416_v29 = vadd.f32 %v1415_v27, %v1414_v25  ;;  %v1477_v32 = vadd.f32 %v1476_v31, %v1475_v26  ;;  %v1478_v34 = vpop.f32.mrb[26].mxu1 }
 0x12a   :  { %v1479_v36 = vpop.f32.mrb[27].mxu1 }
 0x12b   :  { %v908_v35 = vadd.f32 %v1416_v29, %v2094_v49  ;;  %v2134_v37 = vadd.f32 %v1477_v32, %v905_v28  ;;  %v1480_v38 = vadd.f32 %v1479_v36, %v1478_v34 }
 0x12d   :  { %v1417_v39 = vpop.f32.mrb[28].mxu0  ;;  %v2136_v40 = vadd.f32 %v1480_v38, %v908_v35 }
 0x12e   :  { %v1418_v41 = vpop.f32.mrb[29].mxu0 }
 0x12f   :  { %v1419_v42 = vadd.f32 %v1418_v41, %v1417_v39  ;;  %v1420_v43 = vpop.f32.mrb[30].mxu0  ;;  %v1481_v44 = vpop.f32.mrb[28].mxu1 }
 0x130   :  { %v1421_v45 = vpop.f32.mrb[31].mxu0  ;;  %v1482_v51 = vpop.f32.mrb[29].mxu1 }
 0x131   :  { %v913_v47 = vadd.f32 %v1419_v42, %v2094_v49  ;;  %v1422_v48 = vadd.f32 %v1421_v45, %v1420_v43  ;;  %v1483_v52 = vadd.f32 %v1482_v51, %v1481_v44  ;;  %v1484_v53 = vpop.f32.mrb[30].mxu1 }
 0x132   :  { %v1485_v55 = vpop.f32.mrb[31].mxu1 }
 0x133   :  { %v916_v54 = vadd.f32 %v1422_v48, %v2094_v49  ;;  %v2140_v56 = vadd.f32 %v1483_v52, %v913_v47  ;;  %v1486_v57 = vadd.f32 %v1485_v55, %v1484_v53 }
 0x135   :  { %v1503_v58 = vpop.f32.mrb[32].mxu0  ;;  %v2142_v59 = vadd.f32 %v1486_v57, %v916_v54 }
 0x136   :  { %v1504_v60 = vpop.f32.mrb[33].mxu0 }
 0x137   :  { %v1505_v61 = vadd.f32 %v1504_v60, %v1503_v58  ;;  %v1506_v63 = vpop.f32.mrb[34].mxu0  ;;  %v1585_v3 = vpop.f32.mrb[32].mxu1 }
 0x138   :  { %v1507_v2 = vpop.f32.mrb[35].mxu0  ;;  %v1147_v7 = vpop.f32.mrb[33].mxu1 }
 0x139   :  { %v1508_v5 = vadd.f32 %v1507_v2, %v1506_v63  ;;  %v1051_v6 = vadd.f32 %v1505_v61, %v2098_v62  ;;  %v1586_v8 = vpop.f32.mrb[34].mxu1 }
 0x13a   :  { %v1150_v10 = vpop.f32.mrb[35].mxu1 }
 0x13b   :  { %v1148_v9 = vadd.f32 %v1147_v7, %v1051_v6  ;;  %v1054_v49 = vadd.f32 %v1508_v5, %v2100_v1 }
 0x13d   :  { %v1210_v11 = vmax.f32 %v1148_v9, 0.0  ;;  %v1151_v12 = vadd.f32 %v1150_v10, %v1054_v49  ;;  %v1509_v13 = vpop.f32.mrb[36].mxu0 }
 0x13e   :  { %v1510_v15 = vpop.f32.mrb[37].mxu0 }
 0x13f   :  { %1226 = vst [vmem:[%s2214_s3] sm:$0xff] %v1210_v11  ;;  %v1211_v16 = vmax.f32 %v1151_v12, 0.0  ;;  %v1511_v18 = vadd.f32 %v1510_v15, %v1509_v13  ;;  %v1512_v20 = vpop.f32.mrb[38].mxu0  ;;  %v1589_v23 = vpop.f32.mrb[36].mxu1 }
 0x140   :  { %v1513_v21 = vpop.f32.mrb[39].mxu0  ;;  %v1163_v24 = vpop.f32.mrb[37].mxu1 }
 0x141   :  { %1227 = vst [vmem:[%s2214_s3 + $0x8] sm:$0xff] %v1211_v16  ;;  %v1059_v62 = vadd.f32 %v1511_v18, %v2104_v14  ;;  %v1514_v1 = vadd.f32 %v1513_v21, %v1512_v20  ;;  %v1590_v25 = vpop.f32.mrb[38].mxu1 }
 0x142   :  { %v1166_v28 = vpop.f32.mrb[39].mxu1 }
 0x143   :  { %v1156_v26 = vadd.f32 %v1585_v3, %v1059_v62  ;;  %v1062_v27 = vadd.f32 %v1514_v1, %v2106_v17 }
 0x145   :  { %v1212_v29 = vmax.f32 %v1156_v26, 0.0  ;;  %v1159_v31 = vadd.f32 %v1586_v8, %v1062_v27  ;;  %v1515_v32 = vpop.f32.mrb[40].mxu0 }
 0x146   :  { %v1516_v34 = vpop.f32.mrb[41].mxu0 }
 0x147   :  { %1228 = vst [vmem:[%s2214_s3 + $0x10] sm:$0xff] %v1212_v29  ;;  %v1213_v35 = vmax.f32 %v1159_v31, 0.0  ;;  %v1517_v36 = vadd.f32 %v1516_v34, %v1515_v32  ;;  %v1518_v38 = vpop.f32.mrb[42].mxu0  ;;  %v1593_v14 = vpop.f32.mrb[40].mxu1 }
 0x148   :  { %v1519_v39 = vpop.f32.mrb[43].mxu0  ;;  %v1179_v42 = vpop.f32.mrb[41].mxu1 }
 0x149   :  { %1229 = vst [vmem:[%s2214_s3 + $0x18] sm:$0xff] %v1213_v35  ;;  %v1520_v41 = vadd.f32 %v1519_v39, %v1518_v38  ;;  %v1067_v17 = vadd.f32 %v1517_v36, %v2110_v30  ;;  %v1594_v43 = vpop.f32.mrb[42].mxu1 }
 0x14a   :  { %v1182_v47 = vpop.f32.mrb[43].mxu1 }
 0x14b   :  { %v1164_v44 = vadd.f32 %v1163_v24, %v1067_v17  ;;  %v1070_v45 = vadd.f32 %v1520_v41, %v2112_v33 }
 0x14d   :  { %v1214_v48 = vmax.f32 %v1164_v44, 0.0  ;;  %v1167_v51 = vadd.f32 %v1166_v28, %v1070_v45  ;;  %v1521_v52 = vpop.f32.mrb[44].mxu0 }
 0x14e   :  { %v1522_v53 = vpop.f32.mrb[45].mxu0 }
 0x14f   :  { %1230 = vst [vmem:[%s2214_s3 + $0x20] sm:$0xff] %v1214_v48  ;;  %v1215_v54 = vmax.f32 %v1167_v51, 0.0  ;;  %v1523_v55 = vadd.f32 %v1522_v53, %v1521_v52  ;;  %v1524_v57 = vpop.f32.mrb[46].mxu0  ;;  %v2165_v60 = vpop.f32.mrb[44].mxu1 }
 0x150   :  { %v1525_v58 = vpop.f32.mrb[47].mxu0  ;;  %v1195_v61 = vpop.f32.mrb[45].mxu1 }
 0x151   :  { %1231 = vst [vmem:[%s2214_s3 + $0x28] sm:$0xff] %v1215_v54  ;;  %v1075_v30 = vadd.f32 %v1523_v55, %v2116_v46  ;;  %v1526_v33 = vadd.f32 %v1525_v58, %v1524_v57  ;;  %v1598_v63 = vpop.f32.mrb[46].mxu1 }
 0x152   :  { %v1198_v5 = vpop.f32.mrb[47].mxu1 }
 0x153   :  { %v1172_v2 = vadd.f32 %v1589_v23, %v1075_v30  ;;  %v1078_v3 = vadd.f32 %v1526_v33, %v2118_v50 }
 0x155   :  { %v1216_v6 = vmax.f32 %v1172_v2, 0.0  ;;  %v1175_v7 = vadd.f32 %v1590_v25, %v1078_v3  ;;  %v1527_v8 = vpop.f32.mrb[48].mxu0 }
 0x156   :  { %v1528_v9 = vpop.f32.mrb[49].mxu0 }
 0x157   :  { %1232 = vst [vmem:[%s2214_s3 + $0x30] sm:$0xff] %v1216_v6  ;;  %v1217_v49 = vmax.f32 %v1175_v7, 0.0  ;;  %v1529_v10 = vadd.f32 %v1528_v9, %v1527_v8  ;;  %v1530_v11 = vpop.f32.mrb[50].mxu0 }
 0x158   :  { %v1531_v12 = vpop.f32.mrb[51].mxu0 }
 0x159   :  { %1233 = vst [vmem:[%s2214_s3 + $0x38] sm:$0xff] %v1217_v49  ;;  %v1532_v46 = vadd.f32 %v1531_v12, %v1530_v11  ;;  %v1083_v50 = vadd.f32 %v1529_v10, %v2122_v0 }
 0x15b   :  { %v1180_v13 = vadd.f32 %v1179_v42, %v1083_v50  ;;  %v1086_v15 = vadd.f32 %v1532_v46, %v2124_v4 }
 0x15d   :  { %v1218_v16 = vmax.f32 %v1180_v13, 0.0  ;;  %v1183_v18 = vadd.f32 %v1182_v47, %v1086_v15  ;;  %v1533_v20 = vpop.f32.mrb[52].mxu0 }
 0x15e   :  { %v1534_v21 = vpop.f32.mrb[53].mxu0 }
 0x15f   :  { %1234 = vst [vmem:[%s2214_s3 + $0x40] sm:$0xff] %v1218_v16  ;;  %v1219_v23 = vmax.f32 %v1183_v18, 0.0  ;;  %v1535_v62 = vadd.f32 %v1534_v21, %v1533_v20  ;;  %v1536_v1 = vpop.f32.mrb[54].mxu0 }
 0x160   :  { %v1537_v24 = vpop.f32.mrb[55].mxu0 }
 0x161   :  { %1235 = vst [vmem:[%s2214_s3 + $0x48] sm:$0xff] %v1219_v23  ;;  %v1091_v0 = vadd.f32 %v1535_v62, %v2128_v19  ;;  %v1538_v25 = vadd.f32 %v1537_v24, %v1536_v1 }
 0x163   :  { %v1188_v4 = vadd.f32 %v1593_v14, %v1091_v0  ;;  %v1094_v26 = vadd.f32 %v1538_v25, %v2130_v22 }
 0x165   :  { %v1220_v27 = vmax.f32 %v1188_v4, 0.0  ;;  %v1191_v28 = vadd.f32 %v1594_v43, %v1094_v26  ;;  %v1539_v29 = vpop.f32.mrb[56].mxu0 }
 0x166   :  { %v1540_v31 = vpop.f32.mrb[57].mxu0 }
 0x167   :  { %1236 = vst [vmem:[%s2214_s3 + $0x50] sm:$0xff] %v1220_v27  ;;  %v1221_v32 = vmax.f32 %v1191_v28, 0.0  ;;  %v1541_v34 = vadd.f32 %v1540_v31, %v1539_v29  ;;  %v1542_v35 = vpop.f32.mrb[58].mxu0 }
 0x168   :  { %v1543_v36 = vpop.f32.mrb[59].mxu0 }
 0x169   :  { %1237 = vst [vmem:[%s2214_s3 + $0x58] sm:$0xff] %v1221_v32  ;;  %v1544_v19 = vadd.f32 %v1543_v36, %v1542_v35  ;;  %v1099_v38 = vadd.f32 %v1541_v34, %v2134_v37 }
 0x16b   :  { %v1196_v22 = vadd.f32 %v1195_v61, %v1099_v38  ;;  %v1102_v39 = vadd.f32 %v1544_v19, %v2136_v40 }
 0x16d   :  { %v1222_v14 = vmax.f32 %v1196_v22, 0.0  ;;  %v1199_v41 = vadd.f32 %v1198_v5, %v1102_v39  ;;  %v1545_v17 = vpop.f32.mrb[60].mxu0 }
 0x16e   :  { %v1546_v42 = vpop.f32.mrb[61].mxu0 }
 0x16f   :  { %1238 = vst [vmem:[%s2214_s3 + $0x60] sm:$0xff] %v1222_v14  ;;  %v1223_v43 = vmax.f32 %v1199_v41, 0.0  ;;  %v1547_v44 = vadd.f32 %v1546_v42, %v1545_v17  ;;  %v1548_v45 = vpop.f32.mrb[62].mxu0 }
 0x170   :  { %v1549_v47 = vpop.f32.mrb[63].mxu0 }
 0x171   :  { %1239 = vst [vmem:[%s2214_s3 + $0x68] sm:$0xff] %v1223_v43  ;;  %v1107_v37 = vadd.f32 %v1547_v44, %v2140_v56  ;;  %v1550_v48 = vadd.f32 %v1549_v47, %v1548_v45 }
 0x173   :  { %v1204_v40 = vadd.f32 %v2165_v60, %v1107_v37  ;;  %v1110_v51 = vadd.f32 %v1550_v48, %v2142_v59 }
 0x175   :  { %v1224_v52 = vmax.f32 %v1204_v40, 0.0  ;;  %v1207_v53 = vadd.f32 %v1598_v63, %v1110_v51 }
 0x177   :  { %1240 = vst [vmem:[%s2214_s3 + $0x70] sm:$0xff] %v1224_v52  ;;  %v1225_v54 = vmax.f32 %v1207_v53, 0.0 }
 0x179   :  { %1241 = vst [vmem:[%s2214_s3 + $0x78] sm:$0xff] %v1225_v54 }

// kernel: transformer_forward.20
= control target key start
LH: loop header
LB: loop body
LE: loop exit
PB: predicated region body
PF: predicated region fallthrough
CT: control target
= control target key end

     0   :  { %s2118_s1 = inlined_call_operand.vmem [shape: bf16[1792,128], index: 1, kind: input, shape index: {}]   ;;  %s2119_s0 = inlined_call_operand.vmem [shape: bf16[16,1792], index: 0, kind: input, shape index: {}]   ;;  %s2120_s2 = inlined_call_operand.vmem [shape: f32[1,128], index: 2, kind: input, shape index: {}]   ;;  %s2121_s3 = inlined_call_operand.vmem [shape: f32[16,128], index: 3, kind: output, shape index: {}]  }
   0x1   :  { %v1578_v0 = vld [vmem:[%s2118_s1 + $0x40] sm:$0xff]   ;;  %v1582_v4 = vld [vmem:[%s2118_s1 + $0x48] sm:$0xff]   ;;  %v1586_v8 = vld [vmem:[%s2118_s1 + $0x50] sm:$0xff]  }
   0x2   :  { %v1579_v1 = vld [vmem:[%s2118_s1] sm:$0xff]   ;;  %1424 = vmatprep.subr.bf16.mxu0 %v1578_v0  ;;  %v1583_v5 = vld [vmem:[%s2118_s1 + $0x8] sm:$0xff]   ;;  %v1587_v9 = vld [vmem:[%s2118_s1 + $0x10] sm:$0xff]  }
   0x3   :  { %v1580_v2 = vld [vmem:[%s2118_s1 + $0xc0] sm:$0xff]   ;;  %1425 = vmatpush3.bf16.msra.mxu0 %v1579_v1  ;;  %v1584_v6 = vld [vmem:[%s2118_s1 + $0xc8] sm:$0xff]   ;;  %v1588_v10 = vld [vmem:[%s2118_s1 + $0xd0] sm:$0xff]  }
   0x4   :  { %v1581_v3 = vld [vmem:[%s2118_s1 + $0x80] sm:$0xff]   ;;  %1446 = vmatprep.subr.bf16.mxu1 %v1580_v2  ;;  %1426 = vmatprep.subr.bf16.mxu0 %v1582_v4  ;;  %v1585_v7 = vld [vmem:[%s2118_s1 + $0x88] sm:$0xff]   ;;  %v1589_v11 = vld [vmem:[%s2118_s1 + $0x90] sm:$0xff]  }
   0x5   :  { %1447 = vmatpush3.bf16.msra.mxu1 %v1581_v3  ;;  %v1590_v12 = vld [vmem:[%s2118_s1 + $0x58] sm:$0xff]   ;;  %v1594_v16 = vld [vmem:[%s2118_s1 + $0x60] sm:$0xff]   ;;  %v1598_v20 = vld [vmem:[%s2118_s1 + $0x68] sm:$0xff]  }
   0x6   :  { %1448 = vmatprep.subr.bf16.mxu1 %v1584_v6  ;;  %v1591_v13 = vld [vmem:[%s2118_s1 + $0x18] sm:$0xff]   ;;  %v1595_v17 = vld [vmem:[%s2118_s1 + $0x20] sm:$0xff]   ;;  %v1599_v21 = vld [vmem:[%s2118_s1 + $0x28] sm:$0xff]  }
   0x7   :  { %1427 = vmatpush3.bf16.msra.mxu0 %v1583_v5  ;;  %v1592_v14 = vld [vmem:[%s2118_s1 + $0xd8] sm:$0xff]   ;;  %v1596_v18 = vld [vmem:[%s2118_s1 + $0xe0] sm:$0xff]   ;;  %v1600_v22 = vld [vmem:[%s2118_s1 + $0xe8] sm:$0xff]  }
   0x8   :  { %1428 = vmatprep.subr.bf16.mxu0 %v1586_v8  ;;  %v1593_v15 = vld [vmem:[%s2118_s1 + $0x98] sm:$0xff]   ;;  %v1597_v19 = vld [vmem:[%s2118_s1 + $0xa0] sm:$0xff]   ;;  %v1601_v23 = vld [vmem:[%s2118_s1 + $0xa8] sm:$0xff]  }
   0x9   :  { %1449 = vmatpush3.bf16.msra.mxu1 %v1585_v7  ;;  %v1602_v24 = vld [vmem:[%s2118_s1 + $0x70] sm:$0xff]   ;;  %v1606_v28 = vld [vmem:[%s2118_s1 + $0x78] sm:$0xff]   ;;  %v1613_v34 = vld [vmem:[%s2118_s1 + $0x140] sm:$0xff]  }
   0xa   :  { %1450 = vmatprep.subr.bf16.mxu1 %v1588_v10  ;;  %v1603_v25 = vld [vmem:[%s2118_s1 + $0x30] sm:$0xff]   ;;  %v1607_v29 = vld [vmem:[%s2118_s1 + $0x38] sm:$0xff]   ;;  %v1614_v35 = vld [vmem:[%s2119_s0 + $0x8] ss:$56 sps:$4 sm:$0xff]  }
   0xb   :  { %1429 = vmatpush3.bf16.msra.mxu0 %v1587_v9  ;;  %v1604_v26 = vld [vmem:[%s2118_s1 + $0xf0] sm:$0xff]   ;;  %v1608_v30 = vld [vmem:[%s2118_s1 + $0xf8] sm:$0xff]   ;;  %v1616_v36 = vld [vmem:[%s2119_s0 + $0xc] ss:$56 sps:$4 sm:$0xff]  }
   0xc   :  { %1430 = vmatprep.subr.bf16.mxu0 %v1590_v12  ;;  %v1605_v27 = vld [vmem:[%s2118_s1 + $0xb0] sm:$0xff]   ;;  %v1609_v31 = vld [vmem:[%s2119_s0] ss:$56 sps:$4 sm:$0xff]   ;;  %v1611_v32 = vld [vmem:[%s2119_s0 + $0x4] ss:$56 sps:$4 sm:$0xff]   ;;  %1075 = vmatprep.mubr.bf16.mxu1 %v1616_v36 }
   0xd   :  { %1451 = vmatpush3.bf16.msra.mxu1 %v1589_v11  ;;  %v1612_v33 = vld [vmem:[%s2118_s1 + $0xb8] sm:$0xff]   ;;  %1034 = vmatprep.mubr.bf16.mxu0 %v1611_v32  ;;  %v1617_v37 = vld [vmem:[%s2118_s1 + $0x100] sm:$0xff]   ;;  %v1620_v40 = vld [vmem:[%s2118_s1 + $0x148] sm:$0xff]  }
   0xe   :  { %1452 = vmatprep.subr.bf16.mxu1 %v1592_v14  ;;  %v1618_v38 = vld [vmem:[%s2118_s1 + $0x1c0] sm:$0xff]   ;;  %v1621_v41 = vld [vmem:[%s2118_s1 + $0x108] sm:$0xff]   ;;  %v1624_v44 = vld [vmem:[%s2118_s1 + $0x150] sm:$0xff]  }
   0xf   :  { %1431 = vmatpush3.bf16.msra.mxu0 %v1591_v13  ;;  %v1619_v39 = vld [vmem:[%s2118_s1 + $0x180] sm:$0xff]   ;;  %v1622_v42 = vld [vmem:[%s2118_s1 + $0x1c8] sm:$0xff]   ;;  %v1625_v45 = vld [vmem:[%s2118_s1 + $0x110] sm:$0xff]  }
  0x10   :  { %1432 = vmatprep.subr.bf16.mxu0 %v1594_v16  ;;  %v1623_v43 = vld [vmem:[%s2118_s1 + $0x188] sm:$0xff]   ;;  %v1626_v46 = vld [vmem:[%s2118_s1 + $0x1d0] sm:$0xff]   ;;  %v1628_v48 = vld [vmem:[%s2118_s1 + $0x158] sm:$0xff]  }
  0x11   :  { %1453 = vmatpush3.bf16.msra.mxu1 %v1593_v15  ;;  %v1627_v47 = vld [vmem:[%s2118_s1 + $0x190] sm:$0xff]   ;;  %v1629_v49 = vld [vmem:[%s2118_s1 + $0x118] sm:$0xff]   ;;  %v1632_v52 = vld [vmem:[%s2118_s1 + $0x160] sm:$0xff]  }
  0x12   :  { %1454 = vmatprep.subr.bf16.mxu1 %v1596_v18  ;;  %v1630_v50 = vld [vmem:[%s2118_s1 + $0x1d8] sm:$0xff]   ;;  %v1633_v53 = vld [vmem:[%s2118_s1 + $0x120] sm:$0xff]   ;;  %v1636_v56 = vld [vmem:[%s2118_s1 + $0x168] sm:$0xff]  }
  0x13   :  { %1433 = vmatpush3.bf16.msra.mxu0 %v1595_v17  ;;  %v1631_v51 = vld [vmem:[%s2118_s1 + $0x198] sm:$0xff]   ;;  %v1634_v54 = vld [vmem:[%s2118_s1 + $0x1e0] sm:$0xff]   ;;  %v1637_v57 = vld [vmem:[%s2118_s1 + $0x128] sm:$0xff]  }
  0x14   :  { %1434 = vmatprep.subr.bf16.mxu0 %v1598_v20  ;;  %v1635_v55 = vld [vmem:[%s2118_s1 + $0x1a0] sm:$0xff]   ;;  %v1638_v58 = vld [vmem:[%s2118_s1 + $0x1e8] sm:$0xff]   ;;  %v1640_v60 = vld [vmem:[%s2118_s1 + $0x170] sm:$0xff]  }
  0x15   :  { %1455 = vmatpush3.bf16.msra.mxu1 %v1597_v19  ;;  %v1639_v59 = vld [vmem:[%s2118_s1 + $0x1a8] sm:$0xff]   ;;  %v1641_v61 = vld [vmem:[%s2118_s1 + $0x130] sm:$0xff]   ;;  %v1644_v0 = vld [vmem:[%s2118_s1 + $0x178] sm:$0xff]  }
  0x16   :  { %1456 = vmatprep.subr.bf16.mxu1 %v1600_v22  ;;  %v1642_v62 = vld [vmem:[%s2118_s1 + $0x1f0] sm:$0xff]   ;;  %v1645_v1 = vld [vmem:[%s2118_s1 + $0x138] sm:$0xff]   ;;  %v1651_v6 = vld [vmem:[%s2118_s1 + $0x240] sm:$0xff]  }
  0x17   :  { %1435 = vmatpush3.bf16.msra.mxu0 %v1599_v21  ;;  %v1643_v63 = vld [vmem:[%s2118_s1 + $0x1b0] sm:$0xff]   ;;  %v1646_v2 = vld [vmem:[%s2118_s1 + $0x1f8] sm:$0xff]   ;;  %v1655_v9 = vld [vmem:[%s2118_s1 + $0x200] sm:$0xff]  }
  0x18   :  { %1436 = vmatprep.subr.bf16.mxu0 %v1602_v24  ;;  %v1647_v3 = vld [vmem:[%s2119_s0 + $0x10] ss:$56 sps:$4 sm:$0xff]   ;;  %v1649_v4 = vld [vmem:[%s2119_s0 + $0x14] ss:$56 sps:$4 sm:$0xff]   ;;  %v1650_v5 = vld [vmem:[%s2118_s1 + $0x1b8] sm:$0xff]  }
  0x19   :  { %1457 = vmatpush3.bf16.msra.mxu1 %v1601_v23  ;;  %v1652_v7 = vld [vmem:[%s2119_s0 + $0x18] ss:$56 sps:$4 sm:$0xff]   ;;  %v1654_v8 = vld [vmem:[%s2119_s0 + $0x1c] ss:$56 sps:$4 sm:$0xff]   ;;  %v1656_v10 = vld [vmem:[%s2118_s1 + $0x2c0] sm:$0xff]  }
  0x1a   :  { %1458 = vmatprep.subr.bf16.mxu1 %v1604_v26  ;;  %v1657_v11 = vld [vmem:[%s2118_s1 + $0x280] sm:$0xff]   ;;  %v1658_v12 = vld [vmem:[%s2118_s1 + $0x248] sm:$0xff]   ;;  %v1662_v16 = vld [vmem:[%s2118_s1 + $0x250] sm:$0xff]  }
  0x1b   :  { %1437 = vmatpush3.bf16.msra.mxu0 %v1603_v25  ;;  %v1659_v13 = vld [vmem:[%s2118_s1 + $0x208] sm:$0xff]   ;;  %v1663_v17 = vld [vmem:[%s2118_s1 + $0x210] sm:$0xff]   ;;  %v1666_v20 = vld [vmem:[%s2118_s1 + $0x258] sm:$0xff]  }
  0x1c   :  { %1438 = vmatprep.subr.bf16.mxu0 %v1606_v28  ;;  %v1660_v14 = vld [vmem:[%s2118_s1 + $0x2c8] sm:$0xff]   ;;  %v1664_v18 = vld [vmem:[%s2118_s1 + $0x2d0] sm:$0xff]   ;;  %v1667_v21 = vld [vmem:[%s2118_s1 + $0x218] sm:$0xff]  }
  0x1d   :  { %1459 = vmatpush3.bf16.msra.mxu1 %v1605_v27  ;;  %v1661_v15 = vld [vmem:[%s2118_s1 + $0x288] sm:$0xff]   ;;  %v1665_v19 = vld [vmem:[%s2118_s1 + $0x290] sm:$0xff]   ;;  %v1668_v22 = vld [vmem:[%s2118_s1 + $0x2d8] sm:$0xff]  }
  0x1e   :  { %1460 = vmatprep.subr.bf16.mxu1 %v1608_v30  ;;  %v1669_v23 = vld [vmem:[%s2118_s1 + $0x298] sm:$0xff]   ;;  %v1670_v24 = vld [vmem:[%s2118_s1 + $0x260] sm:$0xff]   ;;  %v1674_v28 = vld [vmem:[%s2118_s1 + $0x268] sm:$0xff]  }
  0x1f   :  { %1439 = vmatpush3.bf16.msra.mxu0 %v1607_v29  ;;  %v1671_v25 = vld [vmem:[%s2118_s1 + $0x220] sm:$0xff]   ;;  %v1675_v29 = vld [vmem:[%s2118_s1 + $0x228] sm:$0xff]   ;;  %v1678_v32 = vld [vmem:[%s2118_s1 + $0x270] sm:$0xff]  }
  0x20   :  { %1468 = vmatprep.subr.bf16.mxu0 %v1613_v34  ;;  %v1672_v26 = vld [vmem:[%s2118_s1 + $0x2e0] sm:$0xff]   ;;  %v1676_v30 = vld [vmem:[%s2118_s1 + $0x2e8] sm:$0xff]   ;;  %v1680_v34 = vld [vmem:[%s2118_s1 + $0x2f0] sm:$0xff]  }
  0x21   :  { %1461 = vmatpush3.bf16.msra.mxu1 %v1612_v33  ;;  %v1673_v27 = vld [vmem:[%s2118_s1 + $0x2a0] sm:$0xff]   ;;  %v1679_v33 = vld [vmem:[%s2118_s1 + $0x230] sm:$0xff]   ;;  %v1682_v36 = vld [vmem:[%s2118_s1 + $0x278] sm:$0xff]  }
  0x22   :  { %1035 = vmatmul.mubr.bf16.vlgmr.msra.gmra.mrb[0].mxu0 %v1609_v31  ;;  %1490 = vmatprep.subr.bf16.mxu1 %v1618_v38  ;;  %v1677_v31 = vld [vmem:[%s2118_s1 + $0x2a8] sm:$0xff]   ;;  %v1684_v38 = vld [vmem:[%s2118_s1 + $0x2f8] sm:$0xff]  }
  0x23   :  { %1469 = vmatpush3.bf16.msra.mxu0 %v1617_v37  ;;  %1116 = vmatprep.mubr.bf16.mxu0 %v1649_v4  ;;  %v1683_v37 = vld [vmem:[%s2118_s1 + $0x238] sm:$0xff]  }
  0x24   :  { %1076 = vmatmul.mubr.bf16.vlgmr.msra.gmra.mrb[0].mxu1 %v1614_v35  ;;  %1470 = vmatprep.subr.bf16.mxu0 %v1620_v40  ;;  %v1681_v35 = vld [vmem:[%s2118_s1 + $0x2b0] sm:$0xff]   ;;  %v1687_v40 = vld [vmem:[%s2119_s0 + $0x24] ss:$56 sps:$4 sm:$0xff]  }
  0x25   :  { %1491 = vmatpush3.bf16.msra.mxu1 %v1619_v39  ;;  %1157 = vmatprep.mubr.bf16.mxu1 %v1654_v8  ;;  %v1685_v39 = vld [vmem:[%s2119_s0 + $0x20] ss:$56 sps:$4 sm:$0xff]  }
  0x26   :  { %1492 = vmatprep.subr.bf16.mxu1 %v1622_v42  ;;  %v1689_v42 = vld [vmem:[%s2118_s1 + $0x340] sm:$0xff]  }
  0x27   :  { %1471 = vmatpush3.bf16.msra.mxu0 %v1621_v41  ;;  %v1688_v41 = vld [vmem:[%s2118_s1 + $0x2b8] sm:$0xff]  }
  0x28   :  { %1472 = vmatprep.subr.bf16.mxu0 %v1624_v44  ;;  %v1692_v44 = vld [vmem:[%s2119_s0 + $0x2c] ss:$56 sps:$4 sm:$0xff]  }
  0x29   :  { %1493 = vmatpush3.bf16.msra.mxu1 %v1623_v43  ;;  %v1690_v43 = vld [vmem:[%s2119_s0 + $0x28] ss:$56 sps:$4 sm:$0xff]  }
  0x2a   :  { %1494 = vmatprep.subr.bf16.mxu1 %v1626_v46  ;;  %v1694_v46 = vld [vmem:[%s2118_s1 + $0x348] sm:$0xff]  }
  0x2b   :  { %1473 = vmatpush3.bf16.msra.mxu0 %v1625_v45  ;;  %v1693_v45 = vld [vmem:[%s2118_s1 + $0x300] sm:$0xff]  }
  0x2c   :  { %1474 = vmatprep.subr.bf16.mxu0 %v1628_v48  ;;  %v1696_v48 = vld [vmem:[%s2118_s1 + $0x350] sm:$0xff]  }
  0x2d   :  { %1495 = vmatpush3.bf16.msra.mxu1 %v1627_v47  ;;  %v1695_v47 = vld [vmem:[%s2118_s1 + $0x308] sm:$0xff]  }
  0x2e   :  { %1496 = vmatprep.subr.bf16.mxu1 %v1630_v50  ;;  %v1698_v50 = vld [vmem:[%s2118_s1 + $0x358] sm:$0xff]  }
  0x2f   :  { %1475 = vmatpush3.bf16.msra.mxu0 %v1629_v49  ;;  %v1697_v49 = vld [vmem:[%s2118_s1 + $0x310] sm:$0xff]  }
  0x30   :  { %1476 = vmatprep.subr.bf16.mxu0 %v1632_v52  ;;  %v1700_v52 = vld [vmem:[%s2118_s1 + $0x360] sm:$0xff]  }
  0x31   :  { %1497 = vmatpush3.bf16.msra.mxu1 %v1631_v51  ;;  %v1699_v51 = vld [vmem:[%s2118_s1 + $0x318] sm:$0xff]  }
  0x32   :  { %1498 = vmatprep.subr.bf16.mxu1 %v1634_v54  ;;  %v1702_v54 = vld [vmem:[%s2118_s1 + $0x368] sm:$0xff]  }
  0x33   :  { %1477 = vmatpush3.bf16.msra.mxu0 %v1633_v53  ;;  %v1701_v53 = vld [vmem:[%s2118_s1 + $0x320] sm:$0xff]  }
  0x34   :  { %1478 = vmatprep.subr.bf16.mxu0 %v1636_v56  ;;  %v1703_v56 = vld [vmem:[%s2118_s1 + $0x328] sm:$0xff]  }
  0x35   :  { %1499 = vmatpush3.bf16.msra.mxu1 %v1635_v55  ;;  %v1710_v55 = vld [vmem:[%s2119_s0 + $0x34] ss:$56 sps:$4 sm:$0xff]  }
  0x36   :  { %1500 = vmatprep.subr.bf16.mxu1 %v1638_v58  ;;  %v1705_v58 = vld [vmem:[%s2118_s1 + $0x330] sm:$0xff]  }
  0x37   :  { %1479 = vmatpush3.bf16.msra.mxu0 %v1637_v57  ;;  %v1704_v57 = vld [vmem:[%s2118_s1 + $0x370] sm:$0xff]  }
  0x38   :  { %1480 = vmatprep.subr.bf16.mxu0 %v1640_v60  ;;  %v1707_v60 = vld [vmem:[%s2118_s1 + $0x338] sm:$0xff]  }
  0x39   :  { %1501 = vmatpush3.bf16.msra.mxu1 %v1639_v59  ;;  %v1706_v59 = vld [vmem:[%s2118_s1 + $0x378] sm:$0xff]  }
  0x3a   :  { %1502 = vmatprep.subr.bf16.mxu1 %v1642_v62 }
  0x3b   :  { %1481 = vmatpush3.bf16.msra.mxu0 %v1641_v61  ;;  %v1708_v61 = vld [vmem:[%s2119_s0 + $0x30] ss:$56 sps:$4 sm:$0xff]  }
  0x3c   :  { %1482 = vmatprep.subr.bf16.mxu0 %v1644_v0 }
  0x3d   :  { %1503 = vmatpush3.bf16.msra.mxu1 %v1643_v63  ;;  %v1297_v63 = vld [vmem:[%s2120_s2] ss:$0 sm:$0xff] }
  0x3e   :  { %1504 = vmatprep.subr.bf16.mxu1 %v1646_v2 }
  0x3f   :  { %1483 = vmatpush3.bf16.msra.mxu0 %v1645_v1 }
  0x40   :  { %1512 = vmatprep.subr.bf16.mxu0 %v1651_v6 }
  0x41   :  { %1505 = vmatpush3.bf16.msra.mxu1 %v1650_v5 }
  0x42   :  { %1117 = vmatmul.mubr.bf16.vlgmr.msra.gmra.mrb[4].mxu0 %v1647_v3  ;;  %1534 = vmatprep.subr.bf16.mxu1 %v1656_v10 }
  0x43   :  { %1513 = vmatpush3.bf16.msra.mxu0 %v1655_v9  ;;  %1198 = vmatprep.mubr.bf16.mxu0 %v1687_v40 }
  0x44   :  { %1158 = vmatmul.mubr.bf16.vlgmr.msra.gmra.mrb[4].mxu1 %v1652_v7  ;;  %1514 = vmatprep.subr.bf16.mxu0 %v1658_v12 }
  0x45   :  { %1535 = vmatpush3.bf16.msra.mxu1 %v1657_v11  ;;  %1239 = vmatprep.mubr.bf16.mxu1 %v1692_v44 }
  0x46   :  { %1536 = vmatprep.subr.bf16.mxu1 %v1660_v14 }
  0x47   :  { %1515 = vmatpush3.bf16.msra.mxu0 %v1659_v13 }
  0x48   :  { %1516 = vmatprep.subr.bf16.mxu0 %v1662_v16 }
  0x49   :  { %1537 = vmatpush3.bf16.msra.mxu1 %v1661_v15 }
  0x4a   :  { %1538 = vmatprep.subr.bf16.mxu1 %v1664_v18 }
  0x4b   :  { %1517 = vmatpush3.bf16.msra.mxu0 %v1663_v17 }
  0x4c   :  { %1518 = vmatprep.subr.bf16.mxu0 %v1666_v20 }
  0x4d   :  { %1539 = vmatpush3.bf16.msra.mxu1 %v1665_v19 }
  0x4e   :  { %1540 = vmatprep.subr.bf16.mxu1 %v1668_v22 }
  0x4f   :  { %1519 = vmatpush3.bf16.msra.mxu0 %v1667_v21 }
  0x50   :  { %1520 = vmatprep.subr.bf16.mxu0 %v1670_v24 }
  0x51   :  { %1541 = vmatpush3.bf16.msra.mxu1 %v1669_v23 }
  0x52   :  { %1542 = vmatprep.subr.bf16.mxu1 %v1672_v26 }
  0x53   :  { %1521 = vmatpush3.bf16.msra.mxu0 %v1671_v25 }
  0x54   :  { %1522 = vmatprep.subr.bf16.mxu0 %v1674_v28 }
  0x55   :  { %1543 = vmatpush3.bf16.msra.mxu1 %v1673_v27 }
  0x56   :  { %1544 = vmatprep.subr.bf16.mxu1 %v1676_v30 }
  0x57   :  { %1523 = vmatpush3.bf16.msra.mxu0 %v1675_v29 }
  0x58   :  { %1524 = vmatprep.subr.bf16.mxu0 %v1678_v32 }
  0x59   :  { %1545 = vmatpush3.bf16.msra.mxu1 %v1677_v31 }
  0x5a   :  { %1546 = vmatprep.subr.bf16.mxu1 %v1680_v34 }
  0x5b   :  { %1525 = vmatpush3.bf16.msra.mxu0 %v1679_v33 }
  0x5c   :  { %1526 = vmatprep.subr.bf16.mxu0 %v1682_v36 }
  0x5d   :  { %1547 = vmatpush3.bf16.msra.mxu1 %v1681_v35 }
  0x5e   :  { %1548 = vmatprep.subr.bf16.mxu1 %v1684_v38 }
  0x5f   :  { %1527 = vmatpush3.bf16.msra.mxu0 %v1683_v37 }
  0x60   :  { %1556 = vmatprep.subr.bf16.mxu0 %v1689_v42 }
  0x61   :  { %1549 = vmatpush3.bf16.msra.mxu1 %v1688_v41 }
  0x62   :  { %1199 = vmatmul.mubr.bf16.vlgmr.msra.gmra.mrb[8].mxu0 %v1685_v39 }
  0x63   :  { %1557 = vmatpush3.bf16.msra.mxu0 %v1693_v45  ;;  %1280 = vmatprep.mubr.bf16.mxu0 %v1710_v55 }
  0x64   :  { %1240 = vmatmul.mubr.bf16.vlgmr.msra.gmra.mrb[8].mxu1 %v1690_v43  ;;  %1558 = vmatprep.subr.bf16.mxu0 %v1694_v46 }
  0x67   :  { %1559 = vmatpush3.bf16.msra.mxu0 %v1695_v47 }
  0x68   :  { %1560 = vmatprep.subr.bf16.mxu0 %v1696_v48 }
  0x6b   :  { %1561 = vmatpush3.bf16.msra.mxu0 %v1697_v49 }
  0x6c   :  { %1562 = vmatprep.subr.bf16.mxu0 %v1698_v50 }
  0x6f   :  { %1563 = vmatpush3.bf16.msra.mxu0 %v1699_v51 }
  0x70   :  { %1564 = vmatprep.subr.bf16.mxu0 %v1700_v52 }
  0x73   :  { %1565 = vmatpush3.bf16.msra.mxu0 %v1701_v53 }
  0x74   :  { %1566 = vmatprep.subr.bf16.mxu0 %v1702_v54 }
  0x77   :  { %1567 = vmatpush3.bf16.msra.mxu0 %v1703_v56 }
  0x78   :  { %1568 = vmatprep.subr.bf16.mxu0 %v1704_v57 }
  0x7b   :  { %1569 = vmatpush3.bf16.msra.mxu0 %v1705_v58 }
  0x7c   :  { %1570 = vmatprep.subr.bf16.mxu0 %v1706_v59 }
  0x7f   :  { %1571 = vmatpush3.bf16.msra.mxu0 %v1707_v60 }
  0x82   :  { %1281 = vmatmul.mubr.bf16.vlgmr.msra.gmra.mrb[12].mxu0 %v1708_v61 }
  0xf5   :  { %v1440_v62 = vpop.f32.mrb[0].mxu0 }
  0xf6   :  { %v1441_v0 = vpop.f32.mrb[1].mxu0 }
  0xf7   :  { %v1442_v1 = vadd.f32 %v1441_v0, %v1440_v62  ;;  %v1443_v2 = vpop.f32.mrb[2].mxu0  ;;  %v1462_v3 = vpop.f32.mrb[0].mxu1 }
  0xf8   :  { %v1444_v4 = vpop.f32.mrb[3].mxu0  ;;  %v1463_v7 = vpop.f32.mrb[1].mxu1 }
  0xf9   :  { %v1037_v5 = vadd.f32 %v1442_v1, %v1297_v63  ;;  %v1445_v6 = vadd.f32 %v1444_v4, %v1443_v2  ;;  %v1464_v8 = vadd.f32 %v1463_v7, %v1462_v3  ;;  %v1465_v9 = vpop.f32.mrb[2].mxu1 }
  0xfa   :  { %v1466_v11 = vpop.f32.mrb[3].mxu1 }
  0xfb   :  { %v1040_v10 = vadd.f32 %v1445_v6, %v1297_v63  ;;  %v1078_v12 = vadd.f32 %v1464_v8, %v1037_v5  ;;  %v1467_v13 = vadd.f32 %v1466_v11, %v1465_v9 }
  0xfd   :  { %v1081_v14 = vadd.f32 %v1467_v13, %v1040_v10 }
 0x115   :  { %v1484_v15 = vpop.f32.mrb[4].mxu0 }
 0x116   :  { %v1485_v16 = vpop.f32.mrb[5].mxu0 }
 0x117   :  { %v1486_v17 = vadd.f32 %v1485_v16, %v1484_v15  ;;  %v1487_v18 = vpop.f32.mrb[6].mxu0  ;;  %v1506_v21 = vpop.f32.mrb[4].mxu1 }
 0x118   :  { %v1488_v19 = vpop.f32.mrb[7].mxu0  ;;  %v1507_v23 = vpop.f32.mrb[5].mxu1 }
 0x119   :  { %v1119_v20 = vadd.f32 %v1486_v17, %v1078_v12  ;;  %v1489_v22 = vadd.f32 %v1488_v19, %v1487_v18  ;;  %v1508_v25 = vadd.f32 %v1507_v23, %v1506_v21  ;;  %v1509_v26 = vpop.f32.mrb[6].mxu1 }
 0x11a   :  { %v1510_v27 = vpop.f32.mrb[7].mxu1 }
 0x11b   :  { %v1122_v24 = vadd.f32 %v1489_v22, %v1081_v14  ;;  %v1160_v28 = vadd.f32 %v1508_v25, %v1119_v20  ;;  %v1511_v29 = vadd.f32 %v1510_v27, %v1509_v26 }
 0x11d   :  { %v1163_v30 = vadd.f32 %v1511_v29, %v1122_v24 }
 0x135   :  { %v1528_v31 = vpop.f32.mrb[8].mxu0 }
 0x136   :  { %v1529_v32 = vpop.f32.mrb[9].mxu0 }
 0x137   :  { %v1530_v33 = vadd.f32 %v1529_v32, %v1528_v31  ;;  %v1531_v34 = vpop.f32.mrb[10].mxu0  ;;  %v1550_v35 = vpop.f32.mrb[8].mxu1 }
 0x138   :  { %v1532_v36 = vpop.f32.mrb[11].mxu0  ;;  %v1551_v39 = vpop.f32.mrb[9].mxu1 }
 0x139   :  { %v1201_v37 = vadd.f32 %v1530_v33, %v1160_v28  ;;  %v1533_v38 = vadd.f32 %v1532_v36, %v1531_v34  ;;  %v1552_v40 = vadd.f32 %v1551_v39, %v1550_v35  ;;  %v1553_v41 = vpop.f32.mrb[10].mxu1 }
 0x13a   :  { %v1554_v43 = vpop.f32.mrb[11].mxu1 }
 0x13b   :  { %v1204_v42 = vadd.f32 %v1533_v38, %v1163_v30  ;;  %v1242_v44 = vadd.f32 %v1552_v40, %v1201_v37  ;;  %v1555_v45 = vadd.f32 %v1554_v43, %v1553_v41 }
 0x13d   :  { %v1245_v46 = vadd.f32 %v1555_v45, %v1204_v42 }
 0x155   :  { %v1572_v47 = vpop.f32.mrb[12].mxu0 }
 0x156   :  { %v1573_v48 = vpop.f32.mrb[13].mxu0 }
 0x157   :  { %v1574_v49 = vadd.f32 %v1573_v48, %v1572_v47  ;;  %v1575_v50 = vpop.f32.mrb[14].mxu0 }
 0x158   :  { %v1576_v51 = vpop.f32.mrb[15].mxu0 }
 0x159   :  { %v1283_v52 = vadd.f32 %v1574_v49, %v1242_v44  ;;  %v1577_v53 = vadd.f32 %v1576_v51, %v1575_v50 }
 0x15b   :  { %v1289_v54 = vmax.f32 %v1283_v52, 0.0  ;;  %v1286_v55 = vadd.f32 %v1577_v53, %v1245_v46 }
 0x15d   :  { %1291 = vst [vmem:[%s2121_s3] sm:$0xff] %v1289_v54  ;;  %v1290_v56 = vmax.f32 %v1286_v55, 0.0 }
 0x15f   :  { %1292 = vst [vmem:[%s2121_s3 + $0x8] sm:$0xff] %v1290_v56 }

// kernel: transformer_forward.24
= control target key start
LH: loop header
LB: loop body
LE: loop exit
PB: predicated region body
PF: predicated region fallthrough
CT: control target
= control target key end

     0   :  { %v193_v0 = vmov 0.0   ;;  %vm194_vm0 = vmmov 0   ;;  %s251_s1 = inlined_call_operand.vmem [shape: bf16[128,128], index: 1, kind: input, shape index: {}]   ;;  %s252_s0 = inlined_call_operand.vmem [shape: bf16[16,128], index: 0, kind: input, shape index: {}]   ;;  %s253_s2 = inlined_call_operand.vmem [shape: f32[1,128], index: 2, kind: input, shape index: {}]   ;;  %s254_s3 = inlined_call_operand.vmem [shape: f32[16,128], index: 3, kind: output, shape index: {}]  }
   0x1   :  { %162 = vmatprep.subr.bf16.mxu0 %v193_v0  ;;  %v184_v1 = vld [vmem:[%s251_s1] sm:$0xff]   ;;  %178 = vmatprep.mubr.msk.bf16.mxu0 %vm194_vm0, %v193_v0  ;;  %v185_v2 = vld [vmem:[%s251_s1 + $0x8] sm:$0xff]   ;;  %v186_v3 = vld [vmem:[%s251_s1 + $0x10] sm:$0xff]  }
   0x2   :  { %163 = vmatpush3.bf16.msra.mxu0 %v184_v1  ;;  %v187_v4 = vld [vmem:[%s251_s1 + $0x18] sm:$0xff]   ;;  %v188_v5 = vld [vmem:[%s251_s1 + $0x20] sm:$0xff]   ;;  %v189_v6 = vld [vmem:[%s251_s1 + $0x28] sm:$0xff]  }
   0x3   :  { %164 = vmatprep.subr.bf16.mxu0 %v193_v0  ;;  %v190_v7 = vld [vmem:[%s251_s1 + $0x30] sm:$0xff]   ;;  %v191_v8 = vld [vmem:[%s251_s1 + $0x38] sm:$0xff]   ;;  %v192_v9 = vld [vmem:[%s252_s0] sm:$0xff]  }
   0x4   :  { %v143_v10 = vld [vmem:[%s253_s2] ss:$0 sm:$0xff] }
   0x6   :  { %165 = vmatpush3.bf16.msra.mxu0 %v185_v2 }
   0x7   :  { %166 = vmatprep.subr.bf16.mxu0 %v193_v0 }
   0xa   :  { %167 = vmatpush3.bf16.msra.mxu0 %v186_v3 }
   0xb   :  { %168 = vmatprep.subr.bf16.mxu0 %v193_v0 }
   0xe   :  { %169 = vmatpush3.bf16.msra.mxu0 %v187_v4 }
   0xf   :  { %170 = vmatprep.subr.bf16.mxu0 %v193_v0 }
  0x12   :  { %171 = vmatpush3.bf16.msra.mxu0 %v188_v5 }
  0x13   :  { %172 = vmatprep.subr.bf16.mxu0 %v193_v0 }
  0x16   :  { %173 = vmatpush3.bf16.msra.mxu0 %v189_v6 }
  0x17   :  { %174 = vmatprep.subr.bf16.mxu0 %v193_v0 }
  0x1a   :  { %175 = vmatpush3.bf16.msra.mxu0 %v190_v7 }
  0x1b   :  { %176 = vmatprep.subr.bf16.mxu0 %v193_v0 }
  0x1e   :  { %177 = vmatpush3.bf16.msra.mxu0 %v191_v8 }
  0x21   :  { %179 = vmatmul.mubr.bf16.vlgmr.msra.gmra.mrb[0].mxu0 %v192_v9 }
  0xf4   :  { %v128_v11 = vpop.f32.mrb[0].mxu0 }
  0xf5   :  { %v129_v12 = vadd.f32 %v143_v10, %v128_v11  ;;  %v180_v13 = vpop.f32.mrb[1].mxu0 }
  0xf6   :  { %v131_v14 = vpop.f32.mrb[2].mxu0 }
  0xf7   :  { %v135_v15 = vmax.f32 %v129_v12, 0.0  ;;  %v132_v16 = vadd.f32 %v143_v10, %v131_v14  ;;  %v181_v17 = vpop.f32.mrb[3].mxu0 }
  0xf9   :  { %137 = vst [vmem:[%s254_s3] sm:$0xff] %v135_v15  ;;  %v136_v18 = vmax.f32 %v132_v16, 0.0 }
  0xfb   :  { %138 = vst [vmem:[%s254_s3 + $0x8] sm:$0xff] %v136_v18 }

// kernel: transformer_forward.27
= control target key start
LH: loop header
LB: loop body
LE: loop exit
PB: predicated region body
PF: predicated region fallthrough
CT: control target
= control target key end

     0   :  { %v384_v0 = vmov 0.0   ;;  %vm385_vm0 = vmmov 0   ;;  %v386_v3 = vmov 0   ;;  %v51_v27 = vlaneseq  ;;  %s503_s1 = inlined_call_operand.vmem [shape: bf16[128,384], index: 1, kind: input, shape index: {}]   ;;  %s504_s0 = inlined_call_operand.vmem [shape: bf16[16,128], index: 0, kind: input, shape index: {}]   ;;  %s505_s2 = inlined_call_operand.vmem [shape: f32[1,384], index: 2, kind: input, shape index: {}]   ;;  %s506_s3 = inlined_call_operand.vmem [shape: f32[16,384], index: 3, kind: output, shape index: {}]  }
   0x1   :  { %328 = vmatprep.subr.bf16.mxu1 %v384_v0  ;;  %v351_v1 = vld [vmem:[%s503_s1 + $0x4] ss:$12 sps:$4 sm:$0xff]   ;;  %344 = vmatprep.mubr.msk.bf16.mxu1 %vm385_vm0, %v384_v0  ;;  %v353_v2 = vld [vmem:[%s503_s1 + $0x8] ss:$12 sps:$4 sm:$0xff]   ;;  %v354_v4 = vld [vmem:[%s503_s1] ss:$12 sps:$4 sm:$0xff]  }
   0x2   :  { %232 = vmatprep.mubr.bf16.mxu0 %v386_v3  ;;  %200 = vmatprep.subr.bf16.mxu0 %v351_v1  ;;  %v355_v5 = vld [vmem:[%s503_s1 + $0x1c] ss:$12 sps:$4 sm:$0xff]   ;;  %v357_v6 = vld [vmem:[%s503_s1 + $0x20] ss:$12 sps:$4 sm:$0xff]   ;;  %v358_v7 = vld [vmem:[%s503_s1 + $0x18] ss:$12 sps:$4 sm:$0xff]  }
   0x3   :  { %329 = vmatpush3.bf16.msra.mxu1 %v353_v2  ;;  %201 = vmatpush1.bf16.msra.mxu0 %v354_v4  ;;  %v359_v8 = vld [vmem:[%s503_s1 + $0x34] ss:$12 sps:$4 sm:$0xff]   ;;  %v361_v9 = vld [vmem:[%s503_s1 + $0x38] ss:$12 sps:$4 sm:$0xff]   ;;  %v362_v10 = vld [vmem:[%s503_s1 + $0x30] ss:$12 sps:$4 sm:$0xff]  }
   0x4   :  { %330 = vmatprep.subr.bf16.mxu1 %v384_v0  ;;  %202 = vmatprep.subr.bf16.mxu0 %v355_v5  ;;  %v363_v11 = vld [vmem:[%s503_s1 + $0x4c] ss:$12 sps:$4 sm:$0xff]   ;;  %v365_v12 = vld [vmem:[%s503_s1 + $0x50] ss:$12 sps:$4 sm:$0xff]   ;;  %v366_v13 = vld [vmem:[%s503_s1 + $0x48] ss:$12 sps:$4 sm:$0xff]  }
   0x5   :  { %v367_v14 = vld [vmem:[%s503_s1 + $0x64] ss:$12 sps:$4 sm:$0xff]   ;;  %v369_v15 = vld [vmem:[%s503_s1 + $0x68] ss:$12 sps:$4 sm:$0xff]   ;;  %v370_v16 = vld [vmem:[%s503_s1 + $0x60] ss:$12 sps:$4 sm:$0xff]  }
   0x6   :  { %v371_v17 = vld [vmem:[%s503_s1 + $0x7c] ss:$12 sps:$4 sm:$0xff]   ;;  %v373_v18 = vld [vmem:[%s503_s1 + $0x80] ss:$12 sps:$4 sm:$0xff]   ;;  %v374_v19 = vld [vmem:[%s503_s1 + $0x78] ss:$12 sps:$4 sm:$0xff]  }
   0x7   :  { %331 = vmatpush3.bf16.msra.mxu1 %v357_v6  ;;  %203 = vmatpush1.bf16.msra.mxu0 %v358_v7  ;;  %v375_v20 = vld [vmem:[%s503_s1 + $0x94] ss:$12 sps:$4 sm:$0xff]   ;;  %v377_v21 = vld [vmem:[%s503_s1 + $0x98] ss:$12 sps:$4 sm:$0xff]   ;;  %v378_v22 = vld [vmem:[%s503_s1 + $0x90] ss:$12 sps:$4 sm:$0xff]  }
   0x8   :  { %332 = vmatprep.subr.bf16.mxu1 %v384_v0  ;;  %204 = vmatprep.subr.bf16.mxu0 %v359_v8  ;;  %v379_v23 = vld [vmem:[%s503_s1 + $0xac] ss:$12 sps:$4 sm:$0xff]   ;;  %v381_v24 = vld [vmem:[%s503_s1 + $0xb0] ss:$12 sps:$4 sm:$0xff]   ;;  %v382_v25 = vld [vmem:[%s503_s1 + $0xa8] ss:$12 sps:$4 sm:$0xff]  }
   0x9   :  { %v383_v26 = vld [vmem:[%s504_s0] sm:$0xff]   ;;  %v52_v28 = vshrl.u32 %v51_v27, 7 }
   0xa   :  { %v49_v30 = vld [vmem:[%s505_s2] sm:$0x7] }
   0xb   :  { %333 = vmatpush3.bf16.msra.mxu1 %v361_v9  ;;  %205 = vmatpush1.bf16.msra.mxu0 %v362_v10  ;;  %v61_v29 = vsub.s32 2, %v52_v28  ;;  %v53_v31 = vsub.s32 0, %v52_v28  ;;  %v57_v32 = vsub.s32 1, %v52_v28 }
   0xc   :  { %334 = vmatprep.subr.bf16.mxu1 %v384_v0  ;;  %206 = vmatprep.subr.bf16.mxu0 %v363_v11 }
   0xd   :  { %v62_v33 = vrot.slane %v49_v30, %v61_v29  ;;  %v54_v34 = vrot.slane %v49_v30, %v53_v31  ;;  %v58_v35 = vrot.slane %v49_v30, %v57_v32 }
   0xf   :  { %335 = vmatpush3.bf16.msra.mxu1 %v365_v12  ;;  %207 = vmatpush1.bf16.msra.mxu0 %v366_v13 }
  0x10   :  { %336 = vmatprep.subr.bf16.mxu1 %v384_v0  ;;  %208 = vmatprep.subr.bf16.mxu0 %v367_v14 }
  0x13   :  { %337 = vmatpush3.bf16.msra.mxu1 %v369_v15  ;;  %209 = vmatpush1.bf16.msra.mxu0 %v370_v16 }
  0x14   :  { %338 = vmatprep.subr.bf16.mxu1 %v384_v0  ;;  %210 = vmatprep.subr.bf16.mxu0 %v371_v17 }
  0x17   :  { %339 = vmatpush3.bf16.msra.mxu1 %v373_v18  ;;  %211 = vmatpush1.bf16.msra.mxu0 %v374_v19 }
  0x18   :  { %340 = vmatprep.subr.bf16.mxu1 %v384_v0  ;;  %212 = vmatprep.subr.bf16.mxu0 %v375_v20 }
  0x1b   :  { %341 = vmatpush3.bf16.msra.mxu1 %v377_v21  ;;  %213 = vmatpush1.bf16.msra.mxu0 %v378_v22 }
  0x1c   :  { %342 = vmatprep.subr.bf16.mxu1 %v384_v0  ;;  %214 = vmatprep.subr.bf16.mxu0 %v379_v23 }
  0x1f   :  { %343 = vmatpush3.bf16.msra.mxu1 %v381_v24  ;;  %215 = vmatpush1.bf16.msra.mxu0 %v382_v25 }
  0x22   :  { %345 = vmatmul.mubr.bf16.vlgmr.msra.gmra.mrb[0].mxu1 %v383_v26  ;;  %233 = vmatmul.mubr.bf16.vlgmr.msra.gmra.mrb[0].mxu0 %v383_v26 }
  0xf5   :  { %v277_v36 = vpop.f32.mrb[0].mxu1  ;;  %v234_v38 = vpop.f32.mrb[0].mxu0 }
  0xf6   :  { %v278_v37 = vadd.f32 %v277_v36, %v62_v33  ;;  %v346_v39 = vpop.f32.mrb[1].mxu1  ;;  %v235_v40 = vadd.f32 %v234_v38, %v54_v34  ;;  %v236_v41 = vpop.f32.mrb[1].mxu0 }
  0xf7   :  { %v280_v42 = vpop.f32.mrb[2].mxu1  ;;  %v237_v43 = vadd.f32 %v236_v41, %v58_v35  ;;  %v238_v45 = vpop.f32.mrb[2].mxu0 }
  0xf8   :  { %286 = vst [vmem:[%s506_s3 + $0x10] sm:$0xff] %v278_v37  ;;  %v281_v44 = vadd.f32 %v280_v42, %v62_v33  ;;  %v347_v46 = vpop.f32.mrb[3].mxu1  ;;  %284 = vst [vmem:[%s506_s3] sm:$0xff] %v235_v40  ;;  %v239_v47 = vadd.f32 %v238_v45, %v54_v34  ;;  %v240_v48 = vpop.f32.mrb[3].mxu0 }
  0xf9   :  { %285 = vst [vmem:[%s506_s3 + $0x8] sm:$0xff] %v237_v43  ;;  %v241_v49 = vadd.f32 %v240_v48, %v58_v35 }
  0xfa   :  { %289 = vst [vmem:[%s506_s3 + $0x28] sm:$0xff] %v281_v44  ;;  %287 = vst [vmem:[%s506_s3 + $0x18] sm:$0xff] %v239_v47 }
  0xfb   :  { %288 = vst [vmem:[%s506_s3 + $0x20] sm:$0xff] %v241_v49 }

// kernel: transformer_forward.23
= control target key start
LH: loop header
LB: loop body
LE: loop exit
PB: predicated region body
PF: predicated region fallthrough
CT: control target
= control target key end

     0   :  { %s354_s1 = inlined_call_operand.vmem [shape: bf16[256,128], index: 1, kind: input, shape index: {}]   ;;  %s355_s0 = inlined_call_operand.vmem [shape: bf16[16,256], index: 0, kind: input, shape index: {}]   ;;  %s356_s2 = inlined_call_operand.vmem [shape: f32[1,128], index: 2, kind: input, shape index: {}]   ;;  %s357_s3 = inlined_call_operand.vmem [shape: f32[16,128], index: 3, kind: output, shape index: {}]  }
   0x1   :  { %v252_v0 = vld [vmem:[%s354_s1 + $0x40] sm:$0xff]   ;;  %v254_v2 = vld [vmem:[%s354_s1 + $0x48] sm:$0xff]   ;;  %v256_v4 = vld [vmem:[%s354_s1 + $0x50] sm:$0xff]  }
   0x2   :  { %v253_v1 = vld [vmem:[%s354_s1] sm:$0xff]   ;;  %230 = vmatprep.subr.bf16.mxu0 %v252_v0  ;;  %v255_v3 = vld [vmem:[%s354_s1 + $0x8] sm:$0xff]   ;;  %v257_v5 = vld [vmem:[%s354_s1 + $0x10] sm:$0xff]  }
   0x3   :  { %231 = vmatpush3.bf16.msra.mxu0 %v253_v1  ;;  %v258_v6 = vld [vmem:[%s354_s1 + $0x58] sm:$0xff]   ;;  %v260_v8 = vld [vmem:[%s354_s1 + $0x60] sm:$0xff]   ;;  %v262_v10 = vld [vmem:[%s354_s1 + $0x68] sm:$0xff]  }
   0x4   :  { %232 = vmatprep.subr.bf16.mxu0 %v254_v2  ;;  %v259_v7 = vld [vmem:[%s354_s1 + $0x18] sm:$0xff]   ;;  %v261_v9 = vld [vmem:[%s354_s1 + $0x20] sm:$0xff]   ;;  %v263_v12 = vld [vmem:[%s354_s1 + $0x28] sm:$0xff]  }
   0x5   :  { %v270_v11 = vld [vmem:[%s355_s0 + $0x4] ss:$8 sps:$4 sm:$0xff]   ;;  %v264_v13 = vld [vmem:[%s354_s1 + $0x70] sm:$0xff]   ;;  %v266_v15 = vld [vmem:[%s354_s1 + $0x78] sm:$0xff]  }
   0x6   :  { %194 = vmatprep.mubr.bf16.mxu0 %v270_v11  ;;  %v265_v14 = vld [vmem:[%s354_s1 + $0x30] sm:$0xff]   ;;  %v267_v16 = vld [vmem:[%s354_s1 + $0x38] sm:$0xff]   ;;  %v268_v17 = vld [vmem:[%s355_s0] ss:$8 sps:$4 sm:$0xff]  }
   0x7   :  { %233 = vmatpush3.bf16.msra.mxu0 %v255_v3  ;;  %v211_v19 = vld [vmem:[%s356_s2] ss:$0 sm:$0xff] }
   0x8   :  { %234 = vmatprep.subr.bf16.mxu0 %v256_v4 }
   0xb   :  { %235 = vmatpush3.bf16.msra.mxu0 %v257_v5 }
   0xc   :  { %236 = vmatprep.subr.bf16.mxu0 %v258_v6 }
   0xf   :  { %237 = vmatpush3.bf16.msra.mxu0 %v259_v7 }
  0x10   :  { %238 = vmatprep.subr.bf16.mxu0 %v260_v8 }
  0x13   :  { %239 = vmatpush3.bf16.msra.mxu0 %v261_v9 }
  0x14   :  { %240 = vmatprep.subr.bf16.mxu0 %v262_v10 }
  0x17   :  { %241 = vmatpush3.bf16.msra.mxu0 %v263_v12 }
  0x18   :  { %242 = vmatprep.subr.bf16.mxu0 %v264_v13 }
  0x1b   :  { %243 = vmatpush3.bf16.msra.mxu0 %v265_v14 }
  0x1c   :  { %244 = vmatprep.subr.bf16.mxu0 %v266_v15 }
  0x1f   :  { %245 = vmatpush3.bf16.msra.mxu0 %v267_v16 }
  0x22   :  { %195 = vmatmul.mubr.bf16.vlgmr.msra.gmra.mrb[0].mxu0 %v268_v17 }
  0xf5   :  { %v246_v18 = vpop.f32.mrb[0].mxu0 }
  0xf6   :  { %v247_v20 = vpop.f32.mrb[1].mxu0 }
  0xf7   :  { %v248_v21 = vadd.f32 %v247_v20, %v246_v18  ;;  %v249_v22 = vpop.f32.mrb[2].mxu0 }
  0xf8   :  { %v250_v23 = vpop.f32.mrb[3].mxu0 }
  0xf9   :  { %v197_v24 = vadd.f32 %v248_v21, %v211_v19  ;;  %v251_v25 = vadd.f32 %v250_v23, %v249_v22 }
  0xfb   :  { %v203_v26 = vmax.f32 %v197_v24, 0.0  ;;  %v200_v27 = vadd.f32 %v251_v25, %v211_v19 }
  0xfd   :  { %205 = vst [vmem:[%s357_s3] sm:$0xff] %v203_v26  ;;  %v204_v28 = vmax.f32 %v200_v27, 0.0 }
  0xff   :  { %206 = vst [vmem:[%s357_s3 + $0x8] sm:$0xff] %v204_v28 }

// kernel: transformer_forward.29
= control target key start
LH: loop header
LB: loop body
LE: loop exit
PB: predicated region body
PF: predicated region fallthrough
CT: control target
= control target key end

     0   :  { %v191_v0 = vmov 0.0   ;;  %vm192_vm0 = vmmov 0   ;;  %s249_s1 = inlined_call_operand.vmem [shape: bf16[128,128], index: 1, kind: input, shape index: {}]   ;;  %s250_s0 = inlined_call_operand.vmem [shape: bf16[16,128], index: 0, kind: input, shape index: {}]   ;;  %s251_s2 = inlined_call_operand.vmem [shape: f32[1,128], index: 2, kind: input, shape index: {}]   ;;  %s252_s3 = inlined_call_operand.vmem [shape: f32[16,128], index: 3, kind: output, shape index: {}]  }
   0x1   :  { %160 = vmatprep.subr.bf16.mxu0 %v191_v0  ;;  %v182_v1 = vld [vmem:[%s249_s1] sm:$0xff]   ;;  %176 = vmatprep.mubr.msk.bf16.mxu0 %vm192_vm0, %v191_v0  ;;  %v183_v2 = vld [vmem:[%s249_s1 + $0x8] sm:$0xff]   ;;  %v184_v3 = vld [vmem:[%s249_s1 + $0x10] sm:$0xff]  }
   0x2   :  { %161 = vmatpush3.bf16.msra.mxu0 %v182_v1  ;;  %v185_v4 = vld [vmem:[%s249_s1 + $0x18] sm:$0xff]   ;;  %v186_v5 = vld [vmem:[%s249_s1 + $0x20] sm:$0xff]   ;;  %v187_v6 = vld [vmem:[%s249_s1 + $0x28] sm:$0xff]  }
   0x3   :  { %162 = vmatprep.subr.bf16.mxu0 %v191_v0  ;;  %v188_v7 = vld [vmem:[%s249_s1 + $0x30] sm:$0xff]   ;;  %v189_v8 = vld [vmem:[%s249_s1 + $0x38] sm:$0xff]   ;;  %v190_v9 = vld [vmem:[%s250_s0] sm:$0xff]  }
   0x4   :  { %v141_v10 = vld [vmem:[%s251_s2] ss:$0 sm:$0xff] }
   0x6   :  { %163 = vmatpush3.bf16.msra.mxu0 %v183_v2 }
   0x7   :  { %164 = vmatprep.subr.bf16.mxu0 %v191_v0 }
   0xa   :  { %165 = vmatpush3.bf16.msra.mxu0 %v184_v3 }
   0xb   :  { %166 = vmatprep.subr.bf16.mxu0 %v191_v0 }
   0xe   :  { %167 = vmatpush3.bf16.msra.mxu0 %v185_v4 }
   0xf   :  { %168 = vmatprep.subr.bf16.mxu0 %v191_v0 }
  0x12   :  { %169 = vmatpush3.bf16.msra.mxu0 %v186_v5 }
  0x13   :  { %170 = vmatprep.subr.bf16.mxu0 %v191_v0 }
  0x16   :  { %171 = vmatpush3.bf16.msra.mxu0 %v187_v6 }
  0x17   :  { %172 = vmatprep.subr.bf16.mxu0 %v191_v0 }
  0x1a   :  { %173 = vmatpush3.bf16.msra.mxu0 %v188_v7 }
  0x1b   :  { %174 = vmatprep.subr.bf16.mxu0 %v191_v0 }
  0x1e   :  { %175 = vmatpush3.bf16.msra.mxu0 %v189_v8 }
  0x21   :  { %177 = vmatmul.mubr.bf16.vlgmr.msra.gmra.mrb[0].mxu0 %v190_v9 }
  0xf4   :  { %v128_v11 = vpop.f32.mrb[0].mxu0 }
  0xf5   :  { %v129_v12 = vadd.f32 %v141_v10, %v128_v11  ;;  %v178_v13 = vpop.f32.mrb[1].mxu0 }
  0xf6   :  { %v131_v14 = vpop.f32.mrb[2].mxu0 }
  0xf7   :  { %135 = vst [vmem:[%s252_s3] sm:$0xff] %v129_v12  ;;  %v132_v15 = vadd.f32 %v141_v10, %v131_v14  ;;  %v179_v16 = vpop.f32.mrb[3].mxu0 }
  0xf9   :  { %136 = vst [vmem:[%s252_s3 + $0x8] sm:$0xff] %v132_v15 }

// kernel: transformer_forward.30
= control target key start
LH: loop header
LB: loop body
LE: loop exit
PB: predicated region body
PF: predicated region fallthrough
CT: control target
= control target key end

     0   :  { %v358_v0 = vmov 0.0   ;;  %vm359_vm0 = vmmov 0   ;;  %s453_s1 = inlined_call_operand.vmem [shape: bf16[128,128], index: 1, kind: input, shape index: {}]   ;;  %s454_s3 = inlined_call_operand.vmem [shape: bf16[128,128], index: 3, kind: input, shape index: {}]   ;;  %s455_s0 = inlined_call_operand.vmem [shape: bf16[16,128], index: 0, kind: input, shape index: {}]   ;;  %s456_s2 = inlined_call_operand.vmem [shape: f32[1,128], index: 2, kind: input, shape index: {}]   ;;  %s457_s4 = inlined_call_operand.vmem [shape: f32[1,128], index: 4, kind: input, shape index: {}]   ;;  %s458_s5 = inlined_call_operand.vmem [shape: f32[16,128], index: 5, kind: output, shape index: {}]  }
   0x1   :  { %299 = vmatprep.subr.bf16.mxu0 %v358_v0  ;;  %v341_v1 = vld [vmem:[%s453_s1] sm:$0xff]   ;;  %315 = vmatprep.mubr.msk.bf16.mxu0 %vm359_vm0, %v358_v0  ;;  %v342_v2 = vld [vmem:[%s453_s1 + $0x8] sm:$0xff]   ;;  %v343_v3 = vld [vmem:[%s453_s1 + $0x10] sm:$0xff]  }
   0x2   :  { %319 = vmatprep.subr.bf16.mxu1 %v358_v0  ;;  %335 = vmatprep.mubr.msk.bf16.mxu1 %vm359_vm0, %v358_v0  ;;  %v350_v4 = vld [vmem:[%s454_s3] sm:$0xff]   ;;  %v344_v5 = vld [vmem:[%s453_s1 + $0x18] sm:$0xff]   ;;  %v351_v6 = vld [vmem:[%s454_s3 + $0x8] sm:$0xff]  }
   0x3   :  { %300 = vmatpush3.bf16.msra.mxu0 %v341_v1  ;;  %320 = vmatpush3.bf16.msra.mxu1 %v350_v4  ;;  %v345_v7 = vld [vmem:[%s453_s1 + $0x20] sm:$0xff]   ;;  %v352_v8 = vld [vmem:[%s454_s3 + $0x10] sm:$0xff]   ;;  %v346_v9 = vld [vmem:[%s453_s1 + $0x28] sm:$0xff]  }
   0x4   :  { %301 = vmatprep.subr.bf16.mxu0 %v358_v0  ;;  %321 = vmatprep.subr.bf16.mxu1 %v358_v0  ;;  %v353_v10 = vld [vmem:[%s454_s3 + $0x18] sm:$0xff]   ;;  %v347_v11 = vld [vmem:[%s453_s1 + $0x30] sm:$0xff]   ;;  %v354_v12 = vld [vmem:[%s454_s3 + $0x20] sm:$0xff]  }
   0x5   :  { %v348_v13 = vld [vmem:[%s453_s1 + $0x38] sm:$0xff]   ;;  %v355_v14 = vld [vmem:[%s454_s3 + $0x28] sm:$0xff]   ;;  %v349_v15 = vld [vmem:[%s455_s0] sm:$0xff]  }
   0x6   :  { %v356_v16 = vld [vmem:[%s454_s3 + $0x30] sm:$0xff]   ;;  %v357_v17 = vld [vmem:[%s454_s3 + $0x38] sm:$0xff]   ;;  %v262_v18 = vld [vmem:[%s456_s2] ss:$0 sm:$0xff] }
   0x7   :  { %302 = vmatpush3.bf16.msra.mxu0 %v342_v2  ;;  %322 = vmatpush3.bf16.msra.mxu1 %v351_v6  ;;  %v272_v28 = vld [vmem:[%s457_s4] ss:$0 sm:$0xff] }
   0x8   :  { %303 = vmatprep.subr.bf16.mxu0 %v358_v0  ;;  %323 = vmatprep.subr.bf16.mxu1 %v358_v0 }
   0xb   :  { %304 = vmatpush3.bf16.msra.mxu0 %v343_v3  ;;  %324 = vmatpush3.bf16.msra.mxu1 %v352_v8 }
   0xc   :  { %305 = vmatprep.subr.bf16.mxu0 %v358_v0  ;;  %325 = vmatprep.subr.bf16.mxu1 %v358_v0 }
   0xf   :  { %306 = vmatpush3.bf16.msra.mxu0 %v344_v5  ;;  %326 = vmatpush3.bf16.msra.mxu1 %v353_v10 }
  0x10   :  { %307 = vmatprep.subr.bf16.mxu0 %v358_v0  ;;  %327 = vmatprep.subr.bf16.mxu1 %v358_v0 }
  0x13   :  { %308 = vmatpush3.bf16.msra.mxu0 %v345_v7  ;;  %328 = vmatpush3.bf16.msra.mxu1 %v354_v12 }
  0x14   :  { %309 = vmatprep.subr.bf16.mxu0 %v358_v0  ;;  %329 = vmatprep.subr.bf16.mxu1 %v358_v0 }
  0x17   :  { %310 = vmatpush3.bf16.msra.mxu0 %v346_v9  ;;  %330 = vmatpush3.bf16.msra.mxu1 %v355_v14 }
  0x18   :  { %311 = vmatprep.subr.bf16.mxu0 %v358_v0  ;;  %331 = vmatprep.subr.bf16.mxu1 %v358_v0 }
  0x1b   :  { %312 = vmatpush3.bf16.msra.mxu0 %v347_v11  ;;  %332 = vmatpush3.bf16.msra.mxu1 %v356_v16 }
  0x1c   :  { %313 = vmatprep.subr.bf16.mxu0 %v358_v0  ;;  %333 = vmatprep.subr.bf16.mxu1 %v358_v0 }
  0x1f   :  { %314 = vmatpush3.bf16.msra.mxu0 %v348_v13  ;;  %334 = vmatpush3.bf16.msra.mxu1 %v357_v17 }
  0x22   :  { %316 = vmatmul.mubr.bf16.vlgmr.msra.gmra.mrb[0].mxu0 %v349_v15 }
  0xf5   :  { %v134_v19 = vpop.f32.mrb[0].mxu0 }
  0xf6   :  { %v135_v20 = vadd.f32 %v262_v18, %v134_v19  ;;  %v317_v21 = vpop.f32.mrb[1].mxu0 }
  0xf7   :  { %v137_v22 = vpop.f32.mrb[2].mxu0 }
  0xf8   :  { %v138_v23 = vadd.f32 %v262_v18, %v137_v22  ;;  %v318_v24 = vpop.f32.mrb[3].mxu0  ;;  %v141_v25 = vmax.f32 %v135_v20, 0.0 }
  0xfa   :  { %v142_v26 = vmax.f32 %v138_v23, 0.0 }
  0xfc   :  { %v143_v27 = vpack.c.bf16 %v142_v26, %v141_v25 }
  0xfe   :  { %336 = vmatmul.mubr.bf16.vlgmr.msra.gmra.mrb[0].mxu1 %v143_v27 }
 0x1d1   :  { %v249_v29 = vpop.f32.mrb[0].mxu1 }
 0x1d2   :  { %v250_v30 = vadd.f32 %v272_v28, %v249_v29  ;;  %v337_v31 = vpop.f32.mrb[1].mxu1 }
 0x1d3   :  { %v252_v32 = vpop.f32.mrb[2].mxu1 }
 0x1d4   :  { %256 = vst [vmem:[%s458_s5] sm:$0xff] %v250_v30  ;;  %v253_v33 = vadd.f32 %v272_v28, %v252_v32  ;;  %v338_v34 = vpop.f32.mrb[3].mxu1 }
 0x1d6   :  { %257 = vst [vmem:[%s458_s5 + $0x8] sm:$0xff] %v253_v33 }

// kernel: transformer_forward.28
= control target key start
LH: loop header
LB: loop body
LE: loop exit
PB: predicated region body
PF: predicated region fallthrough
CT: control target
= control target key end

     0   :  { %v2552_v0 = vmov 0.0   ;;  %vm2553_vm0 = vmmov 0   ;;  %s3241_s1 = inlined_call_operand.vmem [shape: bf16[8,128,128], index: 1, kind: input, shape index: {}]   ;;  %s3242_s0 = inlined_call_operand.vmem [shape: bf16[8,8,128], index: 0, kind: input, shape index: {}]   ;;  %s3243_s2 = inlined_call_operand.vmem [shape: bf16[8,128,128], index: 2, kind: input, shape index: {}]   ;;  %s3244_s3 = inlined_call_operand.vmem [shape: f32[8,8,128], index: 3, kind: output, shape index: {}]  }
   0x1   :  { %2070 = vmatprep.subr.bf16.mxu0 %v2552_v0  ;;  %2090 = vmatprep.subr.bf16.mxu1 %v2552_v0  ;;  %v2392_v1 = vld [vmem:[%s3241_s1] sm:$0xff]   ;;  %v2394_v3 = vld [vmem:[%s3241_s1 + $0x8] sm:$0xff]   ;;  %v2396_v5 = vld [vmem:[%s3241_s1 + $0x10] sm:$0xff]  }
   0x2   :  { %v2393_v2 = vld [vmem:[%s3241_s1 + $0x40] sm:$0xff]   ;;  %2086 = vmatprep.mubr.msk.bf16.mxu0 %vm2553_vm0, %v2552_v0  ;;  %2106 = vmatprep.mubr.msk.bf16.mxu1 %vm2553_vm0, %v2552_v0  ;;  %v2395_v4 = vld [vmem:[%s3241_s1 + $0x48] sm:$0xff]   ;;  %v2397_v6 = vld [vmem:[%s3241_s1 + $0x50] sm:$0xff]  }
   0x3   :  { %2071 = vmatpush3.bf16.xpose.msra.mxu0 %v2392_v1  ;;  %2091 = vmatpush3.bf16.xpose.msra.mxu1 %v2393_v2  ;;  %v2398_v7 = vld [vmem:[%s3241_s1 + $0x18] sm:$0xff]   ;;  %v2400_v9 = vld [vmem:[%s3241_s1 + $0x20] sm:$0xff]   ;;  %v2402_v11 = vld [vmem:[%s3241_s1 + $0x28] sm:$0xff]  }
   0x4   :  { %2072 = vmatprep.subr.bf16.mxu0 %v2552_v0  ;;  %2092 = vmatprep.subr.bf16.mxu1 %v2552_v0  ;;  %v2399_v8 = vld [vmem:[%s3241_s1 + $0x58] sm:$0xff]   ;;  %v2401_v10 = vld [vmem:[%s3241_s1 + $0x60] sm:$0xff]   ;;  %v2403_v12 = vld [vmem:[%s3241_s1 + $0x68] sm:$0xff]  }
   0x5   :  { %v2404_v13 = vld [vmem:[%s3241_s1 + $0x30] sm:$0xff]   ;;  %v2406_v15 = vld [vmem:[%s3241_s1 + $0x38] sm:$0xff]   ;;  %v15_v17 = vld [vmem:[%s3242_s0] sm:$0xf] }
   0x6   :  { %v2405_v14 = vld [vmem:[%s3241_s1 + $0x70] sm:$0xff]   ;;  %v2407_v16 = vld [vmem:[%s3241_s1 + $0x78] sm:$0xff]   ;;  %v2408_v18 = vld [vmem:[%s3241_s1 + $0x80] sm:$0xff]  }
   0x7   :  { %v16_v19 = vld [vmem:[%s3242_s0 + $0x4] sm:$0xf]  ;;  %v2410_v21 = vld [vmem:[%s3241_s1 + $0x88] sm:$0xff]   ;;  %v2412_v23 = vld [vmem:[%s3241_s1 + $0x90] sm:$0xff]  }
   0x8   :  { %v2409_v20 = vld [vmem:[%s3241_s1 + $0xc0] sm:$0xff]   ;;  %v2411_v22 = vld [vmem:[%s3241_s1 + $0xc8] sm:$0xff]   ;;  %v2413_v24 = vld [vmem:[%s3241_s1 + $0xd0] sm:$0xff]  }
   0x9   :  { %v2414_v25 = vld [vmem:[%s3241_s1 + $0x98] sm:$0xff]   ;;  %v2416_v27 = vld [vmem:[%s3241_s1 + $0xa0] sm:$0xff]   ;;  %v2418_v29 = vld [vmem:[%s3241_s1 + $0xa8] sm:$0xff]  }
   0xa   :  { %v2415_v26 = vld [vmem:[%s3241_s1 + $0xd8] sm:$0xff]   ;;  %v2417_v28 = vld [vmem:[%s3241_s1 + $0xe0] sm:$0xff]   ;;  %v2419_v30 = vld [vmem:[%s3241_s1 + $0xe8] sm:$0xff]  }
   0xb   :  { %2073 = vmatpush3.bf16.xpose.msra.mxu0 %v2394_v3  ;;  %2093 = vmatpush3.bf16.xpose.msra.mxu1 %v2395_v4  ;;  %v2420_v31 = vld [vmem:[%s3241_s1 + $0xb0] sm:$0xff]   ;;  %v2422_v33 = vld [vmem:[%s3241_s1 + $0xb8] sm:$0xff]   ;;  %v17_v35 = vld [vmem:[%s3242_s0 + $0x8] sm:$0xf] }
   0xc   :  { %2074 = vmatprep.subr.bf16.mxu0 %v2552_v0  ;;  %2094 = vmatprep.subr.bf16.mxu1 %v2552_v0  ;;  %v2421_v32 = vld [vmem:[%s3241_s1 + $0xf0] sm:$0xff]   ;;  %v2423_v34 = vld [vmem:[%s3241_s1 + $0xf8] sm:$0xff]   ;;  %v2424_v36 = vld [vmem:[%s3241_s1 + $0x100] sm:$0xff]  }
   0xd   :  { %v18_v37 = vld [vmem:[%s3242_s0 + $0xc] sm:$0xf]  ;;  %v2425_v38 = vld [vmem:[%s3241_s1 + $0x140] sm:$0xff]   ;;  %v2428_v41 = vld [vmem:[%s3241_s1 + $0x110] sm:$0xff]  }
   0xe   :  { %v2426_v39 = vld [vmem:[%s3241_s1 + $0x108] sm:$0xff]   ;;  %v2429_v42 = vld [vmem:[%s3241_s1 + $0x150] sm:$0xff]   ;;  %v2430_v43 = vld [vmem:[%s3241_s1 + $0x118] sm:$0xff]  }
   0xf   :  { %v2427_v40 = vld [vmem:[%s3241_s1 + $0x148] sm:$0xff]   ;;  %v2431_v44 = vld [vmem:[%s3241_s1 + $0x158] sm:$0xff]   ;;  %v2432_v45 = vld [vmem:[%s3241_s1 + $0x120] sm:$0xff]  }
  0x10   :  { %v2433_v46 = vld [vmem:[%s3241_s1 + $0x160] sm:$0xff]   ;;  %v2434_v47 = vld [vmem:[%s3241_s1 + $0x128] sm:$0xff]   ;;  %v2436_v49 = vld [vmem:[%s3241_s1 + $0x130] sm:$0xff]  }
  0x11   :  { %v2435_v48 = vld [vmem:[%s3241_s1 + $0x168] sm:$0xff]   ;;  %v2437_v50 = vld [vmem:[%s3241_s1 + $0x170] sm:$0xff]   ;;  %v2438_v51 = vld [vmem:[%s3241_s1 + $0x138] sm:$0xff]  }
  0x12   :  { %v2439_v52 = vld [vmem:[%s3241_s1 + $0x178] sm:$0xff]   ;;  %v19_v53 = vld [vmem:[%s3242_s0 + $0x10] sm:$0xf]  ;;  %v2440_v54 = vld [vmem:[%s3241_s1 + $0x180] sm:$0xff]  }
  0x13   :  { %2075 = vmatpush3.bf16.xpose.msra.mxu0 %v2396_v5  ;;  %2095 = vmatpush3.bf16.xpose.msra.mxu1 %v2397_v6  ;;  %v20_v55 = vld [vmem:[%s3242_s0 + $0x14] sm:$0xf]  ;;  %v2441_v56 = vld [vmem:[%s3241_s1 + $0x1c0] sm:$0xff]   ;;  %v2442_v57 = vld [vmem:[%s3241_s1 + $0x188] sm:$0xff]  }
  0x14   :  { %2076 = vmatprep.subr.bf16.mxu0 %v2552_v0  ;;  %2096 = vmatprep.subr.bf16.mxu1 %v2552_v0  ;;  %v2443_v58 = vld [vmem:[%s3241_s1 + $0x1c8] sm:$0xff]   ;;  %v2444_v59 = vld [vmem:[%s3241_s1 + $0x190] sm:$0xff]   ;;  %v2446_v61 = vld [vmem:[%s3241_s1 + $0x198] sm:$0xff]  }
  0x15   :  { %v2445_v60 = vld [vmem:[%s3241_s1 + $0x1d0] sm:$0xff]   ;;  %v2447_v62 = vld [vmem:[%s3241_s1 + $0x1d8] sm:$0xff]   ;;  %v2448_v63 = vld [vmem:[%s3241_s1 + $0x1a0] sm:$0xff]  }
  0x16   :  { %v2449_v1 = vld [vmem:[%s3241_s1 + $0x1e0] sm:$0xff]   ;;  %v2450_v2 = vld [vmem:[%s3241_s1 + $0x1a8] sm:$0xff]   ;;  %v2452_v4 = vld [vmem:[%s3241_s1 + $0x1b0] sm:$0xff]  }
  0x17   :  { %v2451_v3 = vld [vmem:[%s3241_s1 + $0x1e8] sm:$0xff]   ;;  %v2453_v5 = vld [vmem:[%s3241_s1 + $0x1f0] sm:$0xff]   ;;  %v2454_v6 = vld [vmem:[%s3241_s1 + $0x1b8] sm:$0xff]  }
  0x1b   :  { %2077 = vmatpush3.bf16.xpose.msra.mxu0 %v2398_v7  ;;  %2097 = vmatpush3.bf16.xpose.msra.mxu1 %v2399_v8  ;;  %v2455_v7 = vld [vmem:[%s3241_s1 + $0x1f8] sm:$0xff]  }
  0x1c   :  { %2078 = vmatprep.subr.bf16.mxu0 %v2552_v0  ;;  %2098 = vmatprep.subr.bf16.mxu1 %v2552_v0  ;;  %v21_v8 = vld [vmem:[%s3242_s0 + $0x18] sm:$0xf] }
  0x23   :  { %2079 = vmatpush3.bf16.xpose.msra.mxu0 %v2400_v9  ;;  %2099 = vmatpush3.bf16.xpose.msra.mxu1 %v2401_v10  ;;  %v22_v9 = vld [vmem:[%s3242_s0 + $0x1c] sm:$0xf]  ;;  %v863_v10 = vlaneseq }
  0x24   :  { %2080 = vmatprep.subr.bf16.mxu0 %v2552_v0  ;;  %2100 = vmatprep.subr.bf16.mxu1 %v2552_v0 }
  0x2b   :  { %2081 = vmatpush3.bf16.xpose.msra.mxu0 %v2402_v11  ;;  %2101 = vmatpush3.bf16.xpose.msra.mxu1 %v2403_v12  ;;  %v2876_v11 = vand.u32 127, %v863_v10 }
  0x2c   :  { %2082 = vmatprep.subr.bf16.mxu0 %v2552_v0  ;;  %2102 = vmatprep.subr.bf16.mxu1 %v2552_v0 }
  0x2d   :  { %vm865_vm1 = vcmp.lt.s32.totalorder %v2876_v11, 8 }
  0x33   :  { %2083 = vmatpush3.bf16.xpose.msra.mxu0 %v2404_v13  ;;  %2103 = vmatpush3.bf16.xpose.msra.mxu1 %v2405_v14 }
  0x34   :  { %2084 = vmatprep.subr.bf16.mxu0 %v2552_v0  ;;  %2104 = vmatprep.subr.bf16.mxu1 %v2552_v0 }
  0x3b   :  { %2085 = vmatpush3.bf16.xpose.msra.mxu0 %v2406_v15  ;;  %2105 = vmatpush3.bf16.xpose.msra.mxu1 %v2407_v16 }
  0x3c   :  { %2110 = vmatprep.subr.bf16.mxu0 %v2552_v0  ;;  %2130 = vmatprep.subr.bf16.mxu1 %v2552_v0 }
  0x42   :  { %2087 = vmatmul.mubr.bf16.vlgmr.msra.gmra.mrb[0].mxu0 %v15_v17  ;;  %2107 = vmatmul.mubr.bf16.vlgmr.msra.gmra.mrb[0].mxu1 %v16_v19 }
  0x43   :  { %2111 = vmatpush3.bf16.xpose.msra.mxu0 %v2408_v18  ;;  %2131 = vmatpush3.bf16.xpose.msra.mxu1 %v2409_v20 }
  0x44   :  { %2112 = vmatprep.subr.bf16.mxu0 %v2552_v0  ;;  %2132 = vmatprep.subr.bf16.mxu1 %v2552_v0 }
  0x45   :  { %2126 = vmatprep.mubr.msk.bf16.mxu0 %vm2553_vm0, %v2552_v0  ;;  %2146 = vmatprep.mubr.msk.bf16.mxu1 %vm2553_vm0, %v2552_v0 }
  0x4b   :  { %2113 = vmatpush3.bf16.xpose.msra.mxu0 %v2410_v21  ;;  %2133 = vmatpush3.bf16.xpose.msra.mxu1 %v2411_v22 }
  0x4c   :  { %2114 = vmatprep.subr.bf16.mxu0 %v2552_v0  ;;  %2134 = vmatprep.subr.bf16.mxu1 %v2552_v0 }
  0x53   :  { %2115 = vmatpush3.bf16.xpose.msra.mxu0 %v2412_v23  ;;  %2135 = vmatpush3.bf16.xpose.msra.mxu1 %v2413_v24 }
  0x54   :  { %2116 = vmatprep.subr.bf16.mxu0 %v2552_v0  ;;  %2136 = vmatprep.subr.bf16.mxu1 %v2552_v0 }
  0x5b   :  { %2117 = vmatpush3.bf16.xpose.msra.mxu0 %v2414_v25  ;;  %2137 = vmatpush3.bf16.xpose.msra.mxu1 %v2415_v26 }
  0x5c   :  { %2118 = vmatprep.subr.bf16.mxu0 %v2552_v0  ;;  %2138 = vmatprep.subr.bf16.mxu1 %v2552_v0 }
  0x63   :  { %2119 = vmatpush3.bf16.xpose.msra.mxu0 %v2416_v27  ;;  %2139 = vmatpush3.bf16.xpose.msra.mxu1 %v2417_v28 }
  0x64   :  { %2120 = vmatprep.subr.bf16.mxu0 %v2552_v0  ;;  %2140 = vmatprep.subr.bf16.mxu1 %v2552_v0 }
  0x6b   :  { %2121 = vmatpush3.bf16.xpose.msra.mxu0 %v2418_v29  ;;  %2141 = vmatpush3.bf16.xpose.msra.mxu1 %v2419_v30 }
  0x6c   :  { %2122 = vmatprep.subr.bf16.mxu0 %v2552_v0  ;;  %2142 = vmatprep.subr.bf16.mxu1 %v2552_v0 }
  0x73   :  { %2123 = vmatpush3.bf16.xpose.msra.mxu0 %v2420_v31  ;;  %2143 = vmatpush3.bf16.xpose.msra.mxu1 %v2421_v32 }
  0x74   :  { %2124 = vmatprep.subr.bf16.mxu0 %v2552_v0  ;;  %2144 = vmatprep.subr.bf16.mxu1 %v2552_v0 }
  0x7b   :  { %2125 = vmatpush3.bf16.xpose.msra.mxu0 %v2422_v33  ;;  %2145 = vmatpush3.bf16.xpose.msra.mxu1 %v2423_v34 }
  0x7c   :  { %2150 = vmatprep.subr.bf16.mxu0 %v2552_v0  ;;  %2170 = vmatprep.subr.bf16.mxu1 %v2552_v0 }
  0x82   :  { %2127 = vmatmul.mubr.bf16.vlgmr.msra.gmra.mrb[4].mxu0 %v17_v35  ;;  %2147 = vmatmul.mubr.bf16.vlgmr.msra.gmra.mrb[4].mxu1 %v18_v37 }
  0x83   :  { %2151 = vmatpush3.bf16.xpose.msra.mxu0 %v2424_v36  ;;  %2171 = vmatpush3.bf16.xpose.msra.mxu1 %v2425_v38 }
  0x84   :  { %2152 = vmatprep.subr.bf16.mxu0 %v2552_v0  ;;  %2172 = vmatprep.subr.bf16.mxu1 %v2552_v0 }
  0x85   :  { %2166 = vmatprep.mubr.msk.bf16.mxu0 %vm2553_vm0, %v2552_v0  ;;  %2186 = vmatprep.mubr.msk.bf16.mxu1 %vm2553_vm0, %v2552_v0 }
  0x8b   :  { %2153 = vmatpush3.bf16.xpose.msra.mxu0 %v2426_v39  ;;  %2173 = vmatpush3.bf16.xpose.msra.mxu1 %v2427_v40 }
  0x8c   :  { %2154 = vmatprep.subr.bf16.mxu0 %v2552_v0  ;;  %2174 = vmatprep.subr.bf16.mxu1 %v2552_v0 }
  0x93   :  { %2155 = vmatpush3.bf16.xpose.msra.mxu0 %v2428_v41  ;;  %2175 = vmatpush3.bf16.xpose.msra.mxu1 %v2429_v42 }
  0x94   :  { %2156 = vmatprep.subr.bf16.mxu0 %v2552_v0  ;;  %2176 = vmatprep.subr.bf16.mxu1 %v2552_v0 }
  0x9b   :  { %2157 = vmatpush3.bf16.xpose.msra.mxu0 %v2430_v43  ;;  %2177 = vmatpush3.bf16.xpose.msra.mxu1 %v2431_v44 }
  0x9c   :  { %2158 = vmatprep.subr.bf16.mxu0 %v2552_v0  ;;  %2178 = vmatprep.subr.bf16.mxu1 %v2552_v0 }
  0xa3   :  { %2159 = vmatpush3.bf16.xpose.msra.mxu0 %v2432_v45  ;;  %2179 = vmatpush3.bf16.xpose.msra.mxu1 %v2433_v46 }
  0xa4   :  { %2160 = vmatprep.subr.bf16.mxu0 %v2552_v0  ;;  %2180 = vmatprep.subr.bf16.mxu1 %v2552_v0 }
  0xab   :  { %2161 = vmatpush3.bf16.xpose.msra.mxu0 %v2434_v47  ;;  %2181 = vmatpush3.bf16.xpose.msra.mxu1 %v2435_v48 }
  0xac   :  { %2162 = vmatprep.subr.bf16.mxu0 %v2552_v0  ;;  %2182 = vmatprep.subr.bf16.mxu1 %v2552_v0 }
  0xb3   :  { %2163 = vmatpush3.bf16.xpose.msra.mxu0 %v2436_v49  ;;  %2183 = vmatpush3.bf16.xpose.msra.mxu1 %v2437_v50 }
  0xb4   :  { %2164 = vmatprep.subr.bf16.mxu0 %v2552_v0  ;;  %2184 = vmatprep.subr.bf16.mxu1 %v2552_v0 }
  0xbb   :  { %2165 = vmatpush3.bf16.xpose.msra.mxu0 %v2438_v51  ;;  %2185 = vmatpush3.bf16.xpose.msra.mxu1 %v2439_v52 }
  0xbc   :  { %2190 = vmatprep.subr.bf16.mxu0 %v2552_v0  ;;  %2210 = vmatprep.subr.bf16.mxu1 %v2552_v0 }
  0xc2   :  { %2167 = vmatmul.mubr.bf16.vlgmr.msra.gmra.mrb[8].mxu0 %v19_v53  ;;  %2187 = vmatmul.mubr.bf16.vlgmr.msra.gmra.mrb[8].mxu1 %v20_v55 }
  0xc3   :  { %2191 = vmatpush3.bf16.xpose.msra.mxu0 %v2440_v54  ;;  %2211 = vmatpush3.bf16.xpose.msra.mxu1 %v2441_v56  ;;  %v2456_v54 = vld [vmem:[%s3243_s2] sm:$0xff]   ;;  %v2457_v56 = vld [vmem:[%s3243_s2 + $0x8] sm:$0xff]  }
  0xc4   :  { %2192 = vmatprep.subr.bf16.mxu0 %v2552_v0  ;;  %2212 = vmatprep.subr.bf16.mxu1 %v2552_v0 }
  0xc5   :  { %2206 = vmatprep.mubr.msk.bf16.mxu0 %vm2553_vm0, %v2552_v0  ;;  %2226 = vmatprep.mubr.msk.bf16.mxu1 %vm2553_vm0, %v2552_v0 }
  0xcb   :  { %2193 = vmatpush3.bf16.xpose.msra.mxu0 %v2442_v57  ;;  %2213 = vmatpush3.bf16.xpose.msra.mxu1 %v2443_v58  ;;  %v2458_v57 = vld [vmem:[%s3243_s2 + $0x40] sm:$0xff]   ;;  %v2459_v58 = vld [vmem:[%s3243_s2 + $0x10] sm:$0xff]  }
  0xcc   :  { %2194 = vmatprep.subr.bf16.mxu0 %v2552_v0  ;;  %2214 = vmatprep.subr.bf16.mxu1 %v2552_v0 }
  0xd3   :  { %2195 = vmatpush3.bf16.xpose.msra.mxu0 %v2444_v59  ;;  %2215 = vmatpush3.bf16.xpose.msra.mxu1 %v2445_v60  ;;  %v2460_v59 = vld [vmem:[%s3243_s2 + $0x48] sm:$0xff]  }
  0xd4   :  { %2196 = vmatprep.subr.bf16.mxu0 %v2552_v0  ;;  %2216 = vmatprep.subr.bf16.mxu1 %v2552_v0 }
  0xdb   :  { %2197 = vmatpush3.bf16.xpose.msra.mxu0 %v2446_v61  ;;  %2217 = vmatpush3.bf16.xpose.msra.mxu1 %v2447_v62  ;;  %v2461_v61 = vld [vmem:[%s3243_s2 + $0x18] sm:$0xff]   ;;  %v2462_v62 = vld [vmem:[%s3243_s2 + $0x50] sm:$0xff]  }
  0xdc   :  { %2198 = vmatprep.subr.bf16.mxu0 %v2552_v0  ;;  %2218 = vmatprep.subr.bf16.mxu1 %v2552_v0 }
  0xe3   :  { %2199 = vmatpush3.bf16.xpose.msra.mxu0 %v2448_v63  ;;  %2219 = vmatpush3.bf16.xpose.msra.mxu1 %v2449_v1  ;;  %v2463_v63 = vld [vmem:[%s3243_s2 + $0x20] sm:$0xff]   ;;  %v2464_v1 = vld [vmem:[%s3243_s2 + $0x58] sm:$0xff]  }
  0xe4   :  { %2200 = vmatprep.subr.bf16.mxu0 %v2552_v0  ;;  %2220 = vmatprep.subr.bf16.mxu1 %v2552_v0 }
  0xeb   :  { %2201 = vmatpush3.bf16.xpose.msra.mxu0 %v2450_v2  ;;  %2221 = vmatpush3.bf16.xpose.msra.mxu1 %v2451_v3  ;;  %v2465_v2 = vld [vmem:[%s3243_s2 + $0x28] sm:$0xff]   ;;  %v2466_v3 = vld [vmem:[%s3243_s2 + $0x60] sm:$0xff]  }
  0xec   :  { %2202 = vmatprep.subr.bf16.mxu0 %v2552_v0  ;;  %2222 = vmatprep.subr.bf16.mxu1 %v2552_v0 }
  0xf3   :  { %2203 = vmatpush3.bf16.xpose.msra.mxu0 %v2452_v4  ;;  %2223 = vmatpush3.bf16.xpose.msra.mxu1 %v2453_v5  ;;  %v2467_v4 = vld [vmem:[%s3243_s2 + $0x30] sm:$0xff]   ;;  %v2468_v5 = vld [vmem:[%s3243_s2 + $0x68] sm:$0xff]  }
  0xf4   :  { %2204 = vmatprep.subr.bf16.mxu0 %v2552_v0  ;;  %2224 = vmatprep.subr.bf16.mxu1 %v2552_v0 }
  0xfb   :  { %2205 = vmatpush3.bf16.xpose.msra.mxu0 %v2454_v6  ;;  %2225 = vmatpush3.bf16.xpose.msra.mxu1 %v2455_v7  ;;  %v2469_v6 = vld [vmem:[%s3243_s2 + $0x38] sm:$0xff]   ;;  %v2470_v7 = vld [vmem:[%s3243_s2 + $0x70] sm:$0xff]  }
  0xfc   :  { %2230 = vmatprep.subr.bf16.mxu0 %v2552_v0  ;;  %2250 = vmatprep.subr.bf16.mxu1 %v2552_v0 }
 0x102   :  { %2207 = vmatmul.mubr.bf16.vlgmr.msra.gmra.mrb[12].mxu0 %v21_v8  ;;  %2227 = vmatmul.mubr.bf16.vlgmr.msra.gmra.mrb[12].mxu1 %v22_v9  ;;  %v2471_v8 = vld [vmem:[%s3243_s2 + $0x78] sm:$0xff]  }
 0x103   :  { %2246 = vmatprep.mubr.msk.bf16.mxu0 %vm2553_vm0, %v2552_v0  ;;  %2266 = vmatprep.mubr.msk.bf16.mxu1 %vm2553_vm0, %v2552_v0 }
 0x104   :  { %2231 = vmatpush3.bf16.msra.mxu0 %v2456_v54  ;;  %2251 = vmatpush3.bf16.msra.mxu1 %v2458_v57  ;;  %v2481_v54 = vld [vmem:[%s3243_s2 + $0xa8] sm:$0xff]  }
 0x105   :  { %2232 = vmatprep.subr.bf16.mxu0 %v2552_v0  ;;  %2252 = vmatprep.subr.bf16.mxu1 %v2552_v0 }
 0x108   :  { %2233 = vmatpush3.bf16.msra.mxu0 %v2457_v56  ;;  %2253 = vmatpush3.bf16.msra.mxu1 %v2460_v59 }
 0x109   :  { %2234 = vmatprep.subr.bf16.mxu0 %v2552_v0  ;;  %2254 = vmatprep.subr.bf16.mxu1 %v2552_v0 }
 0x10c   :  { %2235 = vmatpush3.bf16.msra.mxu0 %v2459_v58  ;;  %2255 = vmatpush3.bf16.msra.mxu1 %v2462_v62 }
 0x10d   :  { %2236 = vmatprep.subr.bf16.mxu0 %v2552_v0  ;;  %2256 = vmatprep.subr.bf16.mxu1 %v2552_v0 }
 0x110   :  { %2237 = vmatpush3.bf16.msra.mxu0 %v2461_v61  ;;  %2257 = vmatpush3.bf16.msra.mxu1 %v2464_v1  ;;  %v2484_v61 = vld [vmem:[%s3243_s2 + $0xe8] sm:$0xff]   ;;  %v2485_v1 = vld [vmem:[%s3243_s2 + $0xb8] sm:$0xff]  }
 0x111   :  { %2238 = vmatprep.subr.bf16.mxu0 %v2552_v0  ;;  %2258 = vmatprep.subr.bf16.mxu1 %v2552_v0 }
 0x114   :  { %2239 = vmatpush3.bf16.msra.mxu0 %v2463_v63  ;;  %2259 = vmatpush3.bf16.msra.mxu1 %v2466_v3  ;;  %v2487_v3 = vld [vmem:[%s3243_s2 + $0xf8] sm:$0xff]  }
 0x115   :  { %v233_v12 = vpop.f32.mrb[0].mxu0  ;;  %v321_v14 = vpop.f32.mrb[0].mxu1  ;;  %2240 = vmatprep.subr.bf16.mxu0 %v2552_v0  ;;  %2260 = vmatprep.subr.bf16.mxu1 %v2552_v0 }
 0x116   :  { %v855_v13 = vmul.f32 0.20412415, %v233_v12  ;;  %v2088_v15 = vpop.f32.mrb[1].mxu0  ;;  %v2108_v16 = vpop.f32.mrb[1].mxu1  ;;  %v856_v18 = vmul.f32 0.20412415, %v321_v14 }
 0x117   :  { %v236_v17 = vpop.f32.mrb[2].mxu0  ;;  %v324_v19 = vpop.f32.mrb[2].mxu1 }
 0x118   :  { %v2089_v20 = vpop.f32.mrb[3].mxu0  ;;  %v866_v21 = vsel %vm865_vm1, %v855_v13, -1e+30  ;;  %v2109_v22 = vpop.f32.mrb[3].mxu1  ;;  %v867_v23 = vsel %vm865_vm1, %v856_v18, -1e+30  ;;  %2241 = vmatpush3.bf16.msra.mxu0 %v2465_v2  ;;  %2261 = vmatpush3.bf16.msra.mxu1 %v2468_v5 }
 0x119   :  { %874 = vmax.xlane.f32.xlu0 %v866_v21  ;;  %2242 = vmatprep.subr.bf16.mxu0 %v2552_v0  ;;  %v2486_v2 = vld [vmem:[%s3243_s2 + $0xf0] sm:$0xff]  }
 0x11a   :  { %2262 = vmatprep.subr.bf16.mxu1 %v2552_v0 }
 0x11c   :  { %2243 = vmatpush3.bf16.msra.mxu0 %v2467_v4  ;;  %2263 = vmatpush3.bf16.msra.mxu1 %v2470_v7 }
 0x11d   :  { %876 = vmax.xlane.f32.xlu0 %v867_v23  ;;  %2244 = vmatprep.subr.bf16.mxu0 %v2552_v0 }
 0x11e   :  { %2264 = vmatprep.subr.bf16.mxu1 %v2552_v0 }
 0x120   :  { %2245 = vmatpush3.bf16.msra.mxu0 %v2469_v6  ;;  %2265 = vmatpush3.bf16.msra.mxu1 %v2471_v8 }
 0x121   :  { %2270 = vmatprep.subr.bf16.mxu0 %v2552_v0  ;;  %2290 = vmatprep.subr.bf16.mxu1 %v2552_v0 }
 0x155   :  { %v409_v24 = vpop.f32.mrb[4].mxu0  ;;  %v497_v26 = vpop.f32.mrb[4].mxu1 }
 0x156   :  { %v857_v25 = vmul.f32 0.20412415, %v409_v24  ;;  %v2128_v27 = vpop.f32.mrb[5].mxu0  ;;  %v2148_v28 = vpop.f32.mrb[5].mxu1  ;;  %v858_v30 = vmul.f32 0.20412415, %v497_v26 }
 0x157   :  { %v412_v29 = vpop.f32.mrb[6].mxu0  ;;  %v500_v31 = vpop.f32.mrb[6].mxu1 }
 0x158   :  { %v2129_v32 = vpop.f32.mrb[7].mxu0  ;;  %v2885_v33 = vsel %vm865_vm1, %v857_v25, -1e+30  ;;  %v2149_v34 = vpop.f32.mrb[7].mxu1  ;;  %v2890_v35 = vsel %vm865_vm1, %v858_v30, -1e+30 }
 0x159   :  { %878 = vmax.xlane.f32.xlu1 %v2885_v33 }
 0x15d   :  { %880 = vmax.xlane.f32.xlu1 %v2890_v35 }
 0x195   :  { %v585_v36 = vpop.f32.mrb[8].mxu0  ;;  %v673_v38 = vpop.f32.mrb[8].mxu1 }
 0x196   :  { %v859_v37 = vmul.f32 0.20412415, %v585_v36  ;;  %v2168_v39 = vpop.f32.mrb[9].mxu0  ;;  %v860_v40 = vmul.f32 0.20412415, %v673_v38  ;;  %v2188_v41 = vpop.f32.mrb[9].mxu1 }
 0x197   :  { %v588_v42 = vpop.f32.mrb[10].mxu0  ;;  %v676_v43 = vpop.f32.mrb[10].mxu1  ;;  %v2472_v41 = vld [vmem:[%s3243_s2 + $0x80] sm:$0xff]  }
 0x198   :  { %v2169_v44 = vpop.f32.mrb[11].mxu0  ;;  %v2895_v45 = vsel %vm865_vm1, %v859_v37, -1e+30  ;;  %v2189_v46 = vpop.f32.mrb[11].mxu1  ;;  %v2899_v47 = vsel %vm865_vm1, %v860_v40, -1e+30 }
 0x199   :  { %882 = vmax.xlane.f32.xlu0 %v2895_v45  ;;  %884 = vmax.xlane.f32.xlu1 %v2899_v47  ;;  %v2474_v46 = vld [vmem:[%s3243_s2 + $0xc0] sm:$0xff]  }
 0x1a6   :  { %v875_v48 = vpop.xlane.xlu0 %874 }
 0x1a7   :  { %v890_v49 = vsub.f32 %v866_v21, %v875_v48  ;;  %v2475_v48 = vld [vmem:[%s3243_s2 + $0x90] sm:$0xff]  }
 0x1a9   :  { %v898_v50 = vmul.f32 1.442695, %v890_v49  ;;  %v2476_v49 = vld [vmem:[%s3243_s2 + $0xc8] sm:$0xff]  }
 0x1aa   :  { %v877_v51 = vpop.xlane.xlu0 %876 }
 0x1ab   :  { %2520 = vpow2.f32 %v898_v50  ;;  %v891_v52 = vsub.f32 %v867_v23, %v877_v51  ;;  %v2477_v50 = vld [vmem:[%s3243_s2 + $0x98] sm:$0xff]   ;;  %v2478_v51 = vld [vmem:[%s3243_s2 + $0xd0] sm:$0xff]  }
 0x1ad   :  { %v900_v53 = vmul.f32 1.442695, %v891_v52  ;;  %v2479_v52 = vld [vmem:[%s3243_s2 + $0xa0] sm:$0xff]  }
 0x1af   :  { %2522 = vpow2.f32 %v900_v53  ;;  %v2480_v53 = vld [vmem:[%s3243_s2 + $0xd8] sm:$0xff]  }
 0x1b5   :  { %v2907_v55 = vpop.eup %2520 }
 0x1b6   :  { %914 = vadd.xlane.f32.xlu0 %v2907_v55 }
 0x1b9   :  { %v2922_v60 = vpop.eup %2522 }
 0x1ba   :  { %916 = vadd.xlane.f32.xlu1 %v2922_v60 }
 0x1d5   :  { %v761_v9 = vpop.f32.mrb[12].mxu0  ;;  %v849_v12 = vpop.f32.mrb[12].mxu1 }
 0x1d6   :  { %v861_v10 = vmul.f32 0.20412415, %v761_v9  ;;  %v2208_v13 = vpop.f32.mrb[13].mxu0  ;;  %v862_v14 = vmul.f32 0.20412415, %v849_v12  ;;  %v2228_v15 = vpop.f32.mrb[13].mxu1 }
 0x1d7   :  { %v764_v16 = vpop.f32.mrb[14].mxu0  ;;  %v852_v17 = vpop.f32.mrb[14].mxu1  ;;  %v2489_v15 = vld [vmem:[%s3243_s2 + $0x140] sm:$0xff]  }
 0x1d8   :  { %v2209_v18 = vpop.f32.mrb[15].mxu0  ;;  %v2975_v19 = vsel %vm865_vm1, %v861_v10, -1e+30  ;;  %v2229_v20 = vpop.f32.mrb[15].mxu1  ;;  %v2979_v21 = vsel %vm865_vm1, %v862_v14, -1e+30 }
 0x1d9   :  { %886 = vmax.xlane.f32.xlu0 %v2975_v19  ;;  %888 = vmax.xlane.f32.xlu1 %v2979_v21  ;;  %v2488_v10 = vld [vmem:[%s3243_s2 + $0x100] sm:$0xff]   ;;  %v2490_v16 = vld [vmem:[%s3243_s2 + $0x108] sm:$0xff]   ;;  %v2493_v20 = vld [vmem:[%s3243_s2 + $0x150] sm:$0xff]  }
 0x1da   :  { %v2491_v18 = vld [vmem:[%s3243_s2 + $0x148] sm:$0xff]  }
 0x1e6   :  { %v879_v22 = vpop.xlane.xlu1 %878 }
 0x1e7   :  { %v892_v23 = vsub.f32 %v2885_v33, %v879_v22  ;;  %v2495_v22 = vld [vmem:[%s3243_s2 + $0x158] sm:$0xff]  }
 0x1e9   :  { %v902_v24 = vmul.f32 1.442695, %v892_v23  ;;  %v2496_v23 = vld [vmem:[%s3243_s2 + $0x120] sm:$0xff]  }
 0x1ea   :  { %v881_v25 = vpop.xlane.xlu1 %880 }
 0x1eb   :  { %2524 = vpow2.f32 %v902_v24  ;;  %v893_v26 = vsub.f32 %v2890_v35, %v881_v25  ;;  %v2497_v24 = vld [vmem:[%s3243_s2 + $0x160] sm:$0xff]   ;;  %v2498_v25 = vld [vmem:[%s3243_s2 + $0x128] sm:$0xff]  }
 0x1ed   :  { %v904_v27 = vmul.f32 1.442695, %v893_v26  ;;  %v2499_v26 = vld [vmem:[%s3243_s2 + $0x168] sm:$0xff]  }
 0x1ef   :  { %2526 = vpow2.f32 %v904_v27  ;;  %v2500_v27 = vld [vmem:[%s3243_s2 + $0x130] sm:$0xff]  }
 0x1f5   :  { %v2985_v28 = vpop.eup %2524 }
 0x1f6   :  { %918 = vadd.xlane.f32.xlu0 %v2985_v28 }
 0x1f9   :  { %v2988_v11 = vpop.eup %2526 }
 0x1fa   :  { %920 = vadd.xlane.f32.xlu1 %v2988_v11 }
 0x226   :  { %v883_v29 = vpop.xlane.xlu0 %882  ;;  %v885_v30 = vpop.xlane.xlu1 %884 }
 0x227   :  { %v894_v31 = vsub.f32 %v2895_v45, %v883_v29  ;;  %v895_v32 = vsub.f32 %v2899_v47, %v885_v30  ;;  %v2473_v45 = vld [vmem:[%s3243_s2 + $0x88] sm:$0xff]   ;;  %v2503_v29 = vld [vmem:[%s3243_s2 + $0x178] sm:$0xff]  }
 0x229   :  { %v906_v33 = vmul.f32 1.442695, %v894_v31  ;;  %v908_v34 = vmul.f32 1.442695, %v895_v32 }
 0x22b   :  { %2528 = vpow2.f32 %v906_v33 }
 0x22c   :  { %2530 = vpow2.f32 %v908_v34 }
 0x235   :  { %v2993_v35 = vpop.eup %2528 }
 0x236   :  { %v2995_v36 = vpop.eup %2530  ;;  %922 = vadd.xlane.f32.xlu0 %v2993_v35 }
 0x237   :  { %924 = vadd.xlane.f32.xlu1 %v2995_v36 }
 0x243   :  { %v915_v37 = vpop.xlane.xlu0 %914 }
 0x244   :  { %2532 = vrcp.f32 %v915_v37 }
 0x247   :  { %v917_v38 = vpop.xlane.xlu1 %916 }
 0x248   :  { %2534 = vrcp.f32 %v917_v38  ;;  %v2504_v38 = vld [vmem:[%s3243_s2 + $0x180] sm:$0xff]  }
 0x24e   :  { %v2533_v39 = vpop.eup %2532 }
 0x24f   :  { %v931_v40 = vmul.f32 %v2533_v39, %v2907_v55  ;;  %v2482_v55 = vld [vmem:[%s3243_s2 + $0xe0] sm:$0xff]  }
 0x251   :  { %v946_v42 = vpack.c.bf16 %v931_v40, %v931_v40  ;;  %v2505_v40 = vld [vmem:[%s3243_s2 + $0x1c0] sm:$0xff]  }
 0x252   :  { %v2535_v43 = vpop.eup %2534 }
 0x253   :  { %2247 = vmatmul.mubr.bf16.vlgmr.msra.gmra.mrb[16].mxu0 %v946_v42  ;;  %v933_v44 = vmul.f32 %v2535_v43, %v2922_v60  ;;  %v2483_v60 = vld [vmem:[%s3243_s2 + $0xb0] sm:$0xff]   ;;  %v2506_v42 = vld [vmem:[%s3243_s2 + $0x188] sm:$0xff]  }
 0x254   :  { %2271 = vmatpush3.bf16.msra.mxu0 %v2472_v41  ;;  %2286 = vmatprep.mubr.msk.bf16.mxu0 %vm2553_vm0, %v2552_v0  ;;  %v2509_v43 = vld [vmem:[%s3243_s2 + $0x1d0] sm:$0xff]  }
 0x255   :  { %v947_v47 = vpack.c.bf16 %v933_v44, %v933_v44  ;;  %2272 = vmatprep.subr.bf16.mxu0 %v2552_v0  ;;  %v2510_v44 = vld [vmem:[%s3243_s2 + $0x198] sm:$0xff]  }
 0x257   :  { %2267 = vmatmul.mubr.bf16.vlgmr.msra.gmra.mrb[16].mxu1 %v947_v47  ;;  %v2513_v47 = vld [vmem:[%s3243_s2 + $0x1e0] sm:$0xff]  }
 0x258   :  { %2273 = vmatpush3.bf16.msra.mxu0 %v2473_v45  ;;  %2291 = vmatpush3.bf16.msra.mxu1 %v2474_v46  ;;  %v2511_v45 = vld [vmem:[%s3243_s2 + $0x1d8] sm:$0xff]   ;;  %v2512_v46 = vld [vmem:[%s3243_s2 + $0x1a0] sm:$0xff]  }
 0x259   :  { %2274 = vmatprep.subr.bf16.mxu0 %v2552_v0  ;;  %2292 = vmatprep.subr.bf16.mxu1 %v2552_v0 }
 0x25a   :  { %2306 = vmatprep.mubr.msk.bf16.mxu1 %vm2553_vm0, %v2552_v0 }
 0x25c   :  { %2275 = vmatpush3.bf16.msra.mxu0 %v2475_v48  ;;  %2293 = vmatpush3.bf16.msra.mxu1 %v2476_v49  ;;  %v2514_v48 = vld [vmem:[%s3243_s2 + $0x1a8] sm:$0xff]  }
 0x25d   :  { %2276 = vmatprep.subr.bf16.mxu0 %v2552_v0  ;;  %2294 = vmatprep.subr.bf16.mxu1 %v2552_v0  ;;  %v2515_v49 = vld [vmem:[%s3243_s2 + $0x1e8] sm:$0xff]  }
 0x260   :  { %2277 = vmatpush3.bf16.msra.mxu0 %v2477_v50  ;;  %2295 = vmatpush3.bf16.msra.mxu1 %v2478_v51  ;;  %v2516_v50 = vld [vmem:[%s3243_s2 + $0x1b0] sm:$0xff]  }
 0x261   :  { %2278 = vmatprep.subr.bf16.mxu0 %v2552_v0  ;;  %2296 = vmatprep.subr.bf16.mxu1 %v2552_v0  ;;  %v2517_v51 = vld [vmem:[%s3243_s2 + $0x1f0] sm:$0xff]  }
 0x264   :  { %2279 = vmatpush3.bf16.msra.mxu0 %v2479_v52  ;;  %2297 = vmatpush3.bf16.msra.mxu1 %v2480_v53  ;;  %v2518_v52 = vld [vmem:[%s3243_s2 + $0x1b8] sm:$0xff]  }
 0x265   :  { %2298 = vmatprep.subr.bf16.mxu1 %v2552_v0  ;;  %2280 = vmatprep.subr.bf16.mxu0 %v2552_v0  ;;  %v2519_v53 = vld [vmem:[%s3243_s2 + $0x1f8] sm:$0xff]  }
 0x266   :  { %v887_v56 = vpop.xlane.xlu0 %886  ;;  %v889_v57 = vpop.xlane.xlu1 %888 }
 0x267   :  { %v896_v58 = vsub.f32 %v2975_v19, %v887_v56  ;;  %v897_v59 = vsub.f32 %v2979_v21, %v889_v57  ;;  %v2492_v19 = vld [vmem:[%s3243_s2 + $0x110] sm:$0xff]   ;;  %v2494_v21 = vld [vmem:[%s3243_s2 + $0x118] sm:$0xff]  }
 0x268   :  { %2281 = vmatpush3.bf16.msra.mxu0 %v2481_v54  ;;  %2299 = vmatpush3.bf16.msra.mxu1 %v2482_v55 }
 0x269   :  { %v910_v62 = vmul.f32 1.442695, %v896_v58  ;;  %2282 = vmatprep.subr.bf16.mxu0 %v2552_v0  ;;  %2300 = vmatprep.subr.bf16.mxu1 %v2552_v0  ;;  %v912_v63 = vmul.f32 1.442695, %v897_v59 }
 0x26b   :  { %2536 = vpow2.f32 %v910_v62 }
 0x26c   :  { %2538 = vpow2.f32 %v912_v63  ;;  %2283 = vmatpush3.bf16.msra.mxu0 %v2483_v60  ;;  %2301 = vmatpush3.bf16.msra.mxu1 %v2484_v61 }
 0x26d   :  { %2284 = vmatprep.subr.bf16.mxu0 %v2552_v0  ;;  %2302 = vmatprep.subr.bf16.mxu1 %v2552_v0 }
 0x270   :  { %2285 = vmatpush3.bf16.msra.mxu0 %v2485_v1  ;;  %2303 = vmatpush3.bf16.msra.mxu1 %v2486_v2 }
 0x271   :  { %2304 = vmatprep.subr.bf16.mxu1 %v2552_v0  ;;  %2310 = vmatprep.subr.bf16.mxu0 %v2552_v0 }
 0x274   :  { %2305 = vmatpush3.bf16.msra.mxu1 %v2487_v3 }
 0x275   :  { %v3070_v4 = vpop.eup %2536  ;;  %2330 = vmatprep.subr.bf16.mxu1 %v2552_v0 }
 0x276   :  { %v3073_v5 = vpop.eup %2538  ;;  %926 = vadd.xlane.f32.xlu0 %v3070_v4 }
 0x277   :  { %928 = vadd.xlane.f32.xlu1 %v3073_v5 }
 0x283   :  { %v919_v6 = vpop.xlane.xlu0 %918 }
 0x284   :  { %2540 = vrcp.f32 %v919_v6 }
 0x287   :  { %v921_v7 = vpop.xlane.xlu1 %920 }
 0x288   :  { %2542 = vrcp.f32 %v921_v7 }
 0x28e   :  { %v2541_v8 = vpop.eup %2540 }
 0x28f   :  { %v935_v9 = vmul.f32 %v2541_v8, %v2985_v28  ;;  %v2501_v28 = vld [vmem:[%s3243_s2 + $0x170] sm:$0xff]  }
 0x291   :  { %v948_v12 = vpack.c.bf16 %v935_v9, %v935_v9 }
 0x292   :  { %v2543_v13 = vpop.eup %2542 }
 0x293   :  { %2287 = vmatmul.mubr.bf16.vlgmr.msra.gmra.mrb[20].mxu0 %v948_v12  ;;  %v937_v14 = vmul.f32 %v2543_v13, %v2988_v11  ;;  %v2502_v11 = vld [vmem:[%s3243_s2 + $0x138] sm:$0xff]  }
 0x294   :  { %2311 = vmatpush3.bf16.msra.mxu0 %v2488_v10  ;;  %2326 = vmatprep.mubr.msk.bf16.mxu0 %vm2553_vm0, %v2552_v0 }
 0x295   :  { %v949_v17 = vpack.c.bf16 %v937_v14, %v937_v14  ;;  %2312 = vmatprep.subr.bf16.mxu0 %v2552_v0 }
 0x297   :  { %2307 = vmatmul.mubr.bf16.vlgmr.msra.gmra.mrb[20].mxu1 %v949_v17 }
 0x298   :  { %2331 = vmatpush3.bf16.msra.mxu1 %v2489_v15  ;;  %2313 = vmatpush3.bf16.msra.mxu0 %v2490_v16 }
 0x299   :  { %2332 = vmatprep.subr.bf16.mxu1 %v2552_v0  ;;  %2314 = vmatprep.subr.bf16.mxu0 %v2552_v0 }
 0x29a   :  { %2346 = vmatprep.mubr.msk.bf16.mxu1 %vm2553_vm0, %v2552_v0 }
 0x29c   :  { %2333 = vmatpush3.bf16.msra.mxu1 %v2491_v18  ;;  %2315 = vmatpush3.bf16.msra.mxu0 %v2492_v19 }
 0x29d   :  { %2334 = vmatprep.subr.bf16.mxu1 %v2552_v0  ;;  %2316 = vmatprep.subr.bf16.mxu0 %v2552_v0 }
 0x2a0   :  { %2335 = vmatpush3.bf16.msra.mxu1 %v2493_v20  ;;  %2317 = vmatpush3.bf16.msra.mxu0 %v2494_v21 }
 0x2a1   :  { %2336 = vmatprep.subr.bf16.mxu1 %v2552_v0  ;;  %2318 = vmatprep.subr.bf16.mxu0 %v2552_v0 }
 0x2a4   :  { %2337 = vmatpush3.bf16.msra.mxu1 %v2495_v22  ;;  %2319 = vmatpush3.bf16.msra.mxu0 %v2496_v23 }
 0x2a5   :  { %2338 = vmatprep.subr.bf16.mxu1 %v2552_v0  ;;  %2320 = vmatprep.subr.bf16.mxu0 %v2552_v0 }
 0x2a8   :  { %2339 = vmatpush3.bf16.msra.mxu1 %v2497_v24  ;;  %2321 = vmatpush3.bf16.msra.mxu0 %v2498_v25 }
 0x2a9   :  { %2340 = vmatprep.subr.bf16.mxu1 %v2552_v0  ;;  %2322 = vmatprep.subr.bf16.mxu0 %v2552_v0 }
 0x2ac   :  { %2341 = vmatpush3.bf16.msra.mxu1 %v2499_v26  ;;  %2323 = vmatpush3.bf16.msra.mxu0 %v2500_v27 }
 0x2ad   :  { %2342 = vmatprep.subr.bf16.mxu1 %v2552_v0  ;;  %2324 = vmatprep.subr.bf16.mxu0 %v2552_v0 }
 0x2b0   :  { %2343 = vmatpush3.bf16.msra.mxu1 %v2501_v28  ;;  %2325 = vmatpush3.bf16.msra.mxu0 %v2502_v11 }
 0x2b1   :  { %2344 = vmatprep.subr.bf16.mxu1 %v2552_v0  ;;  %2350 = vmatprep.subr.bf16.mxu0 %v2552_v0 }
 0x2b4   :  { %2345 = vmatpush3.bf16.msra.mxu1 %v2503_v29 }
 0x2b5   :  { %2370 = vmatprep.subr.bf16.mxu1 %v2552_v0 }
 0x2c3   :  { %v923_v30 = vpop.xlane.xlu0 %922 }
 0x2c4   :  { %v925_v31 = vpop.xlane.xlu1 %924  ;;  %2544 = vrcp.f32 %v923_v30 }
 0x2c5   :  { %2546 = vrcp.f32 %v925_v31 }
 0x2ce   :  { %v2545_v32 = vpop.eup %2544 }
 0x2cf   :  { %v2547_v33 = vpop.eup %2546  ;;  %v939_v34 = vmul.f32 %v2545_v32, %v2993_v35  ;;  %v2507_v35 = vld [vmem:[%s3243_s2 + $0x1c8] sm:$0xff]  }
 0x2d0   :  { %v941_v37 = vmul.f32 %v2547_v33, %v2995_v36  ;;  %v2508_v36 = vld [vmem:[%s3243_s2 + $0x190] sm:$0xff]  }
 0x2d1   :  { %v950_v39 = vpack.c.bf16 %v939_v34, %v939_v34 }
 0x2d2   :  { %v951_v41 = vpack.c.bf16 %v941_v37, %v941_v37 }
 0x2d3   :  { %2327 = vmatmul.mubr.bf16.vlgmr.msra.gmra.mrb[24].mxu0 %v950_v39 }
 0x2d4   :  { %2347 = vmatmul.mubr.bf16.vlgmr.msra.gmra.mrb[24].mxu1 %v951_v41  ;;  %2351 = vmatpush3.bf16.msra.mxu0 %v2504_v38 }
 0x2d5   :  { %2371 = vmatpush3.bf16.msra.mxu1 %v2505_v40  ;;  %2352 = vmatprep.subr.bf16.mxu0 %v2552_v0 }
 0x2d6   :  { %2372 = vmatprep.subr.bf16.mxu1 %v2552_v0  ;;  %2366 = vmatprep.mubr.msk.bf16.mxu0 %vm2553_vm0, %v2552_v0 }
 0x2d7   :  { %2386 = vmatprep.mubr.msk.bf16.mxu1 %vm2553_vm0, %v2552_v0 }
 0x2d8   :  { %2353 = vmatpush3.bf16.msra.mxu0 %v2506_v42 }
 0x2d9   :  { %2373 = vmatpush3.bf16.msra.mxu1 %v2507_v35  ;;  %2354 = vmatprep.subr.bf16.mxu0 %v2552_v0 }
 0x2da   :  { %2374 = vmatprep.subr.bf16.mxu1 %v2552_v0 }
 0x2dc   :  { %2355 = vmatpush3.bf16.msra.mxu0 %v2508_v36 }
 0x2dd   :  { %2375 = vmatpush3.bf16.msra.mxu1 %v2509_v43  ;;  %2356 = vmatprep.subr.bf16.mxu0 %v2552_v0 }
 0x2de   :  { %2376 = vmatprep.subr.bf16.mxu1 %v2552_v0 }
 0x2e0   :  { %2357 = vmatpush3.bf16.msra.mxu0 %v2510_v44 }
 0x2e1   :  { %2377 = vmatpush3.bf16.msra.mxu1 %v2511_v45  ;;  %2358 = vmatprep.subr.bf16.mxu0 %v2552_v0 }
 0x2e2   :  { %2378 = vmatprep.subr.bf16.mxu1 %v2552_v0 }
 0x2e4   :  { %2359 = vmatpush3.bf16.msra.mxu0 %v2512_v46 }
 0x2e5   :  { %2379 = vmatpush3.bf16.msra.mxu1 %v2513_v47  ;;  %2360 = vmatprep.subr.bf16.mxu0 %v2552_v0 }
 0x2e6   :  { %2380 = vmatprep.subr.bf16.mxu1 %v2552_v0 }
 0x2e8   :  { %2361 = vmatpush3.bf16.msra.mxu0 %v2514_v48 }
 0x2e9   :  { %2381 = vmatpush3.bf16.msra.mxu1 %v2515_v49  ;;  %2362 = vmatprep.subr.bf16.mxu0 %v2552_v0 }
 0x2ea   :  { %2382 = vmatprep.subr.bf16.mxu1 %v2552_v0 }
 0x2ec   :  { %2363 = vmatpush3.bf16.msra.mxu0 %v2516_v50 }
 0x2ed   :  { %2383 = vmatpush3.bf16.msra.mxu1 %v2517_v51  ;;  %2364 = vmatprep.subr.bf16.mxu0 %v2552_v0 }
 0x2ee   :  { %2384 = vmatprep.subr.bf16.mxu1 %v2552_v0 }
 0x2f0   :  { %2365 = vmatpush3.bf16.msra.mxu0 %v2518_v52 }
 0x2f1   :  { %2385 = vmatpush3.bf16.msra.mxu1 %v2519_v53 }
 0x303   :  { %v927_v54 = vpop.xlane.xlu0 %926 }
 0x304   :  { %v929_v55 = vpop.xlane.xlu1 %928  ;;  %2548 = vrcp.f32 %v927_v54 }
 0x305   :  { %2550 = vrcp.f32 %v929_v55 }
 0x30e   :  { %v2549_v56 = vpop.eup %2548 }
 0x30f   :  { %v2551_v57 = vpop.eup %2550  ;;  %v943_v58 = vmul.f32 %v2549_v56, %v3070_v4 }
 0x310   :  { %v945_v59 = vmul.f32 %v2551_v57, %v3073_v5 }
 0x311   :  { %v952_v60 = vpack.c.bf16 %v943_v58, %v943_v58 }
 0x312   :  { %v953_v61 = vpack.c.bf16 %v945_v59, %v945_v59 }
 0x313   :  { %2367 = vmatmul.mubr.bf16.vlgmr.msra.gmra.mrb[28].mxu0 %v952_v60 }
 0x314   :  { %2387 = vmatmul.mubr.bf16.vlgmr.msra.gmra.mrb[28].mxu1 %v953_v61 }
 0x326   :  { %v1164_v62 = vpop.f32.mrb[16].mxu0 }
 0x327   :  { %1786 = vst [vmem:[%s3244_s3] sm:$0xff] %v1164_v62  ;;  %v2248_v0 = vpop.f32.mrb[17].mxu0 }
 0x328   :  { %v1167_v63 = vpop.f32.mrb[18].mxu0 }
 0x329   :  { %v2249_v1 = vpop.f32.mrb[19].mxu0 }
 0x32a   :  { %v1252_v2 = vpop.f32.mrb[16].mxu1 }
 0x32b   :  { %1787 = vst [vmem:[%s3244_s3 + $0x8] sm:$0xff] %v1252_v2  ;;  %v2268_v3 = vpop.f32.mrb[17].mxu1 }
 0x32c   :  { %v1255_v4 = vpop.f32.mrb[18].mxu1 }
 0x32d   :  { %v2269_v5 = vpop.f32.mrb[19].mxu1 }
 0x366   :  { %v1340_v6 = vpop.f32.mrb[20].mxu0 }
 0x367   :  { %1788 = vst [vmem:[%s3244_s3 + $0x10] sm:$0xff] %v1340_v6  ;;  %v2288_v7 = vpop.f32.mrb[21].mxu0 }
 0x368   :  { %v1343_v8 = vpop.f32.mrb[22].mxu0 }
 0x369   :  { %v2289_v9 = vpop.f32.mrb[23].mxu0 }
 0x36a   :  { %v1428_v10 = vpop.f32.mrb[20].mxu1 }
 0x36b   :  { %1789 = vst [vmem:[%s3244_s3 + $0x18] sm:$0xff] %v1428_v10  ;;  %v2308_v12 = vpop.f32.mrb[21].mxu1 }
 0x36c   :  { %v1431_v13 = vpop.f32.mrb[22].mxu1 }
 0x36d   :  { %v2309_v14 = vpop.f32.mrb[23].mxu1 }
 0x3a6   :  { %v1516_v15 = vpop.f32.mrb[24].mxu0 }
 0x3a7   :  { %1790 = vst [vmem:[%s3244_s3 + $0x20] sm:$0xff] %v1516_v15  ;;  %v1604_v16 = vpop.f32.mrb[24].mxu1  ;;  %v2328_v17 = vpop.f32.mrb[25].mxu0 }
 0x3a8   :  { %1791 = vst [vmem:[%s3244_s3 + $0x28] sm:$0xff] %v1604_v16  ;;  %v2348_v18 = vpop.f32.mrb[25].mxu1  ;;  %v1519_v19 = vpop.f32.mrb[26].mxu0 }
 0x3a9   :  { %v1607_v20 = vpop.f32.mrb[26].mxu1  ;;  %v2329_v21 = vpop.f32.mrb[27].mxu0 }
 0x3aa   :  { %v2349_v22 = vpop.f32.mrb[27].mxu1 }
 0x3e6   :  { %v1692_v23 = vpop.f32.mrb[28].mxu0 }
 0x3e7   :  { %1792 = vst [vmem:[%s3244_s3 + $0x30] sm:$0xff] %v1692_v23  ;;  %v1780_v24 = vpop.f32.mrb[28].mxu1  ;;  %v2368_v25 = vpop.f32.mrb[29].mxu0 }
 0x3e8   :  { %1793 = vst [vmem:[%s3244_s3 + $0x38] sm:$0xff] %v1780_v24  ;;  %v2388_v26 = vpop.f32.mrb[29].mxu1  ;;  %v1695_v27 = vpop.f32.mrb[30].mxu0 }
 0x3e9   :  { %v1783_v28 = vpop.f32.mrb[30].mxu1  ;;  %v2369_v11 = vpop.f32.mrb[31].mxu0 }
 0x3ea   :  { %v2389_v29 = vpop.f32.mrb[31].mxu1 }

// kernel: transformer_forward.35
= control target key start
LH: loop header
LB: loop body
LE: loop exit
PB: predicated region body
PF: predicated region fallthrough
CT: control target
= control target key end

     0   :  { %v345_v0 = vmov 0.0   ;;  %vm346_vm0 = vmmov 0   ;;  %s437_s1 = inlined_call_operand.vmem [shape: bf16[128,128], index: 1, kind: input, shape index: {}]   ;;  %s438_s3 = inlined_call_operand.vmem [shape: bf16[128,128], index: 3, kind: input, shape index: {}]   ;;  %s439_s0 = inlined_call_operand.vmem [shape: bf16[8,128], index: 0, kind: input, shape index: {}]   ;;  %s440_s2 = inlined_call_operand.vmem [shape: f32[1,128], index: 2, kind: input, shape index: {}]   ;;  %s441_s4 = inlined_call_operand.vmem [shape: f32[1,128], index: 4, kind: input, shape index: {}]   ;;  %s442_s5 = inlined_call_operand.vmem [shape: f32[8,128], index: 5, kind: output, shape index: {}]  }
   0x1   :  { %287 = vmatprep.subr.bf16.mxu0 %v345_v0  ;;  %v329_v1 = vld [vmem:[%s437_s1] sm:$0xff]   ;;  %303 = vmatprep.mubr.msk.bf16.mxu0 %vm346_vm0, %v345_v0  ;;  %v330_v2 = vld [vmem:[%s437_s1 + $0x8] sm:$0xff]   ;;  %v331_v3 = vld [vmem:[%s437_s1 + $0x10] sm:$0xff]  }
   0x2   :  { %307 = vmatprep.subr.bf16.mxu1 %v345_v0  ;;  %323 = vmatprep.mubr.msk.bf16.mxu1 %vm346_vm0, %v345_v0  ;;  %v337_v4 = vld [vmem:[%s438_s3] sm:$0xff]   ;;  %v332_v5 = vld [vmem:[%s437_s1 + $0x18] sm:$0xff]   ;;  %v338_v6 = vld [vmem:[%s438_s3 + $0x8] sm:$0xff]  }
   0x3   :  { %288 = vmatpush3.bf16.msra.mxu0 %v329_v1  ;;  %308 = vmatpush3.bf16.msra.mxu1 %v337_v4  ;;  %v333_v7 = vld [vmem:[%s437_s1 + $0x20] sm:$0xff]   ;;  %v339_v8 = vld [vmem:[%s438_s3 + $0x10] sm:$0xff]   ;;  %v334_v9 = vld [vmem:[%s437_s1 + $0x28] sm:$0xff]  }
   0x4   :  { %289 = vmatprep.subr.bf16.mxu0 %v345_v0  ;;  %309 = vmatprep.subr.bf16.mxu1 %v345_v0  ;;  %v340_v10 = vld [vmem:[%s438_s3 + $0x18] sm:$0xff]   ;;  %v335_v11 = vld [vmem:[%s437_s1 + $0x30] sm:$0xff]   ;;  %v341_v12 = vld [vmem:[%s438_s3 + $0x20] sm:$0xff]  }
   0x5   :  { %v336_v13 = vld [vmem:[%s437_s1 + $0x38] sm:$0xff]   ;;  %v342_v14 = vld [vmem:[%s438_s3 + $0x28] sm:$0xff]   ;;  %v21_v15 = vld [vmem:[%s439_s0] sm:$0xf] }
   0x6   :  { %v343_v16 = vld [vmem:[%s438_s3 + $0x30] sm:$0xff]   ;;  %v344_v17 = vld [vmem:[%s438_s3 + $0x38] sm:$0xff]   ;;  %v251_v18 = vld [vmem:[%s440_s2] ss:$0 sm:$0xff] }
   0x7   :  { %290 = vmatpush3.bf16.msra.mxu0 %v330_v2  ;;  %310 = vmatpush3.bf16.msra.mxu1 %v338_v6  ;;  %v260_v26 = vld [vmem:[%s441_s4] ss:$0 sm:$0xff] }
   0x8   :  { %291 = vmatprep.subr.bf16.mxu0 %v345_v0  ;;  %311 = vmatprep.subr.bf16.mxu1 %v345_v0 }
   0xb   :  { %292 = vmatpush3.bf16.msra.mxu0 %v331_v3  ;;  %312 = vmatpush3.bf16.msra.mxu1 %v339_v8 }
   0xc   :  { %293 = vmatprep.subr.bf16.mxu0 %v345_v0  ;;  %313 = vmatprep.subr.bf16.mxu1 %v345_v0 }
   0xf   :  { %294 = vmatpush3.bf16.msra.mxu0 %v332_v5  ;;  %314 = vmatpush3.bf16.msra.mxu1 %v340_v10 }
  0x10   :  { %295 = vmatprep.subr.bf16.mxu0 %v345_v0  ;;  %315 = vmatprep.subr.bf16.mxu1 %v345_v0 }
  0x13   :  { %296 = vmatpush3.bf16.msra.mxu0 %v333_v7  ;;  %316 = vmatpush3.bf16.msra.mxu1 %v341_v12 }
  0x14   :  { %297 = vmatprep.subr.bf16.mxu0 %v345_v0  ;;  %317 = vmatprep.subr.bf16.mxu1 %v345_v0 }
  0x17   :  { %298 = vmatpush3.bf16.msra.mxu0 %v334_v9  ;;  %318 = vmatpush3.bf16.msra.mxu1 %v342_v14 }
  0x18   :  { %299 = vmatprep.subr.bf16.mxu0 %v345_v0  ;;  %319 = vmatprep.subr.bf16.mxu1 %v345_v0 }
  0x1b   :  { %300 = vmatpush3.bf16.msra.mxu0 %v335_v11  ;;  %320 = vmatpush3.bf16.msra.mxu1 %v343_v16 }
  0x1c   :  { %301 = vmatprep.subr.bf16.mxu0 %v345_v0  ;;  %321 = vmatprep.subr.bf16.mxu1 %v345_v0 }
  0x1f   :  { %302 = vmatpush3.bf16.msra.mxu0 %v336_v13  ;;  %322 = vmatpush3.bf16.msra.mxu1 %v344_v17 }
  0x22   :  { %304 = vmatmul.mubr.bf16.vlgmr.msra.gmra.mrb[0].mxu0 %v21_v15 }
  0xf5   :  { %v127_v19 = vpop.f32.mrb[0].mxu0 }
  0xf6   :  { %v128_v20 = vadd.f32 %v251_v18, %v127_v19  ;;  %v305_v21 = vpop.f32.mrb[1].mxu0 }
  0xf7   :  { %v130_v22 = vpop.f32.mrb[2].mxu0 }
  0xf8   :  { %v133_v23 = vmax.f32 %v128_v20, 0.0  ;;  %v306_v24 = vpop.f32.mrb[3].mxu0 }
  0xfa   :  { %v134_v25 = vpack.c.bf16 %v133_v23, %v133_v23 }
  0xfc   :  { %324 = vmatmul.mubr.bf16.vlgmr.msra.gmra.mrb[0].mxu1 %v134_v25 }
 0x1cf   :  { %v240_v27 = vpop.f32.mrb[0].mxu1 }
 0x1d0   :  { %v241_v28 = vadd.f32 %v260_v26, %v240_v27  ;;  %v325_v29 = vpop.f32.mrb[1].mxu1 }
 0x1d1   :  { %v243_v30 = vpop.f32.mrb[2].mxu1 }
 0x1d2   :  { %246 = vst [vmem:[%s442_s5] sm:$0xff] %v241_v28  ;;  %v326_v31 = vpop.f32.mrb[3].mxu1 }

</bundles_post_ra>
